<compile_context>
chip_gen: v5e
topology: v5e:2x2
jax: 0.10.0
libtpu: 0.0.40
codegen_flags: <defaults>
</compile_context>

<pallas_src>
import jax
import jax.numpy as jnp
from jax.experimental import pallas as pl
from jax.experimental.pallas import tpu as pltpu


ACT_DTYPE = jnp.bfloat16
VMEM_LIMIT = 48 * 1024 * 1024  # stay inside v7x's 64 MiB physical VMEM


# ----------------------------------------------------------------------------
# Config (small, deterministic, TPU-friendly dims: head_dim = 128)
# ----------------------------------------------------------------------------
class Phi3Config:
    vocab_size = 512
    hidden_size = 512
    intermediate_size = 1024
    num_attention_heads = 4
    num_key_value_heads = 2
    num_hidden_layers = 2
    rms_norm_eps = 1e-5
    rope_theta = 10000.0
    hidden_act = "silu"


def _pick_tile(n, cap):
    """Largest multiple of 128 <= cap that divides n (falls back to n)."""
    t = min(n, cap)
    t -= t % 128
    while t >= 128:
        if n % t == 0:
            return t
        t -= 128
    return n


def _cparams(*semantics):
    return pltpu.CompilerParams(dimension_semantics=semantics,
                                vmem_limit_bytes=VMEM_LIMIT)


# ----------------------------------------------------------------------------
# Pallas kernels
# ----------------------------------------------------------------------------
def fused_norm_matmul(x, residual, norm_w, w, eps, tm_cap=256, tn_cap=512):
    """res = x (+ residual); normed = RMSNorm(res)*norm_w; out = normed @ w.

    x, residual: [M, H] bf16. norm_w: [H] f32. w: [H, N] pre-transposed bf16.
    Norm is computed once per row-tile (at j==0) into a VMEM scratch, then only
    the MXU dot runs for the remaining output column tiles.
    Returns (out [M, N], res [M, H]).
    """
    M, H = x.shape
    H2, N = w.shape
    assert H == H2
    tm = _pick_tile(M, tm_cap)
    tn = _pick_tile(N, tn_cap)
    nw = norm_w.reshape(1, H).astype(jnp.float32)
    has_res = residual is not None

    def kernel(*refs):
        if has_res:
            x_ref, r_ref, nw_ref, w_ref, out_ref, res_ref, normed_ref = refs
        else:
            x_ref, nw_ref, w_ref, out_ref, res_ref, normed_ref = refs
            r_ref = None

        @pl.when(pl.program_id(1) == 0)
        def _():
            h = x_ref[...].astype(jnp.float32)
            if r_ref is not None:
                h = h + r_ref[...].astype(jnp.float32)
            res_ref[...] = h.astype(res_ref.dtype)
            var = jnp.mean(h * h, axis=-1, keepdims=True)
            normed_ref[...] = ((h * jax.lax.rsqrt(var + eps)) * nw_ref[...]
                               ).astype(normed_ref.dtype)

        out_ref[...] = jnp.dot(normed_ref[...], w_ref[...],
                               preferred_element_type=jnp.float32
                               ).astype(out_ref.dtype)

    in_specs = [pl.BlockSpec((tm, H), lambda i, j: (i, 0))]
    args = [x]
    if has_res:
        in_specs.append(pl.BlockSpec((tm, H), lambda i, j: (i, 0)))
        args.append(residual)
    in_specs += [pl.BlockSpec((1, H), lambda i, j: (0, 0)),
                 pl.BlockSpec((H, tn), lambda i, j: (0, j))]
    args += [nw, w]

    out, res = pl.pallas_call(
        kernel,
        grid=(M // tm, N // tn),
        in_specs=in_specs,
        out_specs=(pl.BlockSpec((tm, tn), lambda i, j: (i, j)),
                   pl.BlockSpec((tm, H), lambda i, j: (i, 0))),
        out_shape=(jax.ShapeDtypeStruct((M, N), x.dtype),
                   jax.ShapeDtypeStruct((M, H), x.dtype)),
        scratch_shapes=[pltpu.VMEM((tm, H), x.dtype)],
        compiler_params=_cparams("parallel", "arbitrary"),
    )(*args)
    return out, res


def fused_norm_swiglu(x, residual, norm_w, w_gate_up, eps,
                      tm_cap=256, tn_cap=512):
    """res = x (+ residual); normed = RMSNorm(res)*norm_w;
    out = silu(normed @ Wg) * (normed @ Wu)  ->  [M, I].

    w_gate_up: [H, 2I] with gate columns first (matches gate_up_proj layout).
    Returns (out [M, I], res [M, H]).
    """
    M, H = x.shape
    H2, two_i = w_gate_up.shape
    assert H == H2
    inter = two_i // 2
    tm = _pick_tile(M, tm_cap)
    tn = _pick_tile(inter, tn_cap)
    n_gate_blocks = inter // tn
    nw = norm_w.reshape(1, H).astype(jnp.float32)
    has_res = residual is not None

    def kernel(*refs):
        if has_res:
            x_ref, r_ref, nw_ref, wg_ref, wu_ref, out_ref, res_ref, normed_ref = refs
        else:
            x_ref, nw_ref, wg_ref, wu_ref, out_ref, res_ref, normed_ref = refs
            r_ref = None

        @pl.when(pl.program_id(1) == 0)
        def _():
            h = x_ref[...].astype(jnp.float32)
            if r_ref is not None:
                h = h + r_ref[...].astype(jnp.float32)
            res_ref[...] = h.astype(res_ref.dtype)
            var = jnp.mean(h * h, axis=-1, keepdims=True)
            normed_ref[...] = ((h * jax.lax.rsqrt(var + eps)) * nw_ref[...]
                               ).astype(normed_ref.dtype)

        g = jnp.dot(normed_ref[...], wg_ref[...],
                    preferred_element_type=jnp.float32)
        u = jnp.dot(normed_ref[...], wu_ref[...],
                    preferred_element_type=jnp.float32)
        out_ref[...] = (g * jax.nn.sigmoid(g) * u).astype(out_ref.dtype)

    in_specs = [pl.BlockSpec((tm, H), lambda i, j: (i, 0))]
    args = [x]
    if has_res:
        in_specs.append(pl.BlockSpec((tm, H), lambda i, j: (i, 0)))
        args.append(residual)
    in_specs += [
        pl.BlockSpec((1, H), lambda i, j: (0, 0)),
        pl.BlockSpec((H, tn), lambda i, j: (0, j)),                   # gate cols
        pl.BlockSpec((H, tn), lambda i, j: (0, n_gate_blocks + j)),   # up cols
    ]
    args += [nw, w_gate_up, w_gate_up]

    out, res = pl.pallas_call(
        kernel,
        grid=(M // tm, inter // tn),
        in_specs=in_specs,
        out_specs=(pl.BlockSpec((tm, tn), lambda i, j: (i, j)),
                   pl.BlockSpec((tm, H), lambda i, j: (i, 0))),
        out_shape=(jax.ShapeDtypeStruct((M, inter), x.dtype),
                   jax.ShapeDtypeStruct((M, H), x.dtype)),
        scratch_shapes=[pltpu.VMEM((tm, H), x.dtype)],
        compiler_params=_cparams("parallel", "arbitrary"),
    )(*args)
    return out, res


def matmul(x, w, out_dtype=None, tm_cap=256, tn_cap=512):
    """out = x @ w (w pre-transposed to [K, N]); f32 MXU accumulation.

    K stays resident per row tile (x is DMA'd once per row tile, not once per
    output column tile).  N is padded to a multiple of 128 if needed.
    """
    M, K = x.shape
    K2, N = w.shape
    assert K == K2
    if out_dtype is None:
        out_dtype = x.dtype
    N_pad = N
    if N % 128 != 0:  # real Phi-3 vocab (32064) safety; never hit at test sizes
        N_pad = N + (-N) % 128
        w = jnp.pad(w, ((0, 0), (0, N_pad - N)))
    tm = _pick_tile(M, tm_cap)
    tn = _pick_tile(N_pad, tn_cap)

    def kernel(x_ref, w_ref, o_ref):
        o_ref[...] = jnp.dot(x_ref[...], w_ref[...],
                             preferred_element_type=jnp.float32
                             ).astype(o_ref.dtype)

    out = pl.pallas_call(
        kernel,
        grid=(M // tm, N_pad // tn),
        in_specs=[pl.BlockSpec((tm, K), lambda i, j: (i, 0)),
                  pl.BlockSpec((K, tn), lambda i, j: (0, j))],
        out_specs=pl.BlockSpec((tm, tn), lambda i, j: (i, j)),
        out_shape=jax.ShapeDtypeStruct((M, N_pad), out_dtype),
        compiler_params=_cparams("parallel", "parallel"),
    )(x, w)
    return out[:, :N] if N_pad != N else out


def flash_attention(qkv, cos_full, sin_signed, num_heads, num_kv_heads,
                    head_dim, softmax_scale, t_cap=256):
    """Flash-style causal GQA attention with fused NeoX rotary.

    qkv: [T, (H + 2*KVH) * D]; q/k/v regions are selected directly via
    BlockSpec column offsets.  Grid = (kv_head, q_tile, kv_tile); online
    softmax state lives in VMEM scratch; fully-masked KV tiles are skipped.
    Returns attn [T, H*D].
    """
    T = qkv.shape[0]
    D = head_dim
    G = num_heads // num_kv_heads
    half = D // 2
    tt = _pick_tile(T, t_cap)   # q tile == kv tile keeps diagonal tiles square
    n_t = T // tt

    def kernel(q_ref, k_ref, v_ref, cosq_ref, sinq_ref, cosk_ref, sink_ref,
               o_ref, qrot_ref, m_ref, l_ref, acc_ref):
        qi = pl.program_id(1)
        ki = pl.program_id(2)

        @pl.when(ki == 0)
        def _():
            cos = cosq_ref[...]
            sin = sinq_ref[...]
            for i in range(G):
                qf = q_ref[:, i * D:(i + 1) * D].astype(jnp.float32)
                qr = (qf * cos + pltpu.roll(qf, shift=half, axis=1) * sin
                      ) * softmax_scale
                qrot_ref[:, i * D:(i + 1) * D] = qr.astype(qrot_ref.dtype)
            m_ref[...] = jnp.full_like(m_ref, -1e30)
            l_ref[...] = jnp.zeros_like(l_ref)
            acc_ref[...] = jnp.zeros_like(acc_ref)

        # Skip KV tiles entirely above the causal diagonal.
        @pl.when(ki * tt <= qi * tt + (tt - 1))
        def _():
            kf = k_ref[...].astype(jnp.float32)
            k_rot = (kf * cosk_ref[...] +
                     pltpu.roll(kf, shift=half, axis=1) * sink_ref[...]
                     ).astype(v_ref.dtype)
            v_t = v_ref[...]
            row = qi * tt + jax.lax.broadcasted_iota(jnp.int32, (tt, tt), 0)
            col = ki * tt + jax.lax.broadcasted_iota(jnp.int32, (tt, tt), 1)
            causal = col <= row
            for i in range(G):  # static unroll over the query heads of this group
                q_i = qrot_ref[:, i * D:(i + 1) * D]
                s = jax.lax.dot_general(q_i, k_rot, (((1,), (1,)), ((), ())),
                                        preferred_element_type=jnp.float32)
                s = jnp.where(causal, s, -1e30)
                m_prev = m_ref[:, i:i + 1]
                m_new = jnp.maximum(m_prev, jnp.max(s, axis=-1, keepdims=True))
                alpha = jnp.exp(m_prev - m_new)
                p = jnp.exp(s - m_new)
                l_ref[:, i:i + 1] = (alpha * l_ref[:, i:i + 1]
                                     + jnp.sum(p, axis=-1, keepdims=True))
                acc_ref[:, i * D:(i + 1) * D] = (
                    alpha * acc_ref[:, i * D:(i + 1) * D]
                    + jnp.dot(p.astype(v_t.dtype), v_t,
                              preferred_element_type=jnp.float32))
                m_ref[:, i:i + 1] = m_new

        @pl.when(ki == pl.num_programs(2) - 1)
        def _():
            for i in range(G):
                inv = pl.reciprocal(l_ref[:, i:i + 1], approx=True)
                o_ref[:, i * D:(i + 1) * D] = (
                    acc_ref[:, i * D:(i + 1) * D] * inv).astype(o_ref.dtype)

    kcol = num_heads                 # column block index (width D) of K head 0
    vcol = num_heads + num_kv_heads  # column block index (width D) of V head 0
    return pl.pallas_call(
        kernel,
        grid=(num_kv_heads, n_t, n_t),
        in_specs=[
            pl.BlockSpec((tt, G * D), lambda g, qi, ki: (qi, g)),        # Q group
            pl.BlockSpec((tt, D), lambda g, qi, ki: (ki, kcol + g)),     # K head
            pl.BlockSpec((tt, D), lambda g, qi, ki: (ki, vcol + g)),     # V head
            pl.BlockSpec((tt, D), lambda g, qi, ki: (qi, 0)),            # cos (q rows)
            pl.BlockSpec((tt, D), lambda g, qi, ki: (qi, 0)),            # sin (q rows)
            pl.BlockSpec((tt, D), lambda g, qi, ki: (ki, 0)),            # cos (k rows)
            pl.BlockSpec((tt, D), lambda g, qi, ki: (ki, 0)),            # sin (k rows)
        ],
        out_specs=pl.BlockSpec((tt, G * D), lambda g, qi, ki: (qi, g)),
        out_shape=jax.ShapeDtypeStruct((T, num_heads * D), qkv.dtype),
        scratch_shapes=[
            pltpu.VMEM((tt, G * D), qkv.dtype),    # rotated + pre-scaled Q
            pltpu.VMEM((tt, G), jnp.float32),       # running max per head
            pltpu.VMEM((tt, G), jnp.float32),       # running sum per head
            pltpu.VMEM((tt, G * D), jnp.float32),   # output accumulator
        ],
        compiler_params=_cparams("parallel", "parallel", "arbitrary"),
    )(qkv, qkv, qkv, cos_full, sin_signed, cos_full, sin_signed)


def rotary_cache_update(qkv, cos_full, sin_signed, slots, k_cache, v_cache,
                        num_heads, num_kv_heads, head_dim, ring=8):
    """reshape_and_cache equivalent, fused with the K rotary.

    K/V columns are read straight out of qkv via BlockSpec offsets; K is
    rotated in VMEM and the rows are scattered to the HBM caches at `slots`
    with a ring of DMA semaphores (up to `ring` copies in flight).  Caches are
    aliased input->output so only the T touched rows move.
    """
    T = qkv.shape[0]
    D = head_dim
    KVH = num_kv_heads
    kv_dim = KVH * D
    G = num_heads // num_kv_heads            # == q_dim // kv_dim
    half = D // 2

    def kernel(slots_ref, k_ref, v_ref, cos_ref, sin_ref, _kc_in, _vc_in,
               kc_ref, vc_ref, krot_buf, sems):
        cos = cos_ref[...]
        sin = sin_ref[...]
        for h in range(KVH):
            kf = k_ref[:, h * D:(h + 1) * D].astype(jnp.float32)
            kr = kf * cos + pltpu.roll(kf, shift=half, axis=1) * sin
            krot_buf[:, h * D:(h + 1) * D] = kr.astype(krot_buf.dtype)

        def make(j, slot):
            r = j % ring
            ck = pltpu.make_async_copy(
                krot_buf.at[pl.ds(j, 1)], kc_ref.at[pl.ds(slot, 1)], sems.at[0, r])
            cv = pltpu.make_async_copy(
                v_ref.at[pl.ds(j, 1)], vc_ref.at[pl.ds(slot, 1)], sems.at[1, r])
            return ck, cv

        def body(t, carry):
            @pl.when(t >= ring)
            def _():
                j = t - ring
                ckj, cvj = make(j, slots_ref[j])
                ckj.wait()
                cvj.wait()
            ck, cv = make(t, slots_ref[t])
            ck.start()
            cv.start()
            return carry

        jax.lax.fori_loop(0, T, body, 0)

        for j in range(max(0, T - ring), T):   # drain the in-flight ring
            ckj, cvj = make(j, slots_ref[j])
            ckj.wait()
            cvj.wait()

    return pl.pallas_call(
        kernel,
        grid=(1,),
        in_specs=[
            pl.BlockSpec(memory_space=pltpu.MemorySpace.SMEM),        # slots
            pl.BlockSpec((T, kv_dim), lambda i: (0, G)),              # K cols of qkv
            pl.BlockSpec((T, kv_dim), lambda i: (0, G + 1)),          # V cols of qkv
            pl.BlockSpec((T, D), lambda i: (0, 0)),                   # cos
            pl.BlockSpec((T, D), lambda i: (0, 0)),                   # sin
            pl.BlockSpec(memory_space=pl.ANY),                        # k_cache (aliased)
            pl.BlockSpec(memory_space=pl.ANY),                        # v_cache (aliased)
        ],
        out_specs=(pl.BlockSpec(memory_space=pl.ANY),
                   pl.BlockSpec(memory_space=pl.ANY)),
        out_shape=(jax.ShapeDtypeStruct(k_cache.shape, k_cache.dtype),
                   jax.ShapeDtypeStruct(v_cache.shape, v_cache.dtype)),
        scratch_shapes=[pltpu.VMEM((T, kv_dim), ACT_DTYPE),
                        pltpu.SemaphoreType.DMA((2, ring))],
        input_output_aliases={5: 0, 6: 1},
        compiler_params=_cparams("arbitrary"),
    )(slots, qkv, qkv, cos_full, sin_signed, k_cache, v_cache)


def rmsnorm(x, residual, norm_w, eps, tm_cap=256):
    """Final Phi3RMSNorm: out = norm_w * RMSNorm(x + residual)."""
    M, H = x.shape
    tm = _pick_tile(M, tm_cap)
    nw = norm_w.reshape(1, H).astype(jnp.float32)
    has_res = residual is not None

    def kernel(*refs):
        if has_res:
            x_ref, r_ref, nw_ref, o_ref = refs
        else:
            x_ref, nw_ref, o_ref = refs
            r_ref = None
        h = x_ref[...].astype(jnp.float32)
        if r_ref is not None:
            h = h + r_ref[...].astype(jnp.float32)
        var = jnp.mean(h * h, axis=-1, keepdims=True)
        o_ref[...] = ((h * jax.lax.rsqrt(var + eps)) * nw_ref[...]
                      ).astype(o_ref.dtype)

    in_specs = [pl.BlockSpec((tm, H), lambda i: (i, 0))]
    args = [x]
    if has_res:
        in_specs.append(pl.BlockSpec((tm, H), lambda i: (i, 0)))
        args.append(residual)
    in_specs.append(pl.BlockSpec((1, H), lambda i: (0, 0)))
    args.append(nw)

    return pl.pallas_call(
        kernel,
        grid=(M // tm,),
        in_specs=in_specs,
        out_specs=pl.BlockSpec((tm, H), lambda i: (i, 0)),
        out_shape=jax.ShapeDtypeStruct((M, H), x.dtype),
        compiler_params=_cparams("parallel"),
    )(*args)


# ----------------------------------------------------------------------------
# Model glue (parameter init, rotary tables, layer / model composition)
# ----------------------------------------------------------------------------
def init_params(key, cfg: Phi3Config):
    keys = jax.random.split(key, 2 + cfg.num_hidden_layers)
    std = 0.02
    H = cfg.hidden_size
    D = H // cfg.num_attention_heads
    q_dim = cfg.num_attention_heads * D
    kv_dim = cfg.num_key_value_heads * D

    def w(k, shape):  # bf16 weights, pre-transposed [in, out]
        return (jax.random.normal(k, shape, jnp.float32) * std).astype(ACT_DTYPE)

    params = {
        "embed_tokens": w(keys[0], (cfg.vocab_size, H)),
        "lm_head": w(keys[1], (H, cfg.vocab_size)),
        "final_norm": jnp.ones((H,), jnp.float32),
        "layers": [],
    }
    for i in range(cfg.num_hidden_layers):
        lk = jax.random.split(keys[2 + i], 4)
        params["layers"].append({
            "input_layernorm": jnp.ones((H,), jnp.float32),
            "post_attention_layernorm": jnp.ones((H,), jnp.float32),
            "qkv_proj": w(lk[0], (H, q_dim + 2 * kv_dim)),
            "o_proj": w(lk[1], (q_dim, H)),
            # gate columns first, then up columns (matches gate_up_proj layout)
            "gate_up_proj": w(lk[2], (H, 2 * cfg.intermediate_size)),
            "down_proj": w(lk[3], (cfg.intermediate_size, H)),
        })
    return params


def get_cos_sin(position_ids, dim, base):
    inv_freq = 1.0 / (base ** (jnp.arange(0, dim, 2, dtype=jnp.float32) / dim))
    freqs = position_ids.astype(jnp.float32)[:, None] * inv_freq[None, :]
    return jnp.cos(freqs), jnp.sin(freqs)


def phi3_forward(params, cfg, input_ids, position_ids, cu_seqlen_prefill,
                 kv_cache, block_tables, slots, input_lengths, max_s,
                 lm_head_indices=None):
    # TODO(synk): only the prefill (cu_seqlen_prefill is not None) path is
    # implemented; the paged-attention decode path is not translated here.
    H = cfg.num_attention_heads
    KVH = cfg.num_key_value_heads
    D = cfg.hidden_size // H
    scale = D ** -0.5

    hidden = params["embed_tokens"][input_ids]            # [T, hidden] bf16 gather

    cos, sin = get_cos_sin(position_ids, D, cfg.rope_theta)
    cos_full = jnp.concatenate([cos, cos], axis=-1)        # [T, D] f32
    sin_signed = jnp.concatenate([-sin, sin], axis=-1)     # [T, D] f32

    residual = None                                        # layer 0: no residual add
    new_kv_cache = []
    for i, lp in enumerate(params["layers"]):
        # input_layernorm fused into the qkv projection
        qkv, res = fused_norm_matmul(hidden, residual, lp["input_layernorm"],
                                     lp["qkv_proj"], cfg.rms_norm_eps)
        # rotary-K + KV-cache scatter (pipelined DMA ring, caches aliased)
        k_cache, v_cache = rotary_cache_update(
            qkv, cos_full, sin_signed, slots,
            kv_cache[i][0], kv_cache[i][1], H, KVH, D)
        new_kv_cache.append((k_cache, v_cache))
        # flash-style causal GQA attention, rotary fused, q/k/v via BlockSpec
        attn = flash_attention(qkv, cos_full, sin_signed, H, KVH, D, scale)
        attn_out = matmul(attn, lp["o_proj"])
        # post_attention_layernorm + gate_up + SwiGLU fused; emits [T, I]
        gate_act, attn_res = fused_norm_swiglu(attn_out, res,
                                               lp["post_attention_layernorm"],
                                               lp["gate_up_proj"],
                                               cfg.rms_norm_eps)
        mlp_out = matmul(gate_act, lp["down_proj"])
        hidden, residual = mlp_out, attn_res

    hidden = rmsnorm(hidden, residual, params["final_norm"], cfg.rms_norm_eps)

    if lm_head_indices is not None:
        hidden = hidden[lm_head_indices]
    logits = matmul(hidden, params["lm_head"], out_dtype=jnp.float32)
    speculative_logits = None
    return logits, speculative_logits, new_kv_cache


# ----------------------------------------------------------------------------
# Main
# ----------------------------------------------------------------------------
if __name__ == "__main__":
    cfg = Phi3Config()
    key = jax.random.PRNGKey(0)
    pkey, ikey = jax.random.split(key)
    params = init_params(pkey, cfg)

    T = 128                    # total tokens (single prefill sequence)
    D = cfg.hidden_size // cfg.num_attention_heads
    kv_dim = cfg.num_key_value_heads * D
    num_slots = 256

    input_ids = jax.random.randint(ikey, (T,), 0, cfg.vocab_size, dtype=jnp.int32)
    position_ids = jnp.arange(T, dtype=jnp.int32)
    cu_seqlen_prefill = jnp.array([0, T], dtype=jnp.int32)
    slots = jnp.arange(T, dtype=jnp.int32)
    block_tables = jnp.zeros((1, 1), dtype=jnp.int32)
    input_lengths = jnp.array([T], dtype=jnp.int32)
    max_s = T
    kv_cache = [
        (jnp.zeros((num_slots, kv_dim), ACT_DTYPE),
         jnp.zeros((num_slots, kv_dim), ACT_DTYPE))
        for _ in range(cfg.num_hidden_layers)
    ]
    lm_head_indices = jnp.array([T - 1], dtype=jnp.int32)

    logits, spec_logits, new_cache = phi3_forward(
        params, cfg, input_ids, position_ids, cu_seqlen_prefill, kv_cache,
        block_tables, slots, input_lengths, max_s, lm_head_indices)

    logits = jax.block_until_ready(logits)
    jax.block_until_ready(new_cache)
    assert logits.shape == (1, cfg.vocab_size)
    assert bool(jnp.all(jnp.isfinite(logits)))
    print("KERNEL_OK")
</pallas_src>

<mosaic_0001>
module attributes {stable_mosaic.version = 11 : i64} {
  func.func @kernel(%arg0: i32, %arg1: i32, %arg2: memref<128x512xbf16, #tpu.memory_space<vmem>>, %arg3: memref<1x512xf32, #tpu.memory_space<vmem>>, %arg4: memref<512x512xbf16, #tpu.memory_space<vmem>>, %arg5: memref<128x512xbf16, #tpu.memory_space<vmem>>, %arg6: memref<128x512xbf16, #tpu.memory_space<vmem>>, %arg7: memref<128x512xbf16, #tpu.memory_space<vmem>>) attributes {dimension_semantics = [#tpu.dimension_semantics<parallel>, #tpu.dimension_semantics<arbitrary>], iteration_bounds = array<i64: 1, 2>, scalar_prefetch = 0 : i64, scratch_operands = 1 : i64, tpu.core_type = #tpu.core_type<tc>, window_params = [{transform_indices = @transform_0, window_bounds = array<i64: 128, 512>}, {pipeline_mode = #tpu.pipeline_mode<synchronous>, transform_indices = @transform_1, window_bounds = array<i64: 1, 512>}, {transform_indices = @transform_2, window_bounds = array<i64: 512, 512>}, {transform_indices = @transform_3, window_bounds = array<i64: 128, 512>}, {transform_indices = @transform_4, window_bounds = array<i64: 128, 512>}]} {
    %c0_i32 = arith.constant 0 : i32
    %0 = arith.cmpi eq, %arg1, %c0_i32 : i32
    %1 = arith.extui %0 : i1 to i32
    %c0_i32_0 = arith.constant 0 : i32
    %2 = arith.cmpi ne, %1, %c0_i32_0 : i32
    scf.if %2 {
      %c0_6 = arith.constant 0 : index
      %c0_7 = arith.constant 0 : index
      %8 = vector.load %arg2[%c0_6, %c0_7] : memref<128x512xbf16, #tpu.memory_space<vmem>>, vector<128x512xbf16>
      %9 = arith.extf %8 : vector<128x512xbf16> to vector<128x512xf32>
      %10 = arith.truncf %9 : vector<128x512xf32> to vector<128x512xbf16>
      %c0_8 = arith.constant 0 : index
      %c0_9 = arith.constant 0 : index
      %11 = vector.load %arg6[%c0_8, %c0_9] : memref<128x512xbf16, #tpu.memory_space<vmem>>, vector<128x512xbf16>
      tpu.vector_store %arg6[%c0_8, %c0_9], %10 {strides = array<i32>} : memref<128x512xbf16, #tpu.memory_space<vmem>>, vector<128x512xbf16>,
      %12 = arith.mulf %9, %9 : vector<128x512xf32>
      %cst_10 = arith.constant dense<0.000000e+00> : vector<128xf32>
      %13 = vector.multi_reduction <add>, %12, %cst_10 [1] : vector<128x512xf32> to vector<128xf32>
      %14 = vector.shape_cast %13 : vector<128xf32> to vector<128x1xf32>
      %cst_11 = arith.constant 5.120000e+02 : f32
      %15 = vector.broadcast %cst_11 : f32 to vector<128x1xf32>
      %16 = arith.divf %14, %15 : vector<128x1xf32>
      %cst_12 = arith.constant 9.99999974E-6 : f32
      %17 = vector.broadcast %cst_12 : f32 to vector<128x1xf32>
      %18 = arith.addf %16, %17 : vector<128x1xf32>
      %19 = math.rsqrt %18 : vector<128x1xf32>
      %20 = vector.broadcast %19 : vector<128x1xf32> to vector<128x512xf32>
      %21 = arith.mulf %9, %20 : vector<128x512xf32>
      %c0_13 = arith.constant 0 : index
      %c0_14 = arith.constant 0 : index
      %22 = vector.load %arg3[%c0_13, %c0_14] : memref<1x512xf32, #tpu.memory_space<vmem>>, vector<1x512xf32>
      %23 = vector.broadcast %22 : vector<1x512xf32> to vector<128x512xf32>
      %24 = arith.mulf %21, %23 : vector<128x512xf32>
      %25 = arith.truncf %24 : vector<128x512xf32> to vector<128x512xbf16>
      %c0_15 = arith.constant 0 : index
      %c0_16 = arith.constant 0 : index
      %26 = vector.load %arg7[%c0_15, %c0_16] : memref<128x512xbf16, #tpu.memory_space<vmem>>, vector<128x512xbf16>
      tpu.vector_store %arg7[%c0_15, %c0_16], %25 {strides = array<i32>} : memref<128x512xbf16, #tpu.memory_space<vmem>>, vector<128x512xbf16>,
    } else {
    }
    %c0 = arith.constant 0 : index
    %c0_1 = arith.constant 0 : index
    %3 = vector.load %arg7[%c0, %c0_1] : memref<128x512xbf16, #tpu.memory_space<vmem>>, vector<128x512xbf16>
    %c0_2 = arith.constant 0 : index
    %c0_3 = arith.constant 0 : index
    %4 = vector.load %arg4[%c0_2, %c0_3] : memref<512x512xbf16, #tpu.memory_space<vmem>>, vector<512x512xbf16>
    %cst = arith.constant dense<0.000000e+00> : vector<128x512xf32>
    %5 = tpu.matmul %3, %4, %cst {dimension_numbers = #tpu.dot_dimension_numbers<[1], [0], [0], [1], [0, 0, 1, 1], [], []>} : vector<128x512xbf16>, vector<512x512xbf16>, vector<128x512xf32> -> vector<128x512xf32>
    %6 = arith.truncf %5 : vector<128x512xf32> to vector<128x512xbf16>
    %c0_4 = arith.constant 0 : index
    %c0_5 = arith.constant 0 : index
    %7 = vector.load %arg5[%c0_4, %c0_5] : memref<128x512xbf16, #tpu.memory_space<vmem>>, vector<128x512xbf16>
    tpu.vector_store %arg5[%c0_4, %c0_5], %6 {strides = array<i32>} : memref<128x512xbf16, #tpu.memory_space<vmem>>, vector<128x512xbf16>,
    return
  }
  func.func @transform_0(%arg0: i32, %arg1: i32) -> (i32, i32) {
    %c0_i32 = arith.constant 0 : i32
    %c0_i32_0 = arith.constant 0 : i32
    return %arg0, %c0_i32 : i32, i32
  }
  func.func @transform_1(%arg0: i32, %arg1: i32) -> (i32, i32) {
    %c0_i32 = arith.constant 0 : i32
    %c0_i32_0 = arith.constant 0 : i32
    %c0_i32_1 = arith.constant 0 : i32
    return %c0_i32, %c0_i32_0 : i32, i32
  }
  func.func @transform_2(%arg0: i32, %arg1: i32) -> (i32, i32) {
    %c0_i32 = arith.constant 0 : i32
    %c0_i32_0 = arith.constant 0 : i32
    return %c0_i32, %arg1 : i32, i32
  }
  func.func @transform_3(%arg0: i32, %arg1: i32) -> (i32, i32) {
    %c0_i32 = arith.constant 0 : i32
    return %arg0, %arg1 : i32, i32
  }
  func.func @transform_4(%arg0: i32, %arg1: i32) -> (i32, i32) {
    %c0_i32 = arith.constant 0 : i32
    %c0_i32_0 = arith.constant 0 : i32
    return %arg0, %c0_i32 : i32, i32
  }
}

</mosaic_0001>

<bundles_post_ra>
// kernel: tpu_custom_call.1
= control target key start
LH: loop header
LB: loop body
LE: loop exit
PB: predicated region body
PF: predicated region fallthrough
CT: control target
= control target key end

     0   :  { %s5502_s0 = inlined_call_operand.hbm [shape: bf16[128,512], index: 0, kind: input, shape index: {}]   ;;  %s5503_s1 = inlined_call_operand.hbm [shape: f32[1,512], index: 1, kind: input, shape index: {}]   ;;  %s5504_s2 = inlined_call_operand.hbm [shape: bf16[512,1024], index: 2, kind: input, shape index: {}]   ;;  %s5505_s3 = inlined_call_operand.hbm [shape: bf16[128,1024], index: 3, kind: output, shape index: {0}]   ;;  %s5506_s4 = inlined_call_operand.hbm [shape: bf16[128,512], index: 4, kind: output, shape index: {1}]  }
   0x1   :  { %5548 = sst [smem:[#allocation54_spill]] %s5502_s0 }
   0x2   :  { %5549 = sst [smem:[#allocation55_spill]] %s5503_s1 }
   0x3   :  { %10 = vsyncpa [#allocation4], 0 }
   0x4   :  { %11 = vsyncpa [#allocation7], 0 }
   0x5   :  { %12 = vsyncpa [#allocation5], 0 }
   0x6   :  { %14 = vsyncpa [#allocation5 + $0x1], 0 }
   0x7   :  { %15 = vsyncpa [#allocation11], 0  ;;  %s4124_s15 = smov 0   ;;  %s4126_s16 = smov 0  }
   0x8   :  { %s4128_s17 = smov 0   ;;  %s4130_s18 = smov 0  }
   0x9   :  { %s4132_s19 = smov 0   ;;  %s4134_s20 = smov 0  }
   0xa LB: > { %5550 = sst [smem:[#allocation17_spill]] %s4087_s20  ;;  %s4155_s21 = sadd.s32 4294967295, %s4087_s20   ;;  %s4087_s20 = sphi %s4134_s20, %s21_s20   ;;  %s4083_s19 = sphi %s4132_s19, %s5638_s19   ;;  %s4079_s18 = sphi %s4130_s18, %s5637_s18   ;;  %s4075_s17 = sphi %s4128_s17, %s5636_s17   ;;  %s4071_s16 = sphi %s4126_s16, %s5635_s16   ;;  %s4067_s15 = sphi %s4124_s15, %s5634_s15  }
   0xb   : > { %s2921_s22 = sadd.s32 4294967294, %s4087_s20   ;;  %p94_p0 = scmp.ne.s32.totalorder %s4075_s17, %s4071_s16 }
   0xc   : > { %p95_p1 = scmp.eq.s32.totalorder %s4087_s20, 0  ;;  %p100_p2 = scmp.ne.s32.totalorder %s4071_s16, %s4067_s15 }
   0xd   : > { %p101_p3 = scmp.eq.s32.totalorder %s4155_s21, 0  ;;  %p126_p5 = scmp.eq.s32.totalorder %s4155_s21, 1 }
   0xe   : > { %p4164_p4 = por %p95_p1, %p94_p0  ;;  %p132_p7 = scmp.eq.s32.totalorder %s2921_s22, 1 }
   0xf   : > { %p4171_p6 = por %p101_p3, %p100_p2  ;;  %p4177_p8 = por %p126_p5, %p94_p0 }
  0x10   : > { %p2922_p9 = scmp.ge.s32.totalorder %s4087_s20, 1  ;;  %p4182_p10 = por %p132_p7, %p100_p2 }
  0x11   : > { %p165_p11 = scmp.lt.s32.totalorder %s4087_s20, 3  ;;  %s5556_s0 = sld [smem:[#allocation54_spill]] }
  0x12   : > { %s5554_s26 = scalar_select %p4182_p10, 1, 0 }
  0x13   : > { %p4190_p12 = pnand %p2922_p9, %p165_p11  ;;  %s4089_s5 = smov [#allocation3]  }
  0x14   : > { %5555 = sst [smem:[#allocation18_spill]] %s5554_s26  ;;  %s182_s6 = sshll.u32 %s4089_s5, 4  ;;  %s183_s6 = int_to_ptr.vmem [resolvable:$true] %s182_s6 }
  0x15   : > { %p3760_p13 = pneg %p4190_p12  ;;  %p2925_p1 = scmp.ge.s32.totalorder %s4087_s20, 2 }
  0x16   : > { %p3777_p2 = scmp.lt.s32.totalorder %s4087_s20, 2  ;;  %s5558_s1 = sld [smem:[#allocation55_spill]] }
  0x17   : > { %s180_s29 = sshll.u32 %s5556_s0, 4  ;;  %p3761_p0 = pnand %p3760_p13, %p101_p3  ;;  %s181_s29 = int_to_ptr.hbm [resolvable:$true] %s180_s29 }
  0x18   : > { %s5507_s10 = smov 256   ;;  %s5508_s11 = smov 16  }
  0x19   : > { %3763 = dma.hbm_to_vmem [thread:$0]  (!%p3761_p0), %s181_s29, 4096, %s183_s6, [#allocation4], %s5507_s10, %s5507_s10, %s5508_s11  }
  0x1a   : > { %p4208_p7 = pnand %p3777_p2, %p4164_p4  ;;  %s4092_s13 = smov [#allocation6]  }
  0x1b   : > { %s197_s14 = sshll.u32 %s4092_s13, 4  ;;  %s87_s22 = sadd.s32 1, %s4075_s17  ;;  %s198_s14 = int_to_ptr.vmem [resolvable:$true] %s197_s14 }
  0x1c   : > { %s195_s9 = sshll.u32 %s5558_s1, 4  ;;  %s30_s27 = sadd.s32 1, %s4083_s19  ;;  %s196_s9 = int_to_ptr.hbm [resolvable:$true] %s195_s9 }
  0x1d   : > { %3766 = dma.hbm_to_vmem [thread:$0]  (!%p3761_p0), %s196_s9, 64, %s198_s14, [#allocation7]  }
  0x1e   : > { %s208_s28 = sand.u32 1, %s4087_s20   ;;  %p31_p9 = scmp.ge.s32.totalorder %s30_s27, 2 }
  0x1f   : > { %s210_s5 = sand.u32 1, %s4075_s17   ;;  %s3582_s7 = sshll.u32 %s4083_s19, 4 }
  0x20   : > { %s5640_s27 = smov (%p31_p9, %s30_s27), 0  ;;  %s2926_s23 = sshll.u32 %s210_s5, 10 }
  0x21   : > { %s217_s8 = scalar_lea.hbm %s5504_s2, %s3582_s7  ;;  %s84_s10 = ssub.s32 %s4083_s19, %s5640_s27 }
  0x22   : > { %p85_p4 = scmp.eq.s32.totalorder %s84_s10, 0  ;;  %s218_s13 = sshll.u32 %s217_s8, 4  ;;  %s219_s13 = int_to_ptr.hbm [resolvable:$true] %s218_s13 }
  0x23   : > { %s212_s9 = scalar_lea.vmem [#allocation8], %s2926_s23  ;;  %s209_s0 = scalar_lea.sflag [#allocation4], %s208_s28 }
  0x24   : > { %s220_s14 = sshll.u32 %s212_s9, 4  ;;  %s4093_s1 = smov 512   ;;  %s221_s14 = int_to_ptr.vmem [resolvable:$true] %s220_s14 }
  0x25   : > { %s4225_s11 = scalar_select %p85_p4, %s4075_s17, %s87_s22  }
  0x26   : > { %s5560_s20 = smov 16   ;;  %s5561_s26 = smov 256  }
  0x27   : > { %3770 = dma.hbm_to_vmem [thread:$0]  (!%p4208_p7), %s219_s13, 16384, %s221_s14, %s209_s0, %s4093_s1, %s5561_s26, %s5560_s20  }
  0x28   : > { %232 = sbr.rel (%p4190_p12) target bundleno = 979 (0x3d3), region = 32 }
  0x2d   : > { %4046 = dma.done.wait (%p101_p3), [#allocation4], 4096  }
  0x2e   : > { %4048 = vsyncadd (%p101_p3), [#allocation4], 4294963200 }
  0x2f   : > { %4050 = dma.done.wait (%p101_p3), [#allocation7], 64  }
  0x30   : > { %4052 = vsyncadd (%p101_p3), [#allocation7], 4294967232  ;;  %s244_s10 = sand.u32 1, %s4155_s21   ;;  %s4243_s0 = sand.u32 1, %s4071_s16  }
  0x31   : > { %s2932_s1 = sshll.u32 %s4243_s0, 10  ;;  %s245_s20 = scalar_lea.sflag [#allocation4], %s244_s10 }
  0x32   : > { %s4246_s26 = scalar_lea.vmem [#allocation8], %s2932_s1 }
  0x33   : > { %4054 = dma.done.wait (%p4171_p6), %s245_s20, 16384  }
  0x34   : > { %4056 = vsyncadd (%p4171_p6), %s245_s20, 4294950912  ;;  %s2933_s30 = sshll.u32 %s4243_s0, 8  ;;  %p2934_p3 = scmp.ne.s32.totalorder %s4079_s18, 0 }
  0x35   : > { %s4253_s12 = scalar_lea.vmem [#allocation9], %s2933_s30 }
  0x36   : > { %282 = sbr.rel (%p2934_p3) target bundleno = 295 (0x127), region = 48 }
  0x3b   : > { %v291_v0 = vld [vmem:[#allocation3 + $0x40] sm:$0xff]  ;;  %v292_v1 = vld [vmem:[#allocation3 + $0x48] sm:$0xff]  ;;  %v293_v18 = vld [vmem:[#allocation3 + $0x50] sm:$0xff] }
  0x3c   : > { %v287_v2 = vld [vmem:[#allocation3 + $0x20] sm:$0xff]  ;;  %v4256_v3 = vunpack.c.l.bf16 %v291_v0  ;;  %v4258_v4 = vunpack.c.h.bf16 %v291_v0  ;;  %v4260_v5 = vunpack.c.l.bf16 %v292_v1  ;;  %v4262_v6 = vunpack.c.h.bf16 %v292_v1  ;;  %387 = vst [vmem:[#allocation10 + $0x40] sm:$0xff] %v291_v0  ;;  %v288_v7 = vld [vmem:[#allocation3 + $0x28] sm:$0xff]  ;;  %v294_v27 = vld [vmem:[#allocation3 + $0x58] sm:$0xff] }
  0x3d   : > { %388 = vst [vmem:[#allocation10 + $0x48] sm:$0xff] %v292_v1  ;;  %v4264_v8 = vunpack.c.l.bf16 %v287_v2  ;;  %v4266_v9 = vunpack.c.h.bf16 %v287_v2  ;;  %v4268_v10 = vunpack.c.l.bf16 %v288_v7  ;;  %v4270_v11 = vunpack.c.h.bf16 %v288_v7  ;;  %v283_v12 = vld [vmem:[#allocation3] sm:$0xff]  ;;  %v284_v13 = vld [vmem:[#allocation3 + $0x8] sm:$0xff]  ;;  %v289_v36 = vld [vmem:[#allocation3 + $0x30] sm:$0xff] }
  0x3e   : > { %v427_v14 = vmul.f32 %v4256_v3, %v4256_v3  ;;  %v428_v15 = vmul.f32 %v4258_v4, %v4258_v4  ;;  %v429_v16 = vmul.f32 %v4260_v5, %v4260_v5  ;;  %v430_v17 = vmul.f32 %v4262_v6, %v4262_v6  ;;  %383 = vst [vmem:[#allocation10 + $0x20] sm:$0xff] %v287_v2  ;;  %v290_v41 = vld [vmem:[#allocation3 + $0x38] sm:$0xff]  ;;  %v285_v46 = vld [vmem:[#allocation3 + $0x10] sm:$0xff]  ;;  %v299_v60 = vld [vmem:[#allocation3 + $0x80] sm:$0xff] }
  0x3f   : > { %384 = vst [vmem:[#allocation10 + $0x28] sm:$0xff] %v288_v7  ;;  %v419_v19 = vmul.f32 %v4264_v8, %v4264_v8  ;;  %v420_v20 = vmul.f32 %v4266_v9, %v4266_v9  ;;  %v421_v21 = vmul.f32 %v4268_v10, %v4268_v10  ;;  %v422_v22 = vmul.f32 %v4270_v11, %v4270_v11  ;;  %v286_v55 = vld [vmem:[#allocation3 + $0x18] sm:$0xff]  ;;  %v300_v1 = vld [vmem:[#allocation3 + $0x88] sm:$0xff] }
  0x40   : > { %v495_v23 = vadd.f32 %v428_v15, %v427_v14  ;;  %v4288_v24 = vunpack.c.l.bf16 %v283_v12  ;;  %v4290_v25 = vunpack.c.h.bf16 %v283_v12  ;;  %v4292_v26 = vunpack.c.l.bf16 %v284_v13  ;;  %379 = vst [vmem:[#allocation10] sm:$0xff] %v283_v12  ;;  %v297_v14 = vld [vmem:[#allocation3 + $0x70] sm:$0xff] }
  0x41   : > { %v485_v28 = vadd.f32 %v420_v20, %v419_v19  ;;  %v4294_v29 = vunpack.c.h.bf16 %v284_v13  ;;  %380 = vst [vmem:[#allocation10 + $0x8] sm:$0xff] %v284_v13  ;;  %v4296_v30 = vunpack.c.l.bf16 %v293_v18  ;;  %v4298_v31 = vunpack.c.h.bf16 %v293_v18  ;;  %v298_v19 = vld [vmem:[#allocation3 + $0x78] sm:$0xff] }
  0x42   : > { %v496_v32 = vadd.f32 %v495_v23, %v429_v16  ;;  %v411_v33 = vmul.f32 %v4288_v24, %v4288_v24  ;;  %v412_v34 = vmul.f32 %v4290_v25, %v4290_v25  ;;  %v413_v35 = vmul.f32 %v4292_v26, %v4292_v26  ;;  %389 = vst [vmem:[#allocation10 + $0x50] sm:$0xff] %v293_v18 }
  0x43   : > { %v486_v37 = vadd.f32 %v485_v28, %v421_v21  ;;  %v414_v38 = vmul.f32 %v4294_v29, %v4294_v29  ;;  %v4308_v39 = vunpack.c.l.bf16 %v294_v27  ;;  %v4310_v40 = vunpack.c.h.bf16 %v294_v27  ;;  %390 = vst [vmem:[#allocation10 + $0x58] sm:$0xff] %v294_v27  ;;  %v295_v27 = vld [vmem:[#allocation3 + $0x60] sm:$0xff] }
  0x44   : > { %v497_v42 = vadd.f32 %v496_v32, %v430_v17  ;;  %v475_v43 = vadd.f32 %v412_v34, %v411_v33  ;;  %v431_v44 = vmul.f32 %v4296_v30, %v4296_v30  ;;  %v432_v45 = vmul.f32 %v4298_v31, %v4298_v31  ;;  %385 = vst [vmem:[#allocation10 + $0x30] sm:$0xff] %v289_v36 }
  0x45   : > { %v487_v47 = vadd.f32 %v486_v37, %v422_v22  ;;  %v433_v48 = vmul.f32 %v4308_v39, %v4308_v39  ;;  %v434_v49 = vmul.f32 %v4310_v40, %v4310_v40  ;;  %v4320_v50 = vunpack.c.l.bf16 %v289_v36  ;;  %386 = vst [vmem:[#allocation10 + $0x38] sm:$0xff] %v290_v41 }
  0x46   : > { %498 = vadd.xlane.f32.xlu2 %v497_v42  ;;  %v476_v51 = vadd.f32 %v475_v43, %v413_v35  ;;  %v500_v52 = vadd.f32 %v432_v45, %v431_v44  ;;  %v4322_v53 = vunpack.c.h.bf16 %v289_v36  ;;  %v4324_v54 = vunpack.c.l.bf16 %v290_v41  ;;  %381 = vst [vmem:[#allocation10 + $0x10] sm:$0xff] %v285_v46  ;;  %v296_v35 = vld [vmem:[#allocation3 + $0x68] sm:$0xff]  ;;  %v305_v42 = vld [vmem:[#allocation3 + $0xb0] sm:$0xff] }
  0x47   : > { %488 = vadd.xlane.f32.xlu1 %v487_v47  ;;  %v4326_v56 = vunpack.c.h.bf16 %v290_v41  ;;  %v423_v57 = vmul.f32 %v4320_v50, %v4320_v50  ;;  %v4330_v58 = vunpack.c.l.bf16 %v285_v46  ;;  %v4332_v59 = vunpack.c.h.bf16 %v285_v46  ;;  %382 = vst [vmem:[#allocation10 + $0x18] sm:$0xff] %v286_v55  ;;  %v306_v47 = vld [vmem:[#allocation3 + $0xb8] sm:$0xff] }
  0x48   : > { %v477_v61 = vadd.f32 %v476_v51, %v414_v38  ;;  %v501_v62 = vadd.f32 %v500_v52, %v433_v48  ;;  %v424_v63 = vmul.f32 %v4322_v53, %v4322_v53  ;;  %v425_v0 = vmul.f32 %v4324_v54, %v4324_v54  ;;  %395 = vst [vmem:[#allocation10 + $0x80] sm:$0xff] %v299_v60 }
  0x49   : > { %v426_v2 = vmul.f32 %v4326_v56, %v4326_v56  ;;  %v4340_v7 = vunpack.c.l.bf16 %v286_v55  ;;  %v4342_v12 = vunpack.c.h.bf16 %v286_v55  ;;  %v415_v13 = vmul.f32 %v4330_v58, %v4330_v58  ;;  %396 = vst [vmem:[#allocation10 + $0x88] sm:$0xff] %v300_v1  ;;  %v303_v55 = vld [vmem:[#allocation3 + $0xa0] sm:$0xff] }
  0x4a   : > { %478 = vadd.xlane.f32.xlu0 %v477_v61  ;;  %v502_v15 = vadd.f32 %v501_v62, %v434_v49  ;;  %v490_v16 = vadd.f32 %v424_v63, %v423_v57  ;;  %v416_v17 = vmul.f32 %v4332_v59, %v4332_v59  ;;  %v4348_v18 = vunpack.c.l.bf16 %v299_v60  ;;  %393 = vst [vmem:[#allocation10 + $0x70] sm:$0xff] %v297_v14  ;;  %v304_v63 = vld [vmem:[#allocation3 + $0xa8] sm:$0xff] }
  0x4b   : > { %v417_v20 = vmul.f32 %v4340_v7, %v4340_v7  ;;  %v418_v21 = vmul.f32 %v4342_v12, %v4342_v12  ;;  %v4354_v22 = vunpack.c.h.bf16 %v299_v60  ;;  %v4356_v23 = vunpack.c.l.bf16 %v300_v1  ;;  %394 = vst [vmem:[#allocation10 + $0x78] sm:$0xff] %v298_v19 }
  0x4c   : > { %v491_v28 = vadd.f32 %v490_v16, %v425_v0  ;;  %v480_v32 = vadd.f32 %v416_v17, %v415_v13  ;;  %v4358_v33 = vunpack.c.h.bf16 %v300_v1  ;;  %v443_v34 = vmul.f32 %v4348_v18, %v4348_v18  ;;  %391 = vst [vmem:[#allocation10 + $0x60] sm:$0xff] %v295_v27 }
  0x4d   : > { %v444_v36 = vmul.f32 %v4354_v22, %v4354_v22  ;;  %v445_v37 = vmul.f32 %v4356_v23, %v4356_v23  ;;  %v4366_v38 = vunpack.c.l.bf16 %v297_v14  ;;  %v4368_v41 = vunpack.c.h.bf16 %v297_v14  ;;  %392 = vst [vmem:[#allocation10 + $0x68] sm:$0xff] %v296_v35  ;;  %v301_v14 = vld [vmem:[#allocation3 + $0x90] sm:$0xff] }
  0x4e   : > { %503 = vadd.xlane.f32.xlu2 %v502_v15  ;;  %v492_v43 = vadd.f32 %v491_v28, %v426_v2  ;;  %v481_v44 = vadd.f32 %v480_v32, %v417_v20  ;;  %v446_v45 = vmul.f32 %v4358_v33, %v4358_v33  ;;  %v4372_v46 = vunpack.c.l.bf16 %v298_v19  ;;  %401 = vst [vmem:[#allocation10 + $0xb0] sm:$0xff] %v305_v42  ;;  %v302_v20 = vld [vmem:[#allocation3 + $0x98] sm:$0xff] }
  0x4f   : > { %v515_v48 = vadd.f32 %v444_v36, %v443_v34  ;;  %v4374_v49 = vunpack.c.h.bf16 %v298_v19  ;;  %v439_v51 = vmul.f32 %v4366_v38, %v4366_v38  ;;  %v440_v52 = vmul.f32 %v4368_v41, %v4368_v41  ;;  %402 = vst [vmem:[#allocation10 + $0xb8] sm:$0xff] %v306_v47  ;;  %v311_v34 = vld [vmem:[#allocation3 + $0xe0] sm:$0xff] }
  0x50   : > { %493 = vadd.xlane.f32.xlu1 %v492_v43  ;;  %v482_v57 = vadd.f32 %v481_v44, %v418_v21  ;;  %v441_v60 = vmul.f32 %v4372_v46, %v4372_v46  ;;  %v4382_v61 = vunpack.c.l.bf16 %v295_v27  ;;  %v4384_v62 = vunpack.c.h.bf16 %v295_v27  ;;  %399 = vst [vmem:[#allocation10 + $0xa0] sm:$0xff] %v303_v55  ;;  %v312_v44 = vld [vmem:[#allocation3 + $0xe8] sm:$0xff] }
  0x51   : > { %v516_v0 = vadd.f32 %v515_v48, %v445_v37  ;;  %v442_v1 = vmul.f32 %v4374_v49, %v4374_v49  ;;  %v510_v2 = vadd.f32 %v440_v52, %v439_v51  ;;  %v4388_v13 = vunpack.c.l.bf16 %v296_v35  ;;  %400 = vst [vmem:[#allocation10 + $0xa8] sm:$0xff] %v304_v63  ;;  %v309_v52 = vld [vmem:[#allocation3 + $0xd0] sm:$0xff] }
  0x52   : > { %5562 = vst [vmem:[#allocation19_spill] sm:$0xff] %v4384_v62  ;;  %483 = vadd.xlane.f32.xlu0 %v482_v57  ;;  %v4390_v15 = vunpack.c.h.bf16 %v296_v35  ;;  %v435_v16 = vmul.f32 %v4382_v61, %v4382_v61  ;;  %v436_v17 = vmul.f32 %v4384_v62, %v4384_v62  ;;  %v4396_v19 = vunpack.c.l.bf16 %v305_v42 }
  0x53   : > { %5563 = vst [vmem:[#allocation20_spill] sm:$0xff] %v4388_v13  ;;  %v517_v21 = vadd.f32 %v516_v0, %v446_v45  ;;  %v511_v27 = vadd.f32 %v510_v2, %v441_v60  ;;  %v437_v28 = vmul.f32 %v4388_v13, %v4388_v13  ;;  %v4400_v32 = vunpack.c.h.bf16 %v305_v42 }
  0x54   : > { %5564 = vst [vmem:[#allocation21_spill] sm:$0xff] %v4390_v15  ;;  %v438_v35 = vmul.f32 %v4390_v15, %v4390_v15  ;;  %v505_v36 = vadd.f32 %v436_v17, %v435_v16  ;;  %v4404_v37 = vunpack.c.l.bf16 %v306_v47  ;;  %v4406_v43 = vunpack.c.h.bf16 %v306_v47 }
  0x55   : > { %5565 = vst [vmem:[#allocation22_spill] sm:$0xff] %v4396_v19  ;;  %v512_v48 = vadd.f32 %v511_v27, %v442_v1  ;;  %v455_v45 = vmul.f32 %v4396_v19, %v4396_v19  ;;  %v456_v42 = vmul.f32 %v4400_v32, %v4400_v32  ;;  %v4412_v51 = vunpack.c.l.bf16 %v303_v55  ;;  %v310_v1 = vld [vmem:[#allocation3 + $0xd8] sm:$0xff] }
  0x56   : > { %397 = vst [vmem:[#allocation10 + $0x90] sm:$0xff] %v301_v14  ;;  %518 = vadd.xlane.f32.xlu2 %v517_v21  ;;  %v506_v57 = vadd.f32 %v505_v36, %v437_v28  ;;  %v457_v60 = vmul.f32 %v4404_v37, %v4404_v37  ;;  %v458_v47 = vmul.f32 %v4406_v43, %v4406_v43  ;;  %v4418_v0 = vunpack.c.h.bf16 %v303_v55  ;;  %v307_v21 = vld [vmem:[#allocation3 + $0xc0] sm:$0xff] }
  0x57   : > { %5566 = vst [vmem:[#allocation23_spill] sm:$0xff] %v4400_v32  ;;  %v530_v2 = vadd.f32 %v456_v42, %v455_v45  ;;  %v4420_v16 = vunpack.c.l.bf16 %v304_v63  ;;  %v4422_v17 = vunpack.c.h.bf16 %v304_v63  ;;  %v451_v27 = vmul.f32 %v4412_v51, %v4412_v51 }
  0x58   : > { %398 = vst [vmem:[#allocation10 + $0x98] sm:$0xff] %v302_v20  ;;  %513 = vadd.xlane.f32.xlu1 %v512_v48  ;;  %v507_v28 = vadd.f32 %v506_v57, %v438_v35  ;;  %v452_v36 = vmul.f32 %v4418_v0, %v4418_v0  ;;  %v4430_v55 = vunpack.c.h.bf16 %v301_v14  ;;  %v313_v35 = vld [vmem:[#allocation3 + $0xf0] sm:$0xff]  ;;  %v4438_v57 = vunpack.c.h.bf16 %v302_v20 }
  0x59   : > { %5567 = vst [vmem:[#allocation24_spill] sm:$0xff] %v4404_v37  ;;  %v308_v37 = vld [vmem:[#allocation3 + $0xc8] sm:$0xff]  ;;  %v531_v45 = vadd.f32 %v530_v2, %v457_v60  ;;  %v453_v63 = vmul.f32 %v4420_v16, %v4420_v16  ;;  %v454_v42 = vmul.f32 %v4422_v17, %v4422_v17  ;;  %v314_v2 = vld [vmem:[#allocation3 + $0xf8] sm:$0xff]  ;;  %v4448_v32 = vunpack.c.h.bf16 %v311_v34 }
  0x5a   : > { %5568 = vst [vmem:[#allocation25_spill] sm:$0xff] %v4406_v43  ;;  %v4428_v43 = vunpack.c.l.bf16 %v301_v14  ;;  %508 = vadd.xlane.f32.xlu0 %v507_v28  ;;  %v525_v48 = vadd.f32 %v452_v36, %v451_v27  ;;  %v448_v60 = vmul.f32 %v4430_v55, %v4430_v55  ;;  %v4452_v36 = vunpack.c.l.bf16 %v312_v44 }
  0x5b   : > { %407 = vst [vmem:[#allocation10 + $0xe0] sm:$0xff] %v311_v34 }
  0x5c   : > { %5569 = vst [vmem:[#allocation26_spill] sm:$0xff] %v4412_v51  ;;  %v4436_v51 = vunpack.c.l.bf16 %v302_v20  ;;  %v447_v14 = vmul.f32 %v4428_v43, %v4428_v43  ;;  %v526_v27 = vadd.f32 %v525_v48, %v453_v63  ;;  %v450_v20 = vmul.f32 %v4438_v57, %v4438_v57 }
  0x5d   : > { %408 = vst [vmem:[#allocation10 + $0xe8] sm:$0xff] %v312_v44  ;;  %v469_v63 = vmul.f32 %v4452_v36, %v4452_v36  ;;  %v4464_v48 = vunpack.c.h.bf16 %v309_v52 }
  0x5e   : > { %5570 = vst [vmem:[#allocation27_spill] sm:$0xff] %v4418_v0  ;;  %v4446_v0 = vunpack.c.l.bf16 %v311_v34  ;;  %v520_v28 = vadd.f32 %v448_v60, %v447_v14  ;;  %v527_v34 = vadd.f32 %v526_v27, %v454_v42  ;;  %v4468_v60 = vunpack.c.l.bf16 %v310_v1 }
  0x5f   : > { %405 = vst [vmem:[#allocation10 + $0xd0] sm:$0xff] %v309_v52  ;;  %v4476_v42 = vunpack.c.l.bf16 %v307_v21 }
  0x60   : > { %5571 = vst [vmem:[#allocation28_spill] sm:$0xff] %v4420_v16  ;;  %v532_v16 = vadd.f32 %v531_v45, %v458_v47  ;;  %v467_v47 = vmul.f32 %v4446_v0, %v4446_v0  ;;  %v468_v45 = vmul.f32 %v4448_v32, %v4448_v32  ;;  %528 = vadd.xlane.f32.xlu1 %v527_v34 }
  0x61   : > { %5572 = vst [vmem:[#allocation29_spill] sm:$0xff] %v4422_v17  ;;  %v449_v17 = vmul.f32 %v4436_v51, %v4436_v51  ;;  %v465_v27 = vmul.f32 %v4468_v60, %v4468_v60 }
  0x62   : > { %406 = vst [vmem:[#allocation10 + $0xd8] sm:$0xff] %v310_v1  ;;  %533 = vadd.xlane.f32.xlu2 %v532_v16  ;;  %v545_v14 = vadd.f32 %v468_v45, %v467_v47  ;;  %v4482_v47 = vunpack.c.h.bf16 %v307_v21  ;;  %v459_v45 = vmul.f32 %v4476_v42, %v4476_v42 }
  0x63   : > { %5573 = vst [vmem:[#allocation30_spill] sm:$0xff] %v4428_v43  ;;  %v4454_v43 = vunpack.c.h.bf16 %v312_v44 }
  0x64   : > { %5574 = vst [vmem:[#allocation31_spill] sm:$0xff] %v4430_v55  ;;  %v521_v55 = vadd.f32 %v520_v28, %v449_v17  ;;  %v464_v17 = vmul.f32 %v4464_v48, %v4464_v48 }
  0x65   : > { %403 = vst [vmem:[#allocation10 + $0xc0] sm:$0xff] %v307_v21  ;;  %v470_v44 = vmul.f32 %v4454_v43, %v4454_v43  ;;  %v4498_v21 = vunpack.c.l.bf16 %v314_v2 }
  0x66   : > { %5575 = vst [vmem:[#allocation32_spill] sm:$0xff] %v4436_v51  ;;  %v4460_v51 = vunpack.c.l.bf16 %v309_v52  ;;  %v546_v52 = vadd.f32 %v545_v14, %v469_v63  ;;  %v460_v63 = vmul.f32 %v4482_v47, %v4482_v47  ;;  %v4492_v14 = vunpack.c.l.bf16 %v313_v35 }
  0x67   : > { %404 = vst [vmem:[#allocation10 + $0xc8] sm:$0xff] %v308_v37 }
  0x68   : > { %5576 = vst [vmem:[#allocation33_spill] sm:$0xff] %v4438_v57  ;;  %v463_v16 = vmul.f32 %v4460_v51, %v4460_v51  ;;  %v547_v34 = vadd.f32 %v546_v52, %v470_v44  ;;  %v471_v44 = vmul.f32 %v4492_v14, %v4492_v14 }
  0x69   : > { %409 = vst [vmem:[#allocation10 + $0xf0] sm:$0xff] %v313_v35 }
  0x6a   : > { %5577 = vst [vmem:[#allocation34_spill] sm:$0xff] %v4446_v0  ;;  %v4470_v0 = vunpack.c.h.bf16 %v310_v1  ;;  %v540_v1 = vadd.f32 %v464_v17, %v463_v16  ;;  %v535_v16 = vadd.f32 %v460_v63, %v459_v45  ;;  %548 = vadd.xlane.f32.xlu2 %v547_v34 }
  0x6b   : > { %5578 = vst [vmem:[#allocation35_spill] sm:$0xff] %v4448_v32  ;;  %v522_v32 = vadd.f32 %v521_v55, %v450_v20  ;;  %v4484_v55 = vunpack.c.l.bf16 %v308_v37  ;;  %v4486_v20 = vunpack.c.h.bf16 %v308_v37 }
  0x6c   : > { %410 = vst [vmem:[#allocation10 + $0xf8] sm:$0xff] %v314_v2  ;;  %v466_v28 = vmul.f32 %v4470_v0, %v4470_v0 }
  0x6d   : > { %5579 = vst [vmem:[#allocation36_spill] sm:$0xff] %v4452_v36  ;;  %523 = vadd.xlane.f32.xlu0 %v522_v32  ;;  %v461_v32 = vmul.f32 %v4484_v55, %v4484_v55  ;;  %v462_v37 = vmul.f32 %v4486_v20, %v4486_v20 }
  0x6e   : > { %5580 = vst [vmem:[#allocation37_spill] sm:$0xff] %v4454_v43 }
  0x6f   : > { %5581 = vst [vmem:[#allocation38_spill] sm:$0xff] %v4460_v51 }
  0x70   : > { %5582 = vst [vmem:[#allocation39_spill] sm:$0xff] %v4464_v48 }
  0x71   : > { %5583 = vst [vmem:[#allocation40_spill] sm:$0xff] %v4468_v60  ;;  %v4494_v60 = vunpack.c.h.bf16 %v313_v35  ;;  %v536_v35 = vadd.f32 %v535_v16, %v461_v32 }
  0x72   : > { %5584 = vst [vmem:[#allocation41_spill] sm:$0xff] %v4470_v0  ;;  %v541_v0 = vadd.f32 %v540_v1, %v465_v27  ;;  %v473_v27 = vmul.f32 %v4498_v21, %v4498_v21 }
  0x73   : > { %5585 = vst [vmem:[#allocation42_spill] sm:$0xff] %v4476_v42  ;;  %v472_v17 = vmul.f32 %v4494_v60, %v4494_v60 }
  0x74   : > { %5586 = vst [vmem:[#allocation43_spill] sm:$0xff] %v4482_v47  ;;  %v542_v52 = vadd.f32 %v541_v0, %v466_v28  ;;  %v4506_v47 = vunpack.c.h.bf16 %v314_v2 }
  0x75   : > { %5587 = vst [vmem:[#allocation44_spill] sm:$0xff] %v4484_v55  ;;  %v550_v1 = vadd.f32 %v472_v17, %v471_v44  ;;  %v537_v55 = vadd.f32 %v536_v35, %v462_v37 }
  0x76   : > { %5588 = vst [vmem:[#allocation45_spill] sm:$0xff] %v4486_v20  ;;  %543 = vadd.xlane.f32.xlu1 %v542_v52  ;;  %v474_v45 = vmul.f32 %v4506_v47, %v4506_v47  ;;  %v4094_v20 = vmov 512.0  }
  0x77   : > { %5589 = vst [vmem:[#allocation46_spill] sm:$0xff] %v4492_v14  ;;  %538 = vadd.xlane.f32.xlu0 %v537_v55  ;;  %v551_v63 = vadd.f32 %v550_v1, %v473_v27  ;;  %3841 = vrcp.f32 %v4094_v20 }
  0x78   : > { %5590 = vst [vmem:[#allocation47_spill] sm:$0xff] %v4494_v60 }
  0x79   : > { %5591 = vst [vmem:[#allocation48_spill] sm:$0xff] %v4498_v21  ;;  %v552_v14 = vadd.f32 %v551_v63, %v474_v45 }
  0x7a   : > { %5592 = vst [vmem:[#allocation49_spill] sm:$0xff] %v4506_v47 }
  0x7d   : > { %v3842_v34 = vpop.eup %3841 }
  0x7e   : > { %v556_v0 = vmul.f32 512.0, %v3842_v34  ;;  %vm560_vm0 = vweird.f32 %v3842_v34 }
  0x7f   : > { %553 = vadd.xlane.f32.xlu0 %v552_v14 }
  0x80   : > { %v557_v28 = vsub.f32 1.0, %v556_v0  ;;  %v818_v0 = vld [vmem:[#allocation6] sm:$0xf] }
  0x81   : > { %v4538_v21 = vperm.slane %v818_v0, 2 }
  0x82   : > { %v558_v2 = vmul.f32 %v3842_v34, %v557_v28 }
  0x84   : > { %v559_v32 = vadd.f32 %v3842_v34, %v558_v2 }
  0x86   : > { %v4512_v16 = vsel %vm560_vm0, %v3842_v34, %v559_v32 }
  0xb9   : > { %v499_v44 = vpop.xlane.xlu2 %498 }
  0xba   : > { %v566_v37 = vmul.f32 %v4512_v16, %v499_v44  ;;  %v489_v55 = vpop.xlane.xlu1 %488 }
  0xbb   : > { %v564_v17 = vmul.f32 %v4512_v16, %v489_v55 }
  0xbc   : > { %v582_v52 = vadd.f32 1e-05, %v566_v37 }
  0xbd   : > { %v4516_v35 = vadd.f32 1e-05, %v564_v17  ;;  %v479_v14 = vpop.xlane.xlu0 %478  ;;  %v4529_v17 = vperm.slane %v818_v0, 0 }
  0xbe   : > { %3843 = vrsqrt.f32 %v582_v52  ;;  %v562_v20 = vmul.f32 %v4512_v16, %v479_v14  ;;  %vm640_vm1 = vweird.f32 %v582_v52 }
  0xbf   : > { %3845 = vrsqrt.f32 %v4516_v35  ;;  %vm620_vm2 = vweird.f32 %v4516_v35 }
  0xc0   : > { %v4520_v27 = vadd.f32 1e-05, %v562_v20 }
  0xc1   : > { %v504_v1 = vpop.xlane.xlu2 %503 }
  0xc2   : > { %3847 = vrsqrt.f32 %v4520_v27  ;;  %v567_v45 = vmul.f32 %v4512_v16, %v504_v1  ;;  %vm600_vm4 = vweird.f32 %v4520_v27 }
  0xc3   : > { %v494_v63 = vpop.xlane.xlu1 %493 }
  0xc4   : > { %v3844_v34 = vpop.eup %3843  ;;  %v4524_v28 = vadd.f32 1e-05, %v567_v45  ;;  %v565_v2 = vmul.f32 %v4512_v16, %v494_v63  ;;  %v4536_v45 = vperm.slane %v818_v0, 1  ;;  %v4540_v63 = vperm.slane %v818_v0, 3 }
  0xc5   : > { %v3846_v32 = vpop.eup %3845  ;;  %v635_v44 = vmul.f32 %v3844_v34, %v582_v52  ;;  %v484_v37 = vpop.xlane.xlu0 %483  ;;  %vm641_vm3 = vweird.f32 %v3844_v34 }
  0xc6   : > { %v615_v55 = vmul.f32 %v3846_v32, %v4516_v35  ;;  %3849 = vrsqrt.f32 %v4524_v28  ;;  %v4531_v20 = vadd.f32 1e-05, %v565_v2  ;;  %v563_v1 = vmul.f32 %v4512_v16, %v484_v37  ;;  %vm642_vm8 = vmor %vm640_vm1, %vm641_vm3 }
  0xc7   : > { %v636_v14 = vmul.f32 %v3844_v34, %v635_v44  ;;  %vm621_vm5 = vweird.f32 %v3846_v32  ;;  %vm650_vm7 = vweird.f32 %v4524_v28 }
  0xc8   : > { %v4534_v47 = vpop.eup %3847  ;;  %v616_v60 = vmul.f32 %v3846_v32, %v615_v55  ;;  %3851 = vrsqrt.f32 %v4531_v20  ;;  %v4546_v37 = vadd.f32 1e-05, %v563_v1  ;;  %vm622_vm10 = vmor %vm620_vm2, %vm621_vm5  ;;  %vm630_vm12 = vweird.f32 %v4531_v20 }
  0xc9   : > { %v637_v42 = vmul.f32 0.5, %v636_v14  ;;  %v595_v48 = vmul.f32 %v4534_v47, %v4520_v27  ;;  %v519_v2 = vpop.xlane.xlu2 %518  ;;  %vm601_vm6 = vweird.f32 %v4534_v47 }
  0xca   : > { %v617_v44 = vmul.f32 0.5, %v616_v60  ;;  %v570_v51 = vmul.f32 %v4512_v16, %v519_v2  ;;  %3853 = vrsqrt.f32 %v4546_v37  ;;  %vm602_vm11 = vmor %vm600_vm4, %vm601_vm6  ;;  %vm610_vm15 = vweird.f32 %v4546_v37 }
  0xcb   : > { %v638_v43 = vsub.f32 1.5, %v637_v42  ;;  %v596_v0 = vmul.f32 %v4534_v47, %v595_v48  ;;  %v514_v55 = vpop.xlane.xlu1 %513 }
  0xcc   : > { %v4551_v14 = vpop.eup %3849  ;;  %v618_v36 = vsub.f32 1.5, %v617_v44  ;;  %v4554_v60 = vadd.f32 1e-05, %v570_v51  ;;  %v4565_v51 = vmul.f32 %v4512_v16, %v514_v55 }
  0xcd   : > { %v639_v57 = vmul.f32 %v3844_v34, %v638_v43  ;;  %v597_v1 = vmul.f32 0.5, %v596_v0  ;;  %v645_v2 = vmul.f32 %v4551_v14, %v4524_v28  ;;  %v509_v48 = vpop.xlane.xlu0 %508  ;;  %vm651_vm9 = vweird.f32 %v4551_v14 }
  0xce   : > { %v619_v42 = vmul.f32 %v3846_v32, %v618_v36  ;;  %3855 = vrsqrt.f32 %v4554_v60  ;;  %v4567_v43 = vpop.eup %3851  ;;  %v4571_v15 = vmul.f32 %v4512_v16, %v509_v48  ;;  %vm652_vm13 = vmor %vm650_vm7, %vm651_vm9  ;;  %vm680_vm2 = vweird.f32 %v4554_v60 }
  0xcf   : > { %v643_v44 = vsel %vm642_vm8, %v3844_v34, %v639_v57  ;;  %v598_v0 = vsub.f32 1.5, %v597_v1  ;;  %v646_v19 = vmul.f32 %v4551_v14, %v645_v2  ;;  %v625_v1 = vmul.f32 %v4567_v43, %v4531_v20 }
  0xd0   : > { %v770_v52 = vmul.f32 %v643_v44, %v4256_v3  ;;  %v771_v36 = vmul.f32 %v643_v44, %v4258_v4  ;;  %v772_v13 = vmul.f32 %v643_v44, %v4260_v5  ;;  %v773_v62 = vmul.f32 %v643_v44, %v4262_v6  ;;  %v4587_v6 = vpop.eup %3853 }
  0xd1   : > { %v623_v55 = vsel %vm622_vm10, %v3846_v32, %v619_v42  ;;  %v599_v57 = vmul.f32 %v4534_v47, %v598_v0  ;;  %v647_v34 = vmul.f32 0.5, %v646_v19  ;;  %vm631_vm14 = vweird.f32 %v4567_v43 }
  0xd2   : > { %v844_v2 = vmul.f32 %v4529_v17, %v770_v52  ;;  %v845_v3 = vmul.f32 %v4536_v45, %v771_v36  ;;  %v846_v4 = vmul.f32 %v4538_v21, %v772_v13  ;;  %v847_v5 = vmul.f32 %v4540_v63, %v773_v62  ;;  %vm632_vm0 = vmor %vm630_vm12, %vm631_vm14 }
  0xd3   : > { %v762_v35 = vmul.f32 %v623_v55, %v4264_v8  ;;  %v763_v32 = vmul.f32 %v623_v55, %v4266_v9  ;;  %v764_v48 = vmul.f32 %v623_v55, %v4268_v10  ;;  %v765_v19 = vmul.f32 %v623_v55, %v4270_v11 }
  0xd4   : > { %v4598_v13 = vpop.eup %3855  ;;  %v900_v62 = vpack.c.bf16 %v845_v3, %v844_v2  ;;  %v901_v42 = vpack.c.bf16 %v847_v5, %v846_v4  ;;  %v603_v44 = vsel %vm602_vm11, %v4534_v47, %v599_v57  ;;  %v648_v8 = vsub.f32 1.5, %v647_v34 }
  0xd5   : > { %v836_v9 = vmul.f32 %v4529_v17, %v762_v35  ;;  %v837_v10 = vmul.f32 %v4536_v45, %v763_v32  ;;  %v838_v11 = vmul.f32 %v4538_v21, %v764_v48  ;;  %v839_v0 = vmul.f32 %v4540_v63, %v765_v19 }
  0xd6   : > { %932 = vst [vmem:[#allocation2 + $0x40] sm:$0xff] %v900_v62  ;;  %v754_v27 = vmul.f32 %v603_v44, %v4288_v24  ;;  %v755_v52 = vmul.f32 %v603_v44, %v4290_v25  ;;  %v756_v36 = vmul.f32 %v603_v44, %v4292_v26  ;;  %v757_v55 = vmul.f32 %v603_v44, %v4294_v29 }
  0xd7   : > { %933 = vst [vmem:[#allocation2 + $0x48] sm:$0xff] %v901_v42  ;;  %v896_v47 = vpack.c.bf16 %v837_v10, %v836_v9  ;;  %v897_v57 = vpack.c.bf16 %v839_v0, %v838_v11  ;;  %v649_v34 = vmul.f32 %v4551_v14, %v648_v8  ;;  %v626_v2 = vmul.f32 %v4567_v43, %v625_v1 }
  0xd8   : > { %v828_v3 = vmul.f32 %v4529_v17, %v754_v27  ;;  %v829_v4 = vmul.f32 %v4536_v45, %v755_v52  ;;  %v830_v5 = vmul.f32 %v4538_v21, %v756_v36  ;;  %v831_v24 = vmul.f32 %v4540_v63, %v757_v55 }
  0xd9   : > { %928 = vst [vmem:[#allocation2 + $0x20] sm:$0xff] %v896_v47  ;;  %v653_v25 = vsel %vm652_vm13, %v4551_v14, %v649_v34  ;;  %v627_v26 = vmul.f32 0.5, %v626_v2  ;;  %v605_v29 = vmul.f32 %v4587_v6, %v4546_v37  ;;  %v675_v8 = vmul.f32 %v4598_v13, %v4554_v60  ;;  %v534_v2 = vpop.xlane.xlu2 %533 }
  0xda   : > { %929 = vst [vmem:[#allocation2 + $0x28] sm:$0xff] %v897_v57  ;;  %v892_v1 = vpack.c.bf16 %v829_v4, %v828_v3  ;;  %v893_v35 = vpack.c.bf16 %v831_v24, %v830_v5  ;;  %v774_v32 = vmul.f32 %v653_v25, %v4296_v30  ;;  %v775_v48 = vmul.f32 %v653_v25, %v4298_v31 }
  0xdb   : > { %v776_v19 = vmul.f32 %v653_v25, %v4308_v39  ;;  %v777_v28 = vmul.f32 %v653_v25, %v4310_v40  ;;  %v628_v62 = vsub.f32 1.5, %v627_v26  ;;  %v606_v14 = vmul.f32 %v4587_v6, %v605_v29 }
  0xdc   : > { %924 = vst [vmem:[#allocation2] sm:$0xff] %v892_v1  ;;  %v848_v42 = vmul.f32 %v4529_v17, %v774_v32  ;;  %v849_v44 = vmul.f32 %v4536_v45, %v775_v48  ;;  %vm611_vm1 = vweird.f32 %v4587_v6  ;;  %v676_v11 = vmul.f32 %v4598_v13, %v675_v8 }
  0xdd   : > { %925 = vst [vmem:[#allocation2 + $0x8] sm:$0xff] %v893_v35  ;;  %v850_v31 = vmul.f32 %v4538_v21, %v776_v19  ;;  %v851_v39 = vmul.f32 %v4540_v63, %v777_v28  ;;  %v629_v40 = vmul.f32 %v4567_v43, %v628_v62  ;;  %v607_v9 = vmul.f32 0.5, %v606_v14  ;;  %vm612_vm3 = vmor %vm610_vm15, %vm611_vm1 }
  0xde   : > { %v902_v10 = vpack.c.bf16 %v849_v44, %v848_v42  ;;  %v4645_v0 = vadd.f32 1e-05, %v4565_v51  ;;  %v4649_v55 = vadd.f32 1e-05, %v4571_v15  ;;  %v677_v3 = vmul.f32 0.5, %v676_v11  ;;  %v529_v15 = vpop.xlane.xlu1 %528 }
  0xdf   : > { %v903_v27 = vpack.c.bf16 %v851_v39, %v850_v31  ;;  %v633_v52 = vsel %vm632_vm0, %v4567_v43, %v629_v40  ;;  %v608_v36 = vsub.f32 1.5, %v607_v9  ;;  %vm681_vm4 = vweird.f32 %v4598_v13 }
  0xe0   : > { %v4633_v30 = vpop.xlane.xlu0 %523  ;;  %934 = vst [vmem:[#allocation2 + $0x50] sm:$0xff] %v902_v10  ;;  %v766_v47 = vmul.f32 %v633_v52, %v4320_v50  ;;  %v767_v20 = vmul.f32 %v633_v52, %v4322_v53  ;;  %v768_v57 = vmul.f32 %v633_v52, %v4324_v54  ;;  %v769_v34 = vmul.f32 %v633_v52, %v4326_v56  ;;  %vm682_vm5 = vmor %vm680_vm2, %vm681_vm4 }
  0xe1   : > { %935 = vst [vmem:[#allocation2 + $0x58] sm:$0xff] %v903_v27  ;;  %v609_v51 = vmul.f32 %v4587_v6, %v608_v36  ;;  %3857 = vrsqrt.f32 %v4645_v0  ;;  %v678_v4 = vsub.f32 1.5, %v677_v3  ;;  %v573_v35 = vmul.f32 %v4512_v16, %v534_v2  ;;  %v549_v10 = vpop.xlane.xlu2 %548 }
  0xe2   : > { %v840_v43 = vmul.f32 %v4529_v17, %v766_v47  ;;  %v841_v50 = vmul.f32 %v4536_v45, %v767_v20  ;;  %v842_v53 = vmul.f32 %v4538_v21, %v768_v57  ;;  %v843_v54 = vmul.f32 %v4540_v63, %v769_v34 }
  0xe3   : > { %v613_v56 = vsel %vm612_vm3, %v4587_v6, %v609_v51  ;;  %3859 = vrsqrt.f32 %v4649_v55  ;;  %v679_v37 = vmul.f32 %v4598_v13, %v678_v4  ;;  %v4683_v28 = vadd.f32 1e-05, %v573_v35 }
  0xe4   : > { %v898_v5 = vpack.c.bf16 %v841_v50, %v840_v43  ;;  %v899_v24 = vpack.c.bf16 %v843_v54, %v842_v53  ;;  %v758_v25 = vmul.f32 %v613_v56, %v4330_v58  ;;  %v759_v26 = vmul.f32 %v613_v56, %v4332_v59 }
  0xe5   : > { %v760_v29 = vmul.f32 %v613_v56, %v4340_v7  ;;  %v761_v1 = vmul.f32 %v613_v56, %v4342_v12  ;;  %v572_v58 = vmul.f32 %v4512_v16, %v529_v15  ;;  %v683_v19 = vsel %vm682_vm5, %v4598_v13, %v679_v37 }
  0xe6   : > { %930 = vst [vmem:[#allocation2 + $0x30] sm:$0xff] %v898_v5  ;;  %v832_v6 = vmul.f32 %v4529_v17, %v758_v25  ;;  %v833_v32 = vmul.f32 %v4536_v45, %v759_v26  ;;  %v786_v14 = vmul.f32 %v683_v19, %v4348_v18  ;;  %v787_v42 = vmul.f32 %v683_v19, %v4354_v22 }
  0xe7   : > { %v3858_v59 = vpop.eup %3857  ;;  %931 = vst [vmem:[#allocation2 + $0x38] sm:$0xff] %v899_v24  ;;  %v834_v7 = vmul.f32 %v4538_v21, %v760_v29  ;;  %v835_v12 = vmul.f32 %v4540_v63, %v761_v1  ;;  %v788_v60 = vmul.f32 %v683_v19, %v4356_v23  ;;  %v789_v31 = vmul.f32 %v683_v19, %v4358_v33  ;;  %v5595_v19 = vld [vmem:[#allocation21_spill] sm:$0xff] }
  0xe8   : > { %v894_v62 = vpack.c.bf16 %v833_v32, %v832_v6  ;;  %v665_v39 = vmul.f32 %v3858_v59, %v4645_v0  ;;  %v571_v40 = vmul.f32 %v4512_v16, %v4633_v30  ;;  %v860_v13 = vmul.f32 %v4529_v17, %v786_v14 }
  0xe9   : > { %v3860_v44 = vpop.eup %3859  ;;  %v895_v8 = vpack.c.bf16 %v835_v12, %v834_v7  ;;  %v861_v9 = vmul.f32 %v4536_v45, %v787_v42  ;;  %v862_v18 = vmul.f32 %v4538_v21, %v788_v60  ;;  %v863_v23 = vmul.f32 %v4540_v63, %v789_v31  ;;  %v544_v33 = vpop.xlane.xlu1 %543  ;;  %v5594_v7 = vld [vmem:[#allocation20_spill] sm:$0xff] }
  0xea   : > { %v539_v48 = vpop.xlane.xlu0 %538  ;;  %926 = vst [vmem:[#allocation2 + $0x10] sm:$0xff] %v894_v62  ;;  %v655_v22 = vmul.f32 %v3860_v44, %v4649_v55  ;;  %v666_v11 = vmul.f32 %v3858_v59, %v665_v39  ;;  %3861 = vrsqrt.f32 %v4683_v28  ;;  %v4698_v30 = vadd.f32 1e-05, %v572_v58 }
  0xeb   : > { %927 = vst [vmem:[#allocation2 + $0x18] sm:$0xff] %v895_v8  ;;  %v908_v27 = vpack.c.bf16 %v861_v9, %v860_v13  ;;  %v909_v36 = vpack.c.bf16 %v863_v23, %v862_v18  ;;  %v4700_v20 = vadd.f32 1e-05, %v571_v40  ;;  %v576_v57 = vmul.f32 %v4512_v16, %v549_v10 }
  0xec   : > { %v656_v52 = vmul.f32 %v3860_v44, %v655_v22  ;;  %v667_v47 = vmul.f32 0.5, %v666_v11  ;;  %3863 = vrsqrt.f32 %v4698_v30  ;;  %v575_v2 = vmul.f32 %v4512_v16, %v544_v33 }
  0xed   : > { %940 = vst [vmem:[#allocation2 + $0x80] sm:$0xff] %v908_v27  ;;  %vm670_vm6 = vweird.f32 %v4645_v0  ;;  %vm671_vm7 = vweird.f32 %v3858_v59  ;;  %v4706_v3 = vadd.f32 1e-05, %v576_v57  ;;  %vm660_vm8 = vweird.f32 %v4649_v55 }
  0xee   : > { %v657_v34 = vmul.f32 0.5, %v656_v52  ;;  %941 = vst [vmem:[#allocation2 + $0x88] sm:$0xff] %v909_v36  ;;  %v668_v51 = vsub.f32 1.5, %v667_v47  ;;  %v4709_v43 = vadd.f32 1e-05, %v575_v2  ;;  %vm661_vm9 = vweird.f32 %v3860_v44  ;;  %vm672_vm10 = vmor %vm670_vm6, %vm671_vm7 }
  0xef   : > { %3865 = vrsqrt.f32 %v4700_v20  ;;  %v574_v56 = vmul.f32 %v4512_v16, %v539_v48  ;;  %vm710_vm11 = vweird.f32 %v4683_v28  ;;  %vm662_vm13 = vmor %vm660_vm8, %vm661_vm9  ;;  %vm700_vm14 = vweird.f32 %v4698_v30  ;;  %v5593_v48 = vld [vmem:[#allocation19_spill] sm:$0xff] }
  0xf0   : > { %v658_v15 = vsub.f32 1.5, %v657_v34  ;;  %v4711_v53 = vpop.eup %3861  ;;  %v669_v54 = vmul.f32 %v3858_v59, %v668_v51  ;;  %3867 = vrsqrt.f32 %v4706_v3  ;;  %vm690_vm0 = vweird.f32 %v4700_v20 }
  0xf1   : > { %v705_v0 = vmul.f32 %v4711_v53, %v4683_v28  ;;  %vm711_vm12 = vweird.f32 %v4711_v53  ;;  %3869 = vrsqrt.f32 %v4709_v43  ;;  %v4735_v32 = vadd.f32 1e-05, %v574_v56  ;;  %v5596_v28 = vld [vmem:[#allocation22_spill] sm:$0xff] }
  0xf2   : > { %v554_v50 = vpop.xlane.xlu0 %553  ;;  %v659_v4 = vmul.f32 %v3860_v44, %v658_v15  ;;  %v673_v5 = vsel %vm672_vm10, %v3858_v59, %v669_v54  ;;  %v4722_v25 = vpop.eup %3863  ;;  %vm740_vm1 = vweird.f32 %v4706_v3  ;;  %vm712_vm2 = vmor %vm710_vm11, %vm711_vm12  ;;  %vm730_vm5 = vweird.f32 %v4709_v43  ;;  %v5597_v54 = vld [vmem:[#allocation23_spill] sm:$0xff] }
  0xf3   : > { %v577_v24 = vmul.f32 %v4512_v16, %v554_v50  ;;  %v782_v26 = vmul.f32 %v673_v5, %v4366_v38  ;;  %v783_v29 = vmul.f32 %v673_v5, %v4368_v41  ;;  %v784_v1 = vmul.f32 %v673_v5, %v4372_v46 }
  0xf4   : > { %v785_v37 = vmul.f32 %v673_v5, %v4374_v49  ;;  %v663_v35 = vsel %vm662_vm13, %v3860_v44, %v659_v4  ;;  %v706_v6 = vmul.f32 %v4711_v53, %v705_v0  ;;  %v695_v16 = vmul.f32 %v4722_v25, %v4698_v30  ;;  %v5598_v4 = vld [vmem:[#allocation24_spill] sm:$0xff]  ;;  %v5599_v5 = vld [vmem:[#allocation25_spill] sm:$0xff] }
  0xf5   : > { %v856_v38 = vmul.f32 %v4529_v17, %v782_v26  ;;  %v857_v41 = vmul.f32 %v4536_v45, %v783_v29  ;;  %v858_v46 = vmul.f32 %v4538_v21, %v784_v1  ;;  %v4741_v55 = vpop.eup %3865  ;;  %v778_v58 = vmul.f32 %v663_v35, %v4382_v61 }
  0xf6   : > { %v859_v49 = vmul.f32 %v4540_v63, %v785_v37  ;;  %v779_v59 = vmul.f32 %v663_v35, %v5593_v48  ;;  %v780_v12 = vmul.f32 %v663_v35, %v5594_v7  ;;  %v781_v62 = vmul.f32 %v663_v35, %v5595_v19  ;;  %v4747_v14 = vpop.eup %3867  ;;  %v5603_v48 = vld [vmem:[#allocation29_spill] sm:$0xff] }
  0xf7   : > { %v906_v42 = vpack.c.bf16 %v857_v41, %v856_v38  ;;  %v707_v44 = vmul.f32 0.5, %v706_v6  ;;  %v696_v8 = vmul.f32 %v4722_v25, %v695_v16  ;;  %v4750_v31 = vpop.eup %3869  ;;  %v852_v39 = vmul.f32 %v4529_v17, %v778_v58  ;;  %v5600_v38 = vld [vmem:[#allocation26_spill] sm:$0xff]  ;;  %v5602_v58 = vld [vmem:[#allocation28_spill] sm:$0xff] }
  0xf8   : > { %v907_v60 = vpack.c.bf16 %v859_v49, %v858_v46  ;;  %v853_v40 = vmul.f32 %v4536_v45, %v779_v59  ;;  %v854_v61 = vmul.f32 %v4538_v21, %v780_v12  ;;  %v855_v13 = vmul.f32 %v4540_v63, %v781_v62  ;;  %v5601_v46 = vld [vmem:[#allocation27_spill] sm:$0xff] }
  0xf9   : > { %938 = vst [vmem:[#allocation2 + $0x70] sm:$0xff] %v906_v42  ;;  %v708_v9 = vsub.f32 1.5, %v707_v44  ;;  %v697_v18 = vmul.f32 0.5, %v696_v8  ;;  %v685_v22 = vmul.f32 %v4741_v55, %v4700_v20  ;;  %v4758_v10 = vadd.f32 1e-05, %v577_v24  ;;  %v5606_v20 = vld [vmem:[#allocation32_spill] sm:$0xff] }
  0xfa   : > { %939 = vst [vmem:[#allocation2 + $0x78] sm:$0xff] %v907_v60  ;;  %v904_v23 = vpack.c.bf16 %v853_v40, %v852_v39  ;;  %v905_v11 = vpack.c.bf16 %v855_v13, %v854_v61  ;;  %vm701_vm15 = vweird.f32 %v4722_v25  ;;  %v735_v33 = vmul.f32 %v4747_v14, %v4706_v3 }
  0xfb   : > { %v709_v27 = vmul.f32 %v4711_v53, %v708_v9  ;;  %v698_v52 = vsub.f32 1.5, %v697_v18  ;;  %v686_v36 = vmul.f32 %v4741_v55, %v685_v22  ;;  %v725_v47 = vmul.f32 %v4750_v31, %v4709_v43  ;;  %vm702_vm7 = vmor %vm700_vm14, %vm701_vm15  ;;  %v5604_v22 = vld [vmem:[#allocation30_spill] sm:$0xff]  ;;  %v5614_v43 = vld [vmem:[#allocation40_spill] sm:$0xff] }
  0xfc   : > { %936 = vst [vmem:[#allocation2 + $0x60] sm:$0xff] %v904_v23  ;;  %vm691_vm3 = vweird.f32 %v4741_v55  ;;  %v736_v57 = vmul.f32 %v4747_v14, %v735_v33  ;;  %vm741_vm4 = vweird.f32 %v4747_v14  ;;  %3871 = vrsqrt.f32 %v4735_v32 }
  0xfd   : > { %937 = vst [vmem:[#allocation2 + $0x68] sm:$0xff] %v905_v11  ;;  %v713_v34 = vsel %vm712_vm2, %v4711_v53, %v709_v27  ;;  %v699_v2 = vmul.f32 %v4722_v25, %v698_v52  ;;  %v687_v51 = vmul.f32 0.5, %v686_v36  ;;  %v726_v15 = vmul.f32 %v4750_v31, %v725_v47  ;;  %vm692_vm8 = vmor %vm690_vm0, %vm691_vm3  ;;  %v5605_v11 = vld [vmem:[#allocation31_spill] sm:$0xff]  ;;  %v5607_v27 = vld [vmem:[#allocation33_spill] sm:$0xff] }
  0xfe   : > { %vm731_vm6 = vweird.f32 %v4750_v31  ;;  %v798_v50 = vmul.f32 %v713_v34, %v5596_v28  ;;  %v799_v56 = vmul.f32 %v713_v34, %v5597_v54  ;;  %v800_v0 = vmul.f32 %v713_v34, %v5598_v4  ;;  %vm742_vm9 = vmor %vm740_vm1, %vm741_vm4  ;;  %v5610_v54 = vld [vmem:[#allocation36_spill] sm:$0xff]  ;;  %v5611_v4 = vld [vmem:[#allocation37_spill] sm:$0xff] }
  0xff   : > { %v801_v24 = vmul.f32 %v713_v34, %v5599_v5  ;;  %v703_v53 = vsel %vm702_vm7, %v4722_v25, %v699_v2  ;;  %v688_v26 = vsub.f32 1.5, %v687_v51  ;;  %v737_v29 = vmul.f32 0.5, %v736_v57  ;;  %v5608_v2 = vld [vmem:[#allocation34_spill] sm:$0xff]  ;;  %vm732_vm10 = vmor %vm730_vm5, %vm731_vm6 }
 0x100   : > { %v727_v1 = vmul.f32 0.5, %v726_v15  ;;  %v872_v37 = vmul.f32 %v4529_v17, %v798_v50  ;;  %v873_v35 = vmul.f32 %v4536_v45, %v799_v56  ;;  %v874_v6 = vmul.f32 %v4538_v21, %v800_v0  ;;  %v5609_v15 = vld [vmem:[#allocation35_spill] sm:$0xff] }
 0x101   : > { %v875_v16 = vmul.f32 %v4540_v63, %v801_v24  ;;  %v794_v41 = vmul.f32 %v703_v53, %v5600_v38  ;;  %v795_v49 = vmul.f32 %v703_v53, %v5601_v46  ;;  %v796_v30 = vmul.f32 %v703_v53, %v5602_v58  ;;  %v5615_v46 = vld [vmem:[#allocation41_spill] sm:$0xff] }
 0x102   : > { %v797_v59 = vmul.f32 %v703_v53, %v5603_v48  ;;  %v4799_v25 = vpop.eup %3871  ;;  %v914_v7 = vpack.c.bf16 %v873_v35, %v872_v37  ;;  %v689_v19 = vmul.f32 %v4741_v55, %v688_v26  ;;  %v738_v62 = vsub.f32 1.5, %v737_v29  ;;  %v5612_v37 = vld [vmem:[#allocation38_spill] sm:$0xff] }
 0x103   : > { %v915_v12 = vpack.c.bf16 %v875_v16, %v874_v6  ;;  %v868_v42 = vmul.f32 %v4529_v17, %v794_v41  ;;  %v869_v60 = vmul.f32 %v4536_v45, %v795_v49  ;;  %v870_v44 = vmul.f32 %v4538_v21, %v796_v30  ;;  %v5613_v16 = vld [vmem:[#allocation39_spill] sm:$0xff] }
 0x104   : > { %v871_v8 = vmul.f32 %v4540_v63, %v797_v59  ;;  %946 = vst [vmem:[#allocation2 + $0xb0] sm:$0xff] %v914_v7  ;;  %v693_v39 = vsel %vm692_vm8, %v4741_v55, %v689_v19  ;;  %v739_v40 = vmul.f32 %v4747_v14, %v738_v62  ;;  %v728_v61 = vsub.f32 1.5, %v727_v1 }
 0x105   : > { %v715_v13 = vmul.f32 %v4799_v25, %v4735_v32  ;;  %947 = vst [vmem:[#allocation2 + $0xb8] sm:$0xff] %v915_v12  ;;  %v912_v9 = vpack.c.bf16 %v869_v60, %v868_v42  ;;  %v790_v23 = vmul.f32 %v693_v39, %v5604_v22  ;;  %v791_v33 = vmul.f32 %v693_v39, %v5605_v11 }
 0x106   : > { %v913_v18 = vpack.c.bf16 %v871_v8, %v870_v44  ;;  %v792_v55 = vmul.f32 %v693_v39, %v5606_v20  ;;  %v793_v52 = vmul.f32 %v693_v39, %v5607_v27  ;;  %v743_v36 = vsel %vm742_vm9, %v4747_v14, %v739_v40  ;;  %v5616_v40 = vld [vmem:[#allocation42_spill] sm:$0xff] }
 0x107   : > { %v729_v47 = vmul.f32 %v4750_v31, %v728_v61  ;;  %944 = vst [vmem:[#allocation2 + $0xa0] sm:$0xff] %v912_v9  ;;  %v864_v57 = vmul.f32 %v4529_v17, %v790_v23  ;;  %v865_v34 = vmul.f32 %v4536_v45, %v791_v33  ;;  %v810_v51 = vmul.f32 %v743_v36, %v5608_v2  ;;  %v5619_v23 = vld [vmem:[#allocation45_spill] sm:$0xff]  ;;  %v5620_v2 = vld [vmem:[#allocation46_spill] sm:$0xff] }
 0x108   : > { %v811_v28 = vmul.f32 %v743_v36, %v5609_v15  ;;  %945 = vst [vmem:[#allocation2 + $0xa8] sm:$0xff] %v913_v18  ;;  %v866_v3 = vmul.f32 %v4538_v21, %v792_v55  ;;  %v867_v50 = vmul.f32 %v4540_v63, %v793_v52  ;;  %v812_v56 = vmul.f32 %v743_v36, %v5610_v54  ;;  %v5618_v18 = vld [vmem:[#allocation44_spill] sm:$0xff]  ;;  %v5621_v15 = vld [vmem:[#allocation47_spill] sm:$0xff]  ;;  %v5623_v54 = vld [vmem:[#allocation49_spill] sm:$0xff] }
 0x109   : > { %v813_v14 = vmul.f32 %v743_v36, %v5611_v4  ;;  %v910_v0 = vpack.c.bf16 %v865_v34, %v864_v57  ;;  %v884_v5 = vmul.f32 %v4529_v17, %v810_v51  ;;  %v733_v53 = vsel %vm732_vm10, %v4750_v31, %v729_v47 }
 0x10a   : > { %v885_v24 = vmul.f32 %v4536_v45, %v811_v28  ;;  %v911_v26 = vpack.c.bf16 %v867_v50, %v866_v3  ;;  %v886_v29 = vmul.f32 %v4538_v21, %v812_v56  ;;  %v806_v35 = vmul.f32 %v733_v53, %v5612_v37  ;;  %v5622_v3 = vld [vmem:[#allocation48_spill] sm:$0xff] }
 0x10b   : > { %v887_v1 = vmul.f32 %v4540_v63, %v813_v14  ;;  %942 = vst [vmem:[#allocation2 + $0x90] sm:$0xff] %v910_v0  ;;  %v807_v38 = vmul.f32 %v733_v53, %v5613_v16  ;;  %v808_v41 = vmul.f32 %v733_v53, %v5614_v43  ;;  %v809_v49 = vmul.f32 %v733_v53, %v5615_v46 }
 0x10c   : > { %v920_v6 = vpack.c.bf16 %v885_v24, %v884_v5  ;;  %943 = vst [vmem:[#allocation2 + $0x98] sm:$0xff] %v911_v26  ;;  %v880_v30 = vmul.f32 %v4529_v17, %v806_v35  ;;  %v716_v31 = vmul.f32 %v4799_v25, %v715_v13  ;;  %3873 = vrsqrt.f32 %v4758_v10  ;;  %v5617_v13 = vld [vmem:[#allocation43_spill] sm:$0xff] }
 0x10d   : > { %v921_v58 = vpack.c.bf16 %v887_v1, %v886_v29  ;;  %v881_v48 = vmul.f32 %v4536_v45, %v807_v38  ;;  %v882_v59 = vmul.f32 %v4538_v21, %v808_v41  ;;  %v883_v7 = vmul.f32 %v4540_v63, %v809_v49 }
 0x10e   : > { %952 = vst [vmem:[#allocation2 + $0xe0] sm:$0xff] %v920_v6  ;;  %v717_v12 = vmul.f32 0.5, %v716_v31  ;;  %vm721_vm11 = vweird.f32 %v4799_v25  ;;  %vm720_vm12 = vweird.f32 %v4735_v32  ;;  %vm750_vm15 = vweird.f32 %v4758_v10 }
 0x10f   : > { %953 = vst [vmem:[#allocation2 + $0xe8] sm:$0xff] %v921_v58  ;;  %v918_v19 = vpack.c.bf16 %v881_v48, %v880_v30  ;;  %v919_v62 = vpack.c.bf16 %v883_v7, %v882_v59  ;;  %vm722_vm13 = vmor %vm720_vm12, %vm721_vm11 }
 0x110   : > { %v718_v42 = vsub.f32 1.5, %v717_v12 }
 0x111   : > { %950 = vst [vmem:[#allocation2 + $0xd0] sm:$0xff] %v918_v19 }
 0x112   : > { %951 = vst [vmem:[#allocation2 + $0xd8] sm:$0xff] %v919_v62  ;;  %v719_v60 = vmul.f32 %v4799_v25, %v718_v42  ;;  %v3874_v44 = vpop.eup %3873 }
 0x113   : > { %v745_v39 = vmul.f32 %v3874_v44, %v4758_v10  ;;  %vm751_vm14 = vweird.f32 %v3874_v44 }
 0x114   : > { %v723_v8 = vsel %vm722_vm13, %v4799_v25, %v719_v60  ;;  %vm752_vm0 = vmor %vm750_vm15, %vm751_vm14 }
 0x115   : > { %v802_v61 = vmul.f32 %v723_v8, %v5616_v40  ;;  %v803_v9 = vmul.f32 %v723_v8, %v5617_v13  ;;  %v804_v22 = vmul.f32 %v723_v8, %v5618_v18  ;;  %v805_v11 = vmul.f32 %v723_v8, %v5619_v23 }
 0x116   : > { %v746_v33 = vmul.f32 %v3874_v44, %v745_v39 }
 0x117   : > { %v876_v20 = vmul.f32 %v4529_v17, %v802_v61  ;;  %v877_v55 = vmul.f32 %v4536_v45, %v803_v9  ;;  %v878_v32 = vmul.f32 %v4538_v21, %v804_v22  ;;  %v879_v27 = vmul.f32 %v4540_v63, %v805_v11 }
 0x118   : > { %v747_v25 = vmul.f32 0.5, %v746_v33 }
 0x119   : > { %v916_v52 = vpack.c.bf16 %v877_v55, %v876_v20  ;;  %v917_v36 = vpack.c.bf16 %v879_v27, %v878_v32 }
 0x11a   : > { %v748_v47 = vsub.f32 1.5, %v747_v25 }
 0x11b   : > { %948 = vst [vmem:[#allocation2 + $0xc0] sm:$0xff] %v916_v52 }
 0x11c   : > { %949 = vst [vmem:[#allocation2 + $0xc8] sm:$0xff] %v917_v36  ;;  %v749_v57 = vmul.f32 %v3874_v44, %v748_v47 }
 0x11e   : > { %v753_v34 = vsel %vm752_vm0, %v3874_v44, %v749_v57 }
 0x11f   : > { %v814_v51 = vmul.f32 %v753_v34, %v5620_v2  ;;  %v815_v28 = vmul.f32 %v753_v34, %v5621_v15  ;;  %v816_v50 = vmul.f32 %v753_v34, %v5622_v3  ;;  %v817_v56 = vmul.f32 %v753_v34, %v5623_v54 }
 0x121   : > { %v888_v4 = vmul.f32 %v4529_v17, %v814_v51  ;;  %v889_v14 = vmul.f32 %v4536_v45, %v815_v28  ;;  %v890_v0 = vmul.f32 %v4538_v21, %v816_v50  ;;  %v891_v5 = vmul.f32 %v4540_v63, %v817_v56 }
 0x123   : > { %v922_v24 = vpack.c.bf16 %v889_v14, %v888_v4  ;;  %v923_v10 = vpack.c.bf16 %v891_v5, %v890_v0 }
 0x125   : > { %954 = vst [vmem:[#allocation2 + $0xf0] sm:$0xff] %v922_v24 }
 0x126   : > { %955 = vst [vmem:[#allocation2 + $0xf8] sm:$0xff] %v923_v10 }
 0x127 PF: > { %v3177_v17 = vld [vmem:[%s4246_s26 + $0xe0] sm:$0xf]  ;;  %v3645_v21 = vld [vmem:[%s4246_s26 + $0xec] sm:$0xf0]  ;;  %s4095_s24 = smov [#allocation10]   ;;  %s2800_s7 = sshll.u32 %s5506_s4, 4  ;;  %s2801_s7 = int_to_ptr.hbm [resolvable:$true] %s2800_s7 }
 0x128   : > { %v3305_v45 = vld [vmem:[%s4246_s26 + $0x1e0] sm:$0xf]  ;;  %v3178_v63 = vor.u32 %v3645_v21, %v3177_v17  ;;  %v3677_v53 = vld [vmem:[%s4246_s26 + $0x1ec] sm:$0xf0]  ;;  %s2798_s22 = sshll.u32 %s4095_s24, 4  ;;  %s4096_s23 = smov 256   ;;  %s2799_s22 = int_to_ptr.vmem [resolvable:$true] %s2798_s22 }
 0x129   : > { %v3433_v26 = vld [vmem:[%s4246_s26 + $0x2e0] sm:$0xf]  ;;  %v3709_v29 = vld [vmem:[%s4246_s26 + $0x2ec] sm:$0xf0]  ;;  %v3306_v1 = vor.u32 %v3677_v53, %v3305_v45  ;;  %s4097_s29 = smov 16   ;;  %s3743_s6 = sshll.u32 %s4079_s18, 4 }
 0x12a   : > { %v3434_v37 = vor.u32 %v3709_v29, %v3433_v26  ;;  %v3561_v35 = vld [vmem:[%s4246_s26 + $0x3e0] sm:$0xf]  ;;  %v3741_v6 = vld [vmem:[%s4246_s26 + $0x3ec] sm:$0xf0]  ;;  %1916 = vmatpush.bf16.msra.mxu0 %v3178_v63  ;;  %s2779_s9 = scalar_lea.hbm %s5505_s3, %s3743_s6  ;;  %s2780_s14 = sshll.u32 %s4253_s12, 4  ;;  %s2781_s14 = int_to_ptr.vmem [resolvable:$true] %s2780_s14 }
 0x12b   : > { %v3161_v16 = vld [vmem:[%s4246_s26 + $0xc0] sm:$0xf]  ;;  %v3562_v38 = vor.u32 %v3741_v6, %v3561_v35  ;;  %v3641_v43 = vld [vmem:[%s4246_s26 + $0xcc] sm:$0xf0]  ;;  %1965 = vmatpush.bf16.msra.mxu1 %v3306_v1  ;;  %s2782_s10 = sshll.u32 %s2779_s9, 4  ;;  %s2765_s18 = scalar_lea.sflag [#allocation5], %s4243_s0  ;;  %s2783_s10 = int_to_ptr.hbm [resolvable:$true] %s2782_s10 }
 0x12c   : > { %v3289_v41 = vld [vmem:[%s4246_s26 + $0x1c0] sm:$0xf]  ;;  %v3673_v46 = vld [vmem:[%s4246_s26 + $0x1cc] sm:$0xf0]  ;;  %2014 = vmatpush.bf16.msra.mxu2 %v3434_v37  ;;  %v3162_v49 = vor.u32 %v3641_v43, %v3161_v16  ;;  %s4007_s1 = sshra.s32 %s2783_s10, 4  ;;  %s4013_s24 = scalar_lea.hbm %s5505_s3, 512  ;;  %s4008_s1 = int_to_ptr.hbm [resolvable:$true] %s4007_s1 }
 0x12d   : > { %v3290_v58 = vor.u32 %v3673_v46, %v3289_v41  ;;  %v3417_v30 = vld [vmem:[%s4246_s26 + $0x2c0] sm:$0xf]  ;;  %v3705_v31 = vld [vmem:[%s4246_s26 + $0x2cc] sm:$0xf0]  ;;  %2063 = vmatpush.bf16.msra.mxu3 %v3562_v38  ;;  %s4009_s20 = scalar_lea.hbm %s4008_s1, 256  ;;  %p4014_p13 = scmp.lt.s32.totalorder %s4008_s1, %s5505_s3 }
 0x12e   : > { %v3545_v48 = vld [vmem:[%s4246_s26 + $0x3c0] sm:$0xf]  ;;  %v3418_v59 = vor.u32 %v3705_v31, %v3417_v30  ;;  %v3737_v7 = vld [vmem:[%s4246_s26 + $0x3cc] sm:$0xf0]  ;;  %1917 = vmatpush.bf16.msra.mxu0 %v3162_v49  ;;  %p4010_p6 = scmp.ne.s32.totalorder %s4008_s1, %s4009_s20  ;;  %p4015_p0 = scmp.lt.s32.totalorder %s4013_s24, %s4009_s20 }
 0x12f   : > { %v3145_v12 = vld [vmem:[%s4246_s26 + $0xa0] sm:$0xf]  ;;  %v3637_v19 = vld [vmem:[%s4246_s26 + $0xac] sm:$0xf0]  ;;  %v3546_v62 = vor.u32 %v3737_v7, %v3545_v48  ;;  %1966 = vmatpush.bf16.msra.mxu1 %v3290_v58 }
 0x130   : > { %v3273_v42 = vld [vmem:[%s4246_s26 + $0x1a0] sm:$0xf]  ;;  %v3669_v60 = vld [vmem:[%s4246_s26 + $0x1ac] sm:$0xf0]  ;;  %v3146_v8 = vor.u32 %v3637_v19, %v3145_v12  ;;  %2015 = vmatpush.bf16.msra.mxu2 %v3418_v59  ;;  %p4011_p11 = pnand %p4010_p6, %p4177_p8  ;;  %p4016_p2 = por %p4015_p0, %p4014_p13 }
 0x131   : > { %v3401_v44 = vld [vmem:[%s4246_s26 + $0x2a0] sm:$0xf]  ;;  %v3701_v39 = vld [vmem:[%s4246_s26 + $0x2ac] sm:$0xf0]  ;;  %v3274_v13 = vor.u32 %v3669_v60, %v3273_v42  ;;  %2064 = vmatpush.bf16.msra.mxu3 %v3546_v62 }
 0x132   : > { %v3529_v40 = vld [vmem:[%s4246_s26 + $0x3a0] sm:$0xf]  ;;  %v3733_v61 = vld [vmem:[%s4246_s26 + $0x3ac] sm:$0xf0]  ;;  %v3402_v9 = vor.u32 %v3701_v39, %v3401_v44  ;;  %1918 = vmatpush.bf16.msra.mxu0 %v3146_v8  ;;  %v2937_v44 = vld [vmem:[#allocation2] sm:$0xf]  ;;  %p4012_p12 = pneg %p4011_p11 }
 0x133   : > { %v3129_v18 = vld [vmem:[%s4246_s26 + $0x80] sm:$0xf]  ;;  %v3633_v22 = vld [vmem:[%s4246_s26 + $0x8c] sm:$0xf0]  ;;  %v3530_v11 = vor.u32 %v3733_v61, %v3529_v40  ;;  %1967 = vmatpush.bf16.msra.mxu1 %v3274_v13  ;;  %v3585_v8 = vld [vmem:[#allocation2 + $0xc] sm:$0xf0] }
 0x134   : > { %v3257_v23 = vld [vmem:[%s4246_s26 + $0x180] sm:$0xf]  ;;  %v3665_v33 = vld [vmem:[%s4246_s26 + $0x18c] sm:$0xf0]  ;;  %v3130_v25 = vor.u32 %v3633_v22, %v3129_v18  ;;  %2016 = vmatpush.bf16.msra.mxu2 %v3402_v9  ;;  %v3707_v61 = vld [vmem:[%s4246_s26 + $0x2e4] sm:$0xf]  ;;  %p4017_p7 = pnand %p4016_p2, %p4012_p12 }
 0x135   : > { %v3385_v20 = vld [vmem:[%s4246_s26 + $0x280] sm:$0xf]  ;;  %v3697_v55 = vld [vmem:[%s4246_s26 + $0x28c] sm:$0xf0]  ;;  %v3258_v52 = vor.u32 %v3665_v33, %v3257_v23  ;;  %2065 = vmatpush.bf16.msra.mxu3 %v3530_v11  ;;  %v3435_v13 = vld [vmem:[%s4246_s26 + $0x2f0] sm:$0xf0] }
 0x136   : > { %v3513_v32 = vld [vmem:[%s4246_s26 + $0x380] sm:$0xf]  ;;  %v3729_v27 = vld [vmem:[%s4246_s26 + $0x38c] sm:$0xf0]  ;;  %v3386_v36 = vor.u32 %v3697_v55, %v3385_v20  ;;  %1919 = vmatpush.bf16.msra.mxu0 %v3130_v25  ;;  %v2945_v18 = vld [vmem:[#allocation2 + $0x8] sm:$0xf]  ;;  %v3438_v25 = vor.u32 %v3707_v61, %v3435_v13 }
 0x137   : > { %v3113_v47 = vld [vmem:[%s4246_s26 + $0x60] sm:$0xf]  ;;  %v3629_v57 = vld [vmem:[%s4246_s26 + $0x6c] sm:$0xf0]  ;;  %v3514_v2 = vor.u32 %v3729_v27, %v3513_v32  ;;  %1968 = vmatpush.bf16.msra.mxu1 %v3258_v52  ;;  %v3739_v22 = vld [vmem:[%s4246_s26 + $0x3e4] sm:$0xf] }
 0x138   : > { %v3241_v34 = vld [vmem:[%s4246_s26 + $0x160] sm:$0xf]  ;;  %v3661_v51 = vld [vmem:[%s4246_s26 + $0x16c] sm:$0xf0]  ;;  %v3114_v54 = vor.u32 %v3629_v57, %v3113_v47  ;;  %2017 = vmatpush.bf16.msra.mxu2 %v3386_v36  ;;  %v3563_v23 = vld [vmem:[%s4246_s26 + $0x3f0] sm:$0xf0]  ;;  %v4944_v57 = vor.u32 %v3585_v8, %v2937_v44 }
 0x139   : > { %v3369_v15 = vld [vmem:[%s4246_s26 + $0x260] sm:$0xf]  ;;  %v3693_v28 = vld [vmem:[%s4246_s26 + $0x26c] sm:$0xf0]  ;;  %v3242_v56 = vor.u32 %v3661_v51, %v3241_v34  ;;  %2066 = vmatpush.bf16.msra.mxu3 %v3514_v2  ;;  %v3586_v20 = vld [vmem:[#allocation2 + $0x14] sm:$0xf0]  ;;  %v3566_v34 = vor.u32 %v3739_v22, %v3563_v23 }
 0x13a   : > { %v3497_v3 = vld [vmem:[%s4246_s26 + $0x360] sm:$0xf]  ;;  %v3725_v50 = vld [vmem:[%s4246_s26 + $0x36c] sm:$0xf0]  ;;  %v3370_v4 = vor.u32 %v3693_v28, %v3369_v15  ;;  %1920 = vmatpush.bf16.msra.mxu0 %v3114_v54  ;;  %v3584_v55 = vld [vmem:[#allocation2 + $0xc] sm:$0xf] }
 0x13b   : > { %v3097_v14 = vld [vmem:[%s4246_s26 + $0x40] sm:$0xf]  ;;  %v3625_v0 = vld [vmem:[%s4246_s26 + $0x4c] sm:$0xf0]  ;;  %v3498_v24 = vor.u32 %v3725_v50, %v3497_v3  ;;  %1969 = vmatpush.bf16.msra.mxu1 %v3242_v56  ;;  %v2947_v32 = vld [vmem:[#allocation2 + $0x18] sm:$0xf0]  ;;  %v4951_v3 = vor.u32 %v3586_v20, %v2945_v18 }
 0x13c   : > { %v3225_v5 = vld [vmem:[%s4246_s26 + $0x140] sm:$0xf]  ;;  %v3657_v10 = vld [vmem:[%s4246_s26 + $0x14c] sm:$0xf0]  ;;  %v3098_v53 = vor.u32 %v3625_v0, %v3097_v14  ;;  %2018 = vmatpush.bf16.msra.mxu2 %v3370_v4  ;;  %v3643_v52 = vld [vmem:[%s4246_s26 + $0xe4] sm:$0xf]  ;;  %v4955_v56 = vor.u32 %v3584_v55, %v2947_v32 }
 0x13d   : > { %v3353_v17 = vld [vmem:[%s4246_s26 + $0x240] sm:$0xf]  ;;  %v3689_v21 = vld [vmem:[%s4246_s26 + $0x24c] sm:$0xf0]  ;;  %v3226_v26 = vor.u32 %v3657_v10, %v3225_v5  ;;  %2067 = vmatpush.bf16.msra.mxu3 %v3498_v24  ;;  %v3179_v36 = vld [vmem:[%s4246_s26 + $0xf0] sm:$0xf0] }
 0x13e   : > { %v3481_v45 = vld [vmem:[%s4246_s26 + $0x340] sm:$0xf]  ;;  %v3721_v63 = vld [vmem:[%s4246_s26 + $0x34c] sm:$0xf0]  ;;  %v3354_v29 = vor.u32 %v3689_v21, %v3353_v17  ;;  %1921 = vmatpush.bf16.msra.mxu0 %v3098_v53  ;;  %v3675_v47 = vld [vmem:[%s4246_s26 + $0x1e4] sm:$0xf]  ;;  %v3182_v4 = vor.u32 %v3643_v52, %v3179_v36 }
 0x13f   : > { %v3081_v1 = vld [vmem:[%s4246_s26 + $0x20] sm:$0xf]  ;;  %v3621_v37 = vld [vmem:[%s4246_s26 + $0x2c] sm:$0xf0]  ;;  %v3482_v6 = vor.u32 %v3721_v63, %v3481_v45  ;;  %1970 = vmatpush.bf16.msra.mxu1 %v3226_v26  ;;  %v3307_v2 = vld [vmem:[%s4246_s26 + $0x1f0] sm:$0xf0] }
 0x140   : > { %v3209_v35 = vld [vmem:[%s4246_s26 + $0x120] sm:$0xf]  ;;  %v3653_v16 = vld [vmem:[%s4246_s26 + $0x12c] sm:$0xf0]  ;;  %v3082_v58 = vor.u32 %v3621_v37, %v3081_v1  ;;  %2019 = vmatpush.bf16.msra.mxu2 %v3354_v29  ;;  %v3703_v51 = vld [vmem:[%s4246_s26 + $0x2c4] sm:$0xf]  ;;  %v3310_v14 = vor.u32 %v3675_v47, %v3307_v2 }
 0x141   : > { %v3337_v38 = vld [vmem:[%s4246_s26 + $0x220] sm:$0xf]  ;;  %v3685_v43 = vld [vmem:[%s4246_s26 + $0x22c] sm:$0xf0]  ;;  %v3210_v59 = vor.u32 %v3653_v16, %v3209_v35  ;;  %2068 = vmatpush.bf16.msra.mxu3 %v3482_v6  ;;  %v3419_v15 = vld [vmem:[%s4246_s26 + $0x2d0] sm:$0xf0] }
 0x142   : > { %v3465_v41 = vld [vmem:[%s4246_s26 + $0x320] sm:$0xf]  ;;  %v3717_v46 = vld [vmem:[%s4246_s26 + $0x32c] sm:$0xf0]  ;;  %v3338_v7 = vor.u32 %v3685_v43, %v3337_v38  ;;  %1922 = vmatpush.bf16.msra.mxu0 %v3082_v58  ;;  %5625 = vst [vmem:[#allocation51_spill] sm:$0xff] %v4951_v3  ;;  %v3422_v0 = vor.u32 %v3703_v51, %v3419_v15 }
 0x143   : > { %v3065_v49 = vld [vmem:[%s4246_s26] sm:$0xf]  ;;  %v3617_v30 = vld [vmem:[%s4246_s26 + $0xc] sm:$0xf0]  ;;  %v3466_v42 = vor.u32 %v3717_v46, %v3465_v41  ;;  %1971 = vmatpush.bf16.msra.mxu1 %v3210_v59  ;;  %v3735_v50 = vld [vmem:[%s4246_s26 + $0x3c4] sm:$0xf] }
 0x144   : > { %v3193_v31 = vld [vmem:[%s4246_s26 + $0x100] sm:$0xf]  ;;  %v3649_v48 = vld [vmem:[%s4246_s26 + $0x10c] sm:$0xf0]  ;;  %v3066_v9 = vor.u32 %v3617_v30, %v3065_v49  ;;  %2020 = vmatpush.bf16.msra.mxu2 %v3338_v7  ;;  %v3547_v54 = vld [vmem:[%s4246_s26 + $0x3d0] sm:$0xf0] }
 0x145   : > { %v3321_v12 = vld [vmem:[%s4246_s26 + $0x200] sm:$0xf]  ;;  %v3681_v19 = vld [vmem:[%s4246_s26 + $0x20c] sm:$0xf0]  ;;  %v3194_v11 = vor.u32 %v3649_v48, %v3193_v31  ;;  %2069 = vmatpush.bf16.msra.mxu3 %v3466_v42  ;;  %5626 = vst [vmem:[#allocation52_spill] sm:$0xff] %v4955_v56  ;;  %v3550_v10 = vor.u32 %v3735_v50, %v3547_v54 }
 0x146   : > { %v3449_v62 = vld [vmem:[%s4246_s26 + $0x300] sm:$0xf]  ;;  %v3713_v60 = vld [vmem:[%s4246_s26 + $0x30c] sm:$0xf0]  ;;  %v3322_v33 = vor.u32 %v3681_v19, %v3321_v12  ;;  %1923 = vmatpush.bf16.msra.mxu0 %v3066_v9  ;;  %v3639_v5 = vld [vmem:[%s4246_s26 + $0xc4] sm:$0xf] }
 0x147   : > { %v3583_v39 = vld [vmem:[#allocation2 + $0x4] sm:$0xf]  ;;  %v2939_v40 = vld [vmem:[#allocation2 + $0x10] sm:$0xf0]  ;;  %v3450_v27 = vor.u32 %v3713_v60, %v3449_v62  ;;  %1972 = vmatpush.bf16.msra.mxu1 %v3194_v11  ;;  %v3163_v24 = vld [vmem:[%s4246_s26 + $0xd0] sm:$0xf0] }
 0x148   : > { %v4949_v28 = vor.u32 %v3583_v39, %v2939_v40  ;;  %2021 = vmatpush.bf16.msra.mxu2 %v3322_v33  ;;  %v3671_v17 = vld [vmem:[%s4246_s26 + $0x1c4] sm:$0xf]  ;;  %v3291_v21 = vld [vmem:[%s4246_s26 + $0x1d0] sm:$0xf0]  ;;  %v3166_v45 = vor.u32 %v3639_v5, %v3163_v24  ;;  %v2953_v49 = vld [vmem:[#allocation2 + $0x20] sm:$0xf] }
 0x149   : > { %2070 = vmatpush.bf16.msra.mxu3 %v3450_v27  ;;  %1924 = vmatmul.bf16.vlgmr.msra.gmra.mxu0 %v4944_v57  ;;  %v3699_v63 = vld [vmem:[%s4246_s26 + $0x2a4] sm:$0xf]  ;;  %v3403_v53 = vld [vmem:[%s4246_s26 + $0x2b0] sm:$0xf0]  ;;  %v3294_v29 = vor.u32 %v3671_v17, %v3291_v21  ;;  %v3589_v58 = vld [vmem:[#allocation2 + $0x2c] sm:$0xf0] }
 0x14a   : > { %5624 = vst [vmem:[#allocation50_spill] sm:$0xff] %v4949_v28  ;;  %1973 = vmatmul.bf16.vlgmr.msra.gmra.mxu1 %v4949_v28  ;;  %2112 = vmatpush.bf16.msrb.mxu0 %v3182_v4  ;;  %v3731_v26 = vld [vmem:[%s4246_s26 + $0x3a4] sm:$0xf]  ;;  %v3406_v1 = vor.u32 %v3699_v63, %v3403_v53  ;;  %v3531_v37 = vld [vmem:[%s4246_s26 + $0x3b0] sm:$0xf0]  ;;  %v4973_v19 = vor.u32 %v3589_v58, %v2953_v49 }
 0x14b   : > { %2022 = vmatmul.bf16.vlgmr.msra.gmra.mxu2 %v4951_v3  ;;  %2161 = vmatpush.bf16.msrb.mxu1 %v3310_v14  ;;  %v3635_v35 = vld [vmem:[%s4246_s26 + $0xa4] sm:$0xf]  ;;  %v3147_v6 = vld [vmem:[%s4246_s26 + $0xb0] sm:$0xf0]  ;;  %v3534_v16 = vor.u32 %v3731_v26, %v3531_v37  ;;  %v3587_v30 = vld [vmem:[#allocation2 + $0x24] sm:$0xf] }
 0x14c   : > { %2210 = vmatpush.bf16.msrb.mxu2 %v3438_v25  ;;  %2071 = vmatmul.bf16.vlgmr.msra.gmra.mxu3 %v4955_v56  ;;  %v3667_v38 = vld [vmem:[%s4246_s26 + $0x1a4] sm:$0xf]  ;;  %v3275_v43 = vld [vmem:[%s4246_s26 + $0x1b0] sm:$0xf0]  ;;  %v3150_v41 = vor.u32 %v3635_v35, %v3147_v6  ;;  %v2955_v31 = vld [vmem:[#allocation2 + $0x30] sm:$0xf0] }
 0x14d   : > { %2259 = vmatpush.bf16.msrb.mxu3 %v3566_v34  ;;  %v3278_v46 = vor.u32 %v3667_v38, %v3275_v43  ;;  %v2961_v48 = vld [vmem:[#allocation2 + $0x28] sm:$0xf]  ;;  %v3590_v59 = vld [vmem:[#allocation2 + $0x34] sm:$0xf0]  ;;  %v3588_v7 = vld [vmem:[#allocation2 + $0x2c] sm:$0xf]  ;;  %v4975_v62 = vor.u32 %v3587_v30, %v2955_v31 }
 0x14e   : > { %2113 = vmatpush.bf16.msrb.mxu0 %v3166_v45  ;;  %v2963_v12 = vld [vmem:[#allocation2 + $0x38] sm:$0xf0]  ;;  %v4977_v42 = vor.u32 %v3590_v59, %v2961_v48  ;;  %v3695_v44 = vld [vmem:[%s4246_s26 + $0x284] sm:$0xf]  ;;  %v3387_v8 = vld [vmem:[%s4246_s26 + $0x290] sm:$0xf0] }
 0x14f   : > { %2162 = vmatpush.bf16.msrb.mxu1 %v3294_v29  ;;  %v4979_v60 = vor.u32 %v3588_v7, %v2963_v12  ;;  %v3727_v39 = vld [vmem:[%s4246_s26 + $0x384] sm:$0xf]  ;;  %v3390_v40 = vor.u32 %v3695_v44, %v3387_v8  ;;  %v3515_v61 = vld [vmem:[%s4246_s26 + $0x390] sm:$0xf0]  ;;  %v2969_v20 = vld [vmem:[#allocation2 + $0x40] sm:$0xf] }
 0x150   : > { %2211 = vmatpush.bf16.msrb.mxu2 %v3422_v0  ;;  %v3631_v13 = vld [vmem:[%s4246_s26 + $0x84] sm:$0xf]  ;;  %v3131_v9 = vld [vmem:[%s4246_s26 + $0x90] sm:$0xf0]  ;;  %v3518_v18 = vor.u32 %v3727_v39, %v3515_v61  ;;  %v3593_v55 = vld [vmem:[#allocation2 + $0x4c] sm:$0xf0] }
 0x151   : > { %2260 = vmatpush.bf16.msrb.mxu3 %v3550_v10  ;;  %v3134_v22 = vor.u32 %v3631_v13, %v3131_v9  ;;  %v3663_v23 = vld [vmem:[%s4246_s26 + $0x184] sm:$0xf]  ;;  %v3259_v11 = vld [vmem:[%s4246_s26 + $0x190] sm:$0xf0]  ;;  %v3591_v32 = vld [vmem:[#allocation2 + $0x44] sm:$0xf]  ;;  %v4993_v34 = vor.u32 %v3593_v55, %v2969_v20 }
 0x152   : > { %2114 = vmatpush.bf16.msrb.mxu0 %v3150_v41  ;;  %v3262_v33 = vor.u32 %v3663_v23, %v3259_v11  ;;  %v2971_v27 = vld [vmem:[#allocation2 + $0x50] sm:$0xf0]  ;;  %v2977_v25 = vld [vmem:[#allocation2 + $0x48] sm:$0xf]  ;;  %v3594_v52 = vld [vmem:[#allocation2 + $0x54] sm:$0xf0] }
 0x153   : > { %2163 = vmatpush.bf16.msrb.mxu1 %v3278_v46  ;;  %v3592_v36 = vld [vmem:[#allocation2 + $0x4c] sm:$0xf]  ;;  %v2979_v47 = vld [vmem:[#allocation2 + $0x58] sm:$0xf0]  ;;  %v4995_v2 = vor.u32 %v3591_v32, %v2971_v27  ;;  %v4997_v51 = vor.u32 %v3594_v52, %v2977_v25  ;;  %v3691_v50 = vld [vmem:[%s4246_s26 + $0x264] sm:$0xf] }
 0x154   : > { %2212 = vmatpush.bf16.msrb.mxu2 %v3406_v1  ;;  %v4999_v15 = vor.u32 %v3592_v36, %v2979_v47  ;;  %v3371_v54 = vld [vmem:[%s4246_s26 + $0x270] sm:$0xf0]  ;;  %v3723_v4 = vld [vmem:[%s4246_s26 + $0x364] sm:$0xf]  ;;  %v2985_v53 = vld [vmem:[#allocation2 + $0x60] sm:$0xf] }
 0x155   : > { %2261 = vmatpush.bf16.msrb.mxu3 %v3534_v16  ;;  %v3374_v14 = vor.u32 %v3691_v50, %v3371_v54  ;;  %v3499_v0 = vld [vmem:[%s4246_s26 + $0x370] sm:$0xf0]  ;;  %v3627_v5 = vld [vmem:[%s4246_s26 + $0x64] sm:$0xf]  ;;  %v3597_v26 = vld [vmem:[#allocation2 + $0x6c] sm:$0xf0] }
 0x156   : > { %2115 = vmatpush.bf16.msrb.mxu0 %v3134_v22  ;;  %v3115_v24 = vld [vmem:[%s4246_s26 + $0x70] sm:$0xf0]  ;;  %v3502_v10 = vor.u32 %v3723_v4, %v3499_v0  ;;  %v3659_v21 = vld [vmem:[%s4246_s26 + $0x164] sm:$0xf]  ;;  %v3595_v29 = vld [vmem:[#allocation2 + $0x64] sm:$0xf]  ;;  %v5013_v38 = vor.u32 %v3597_v26, %v2985_v53 }
 0x157   : > { %2164 = vmatpush.bf16.msrb.mxu1 %v3262_v33  ;;  %v3118_v17 = vor.u32 %v3627_v5, %v3115_v24  ;;  %v3243_v45 = vld [vmem:[%s4246_s26 + $0x170] sm:$0xf0]  ;;  %v2987_v1 = vld [vmem:[#allocation2 + $0x70] sm:$0xf0]  ;;  %v2993_v37 = vld [vmem:[#allocation2 + $0x68] sm:$0xf] }
 0x158   : > { %2213 = vmatpush.bf16.msrb.mxu2 %v3390_v40  ;;  %v3246_v63 = vor.u32 %v3659_v21, %v3243_v45  ;;  %v3598_v35 = vld [vmem:[#allocation2 + $0x74] sm:$0xf0]  ;;  %v3596_v6 = vld [vmem:[#allocation2 + $0x6c] sm:$0xf]  ;;  %v2995_v16 = vld [vmem:[#allocation2 + $0x78] sm:$0xf0]  ;;  %v5015_v43 = vor.u32 %v3595_v29, %v2987_v1 }
 0x159   : > { %1929 = vmatmul.bf16.gmra.mxu0 %v4973_v19  ;;  %2262 = vmatpush.bf16.msrb.mxu3 %v3518_v18  ;;  %v5017_v41 = vor.u32 %v3598_v35, %v2993_v37  ;;  %v5019_v46 = vor.u32 %v3596_v6, %v2995_v16  ;;  %v3687_v49 = vld [vmem:[%s4246_s26 + $0x244] sm:$0xf]  ;;  %v3355_v58 = vld [vmem:[%s4246_s26 + $0x250] sm:$0xf0]  ;;  %v3001_v61 = vld [vmem:[#allocation2 + $0x80] sm:$0xf] }
 0x15a   : > { %1978 = vmatmul.bf16.gmra.mxu1 %v4975_v62  ;;  %2116 = vmatpush.bf16.msrb.mxu0 %v3118_v17  ;;  %v3719_v30 = vld [vmem:[%s4246_s26 + $0x344] sm:$0xf]  ;;  %v3358_v31 = vor.u32 %v3687_v49, %v3355_v58  ;;  %v3483_v48 = vld [vmem:[%s4246_s26 + $0x350] sm:$0xf0]  ;;  %v3601_v13 = vld [vmem:[#allocation2 + $0x8c] sm:$0xf0] }
 0x15b   : > { %2027 = vmatmul.bf16.gmra.mxu2 %v4977_v42  ;;  %2165 = vmatpush.bf16.msrb.mxu1 %v3246_v63  ;;  %v3623_v59 = vld [vmem:[%s4246_s26 + $0x44] sm:$0xf]  ;;  %v3099_v7 = vld [vmem:[%s4246_s26 + $0x50] sm:$0xf0]  ;;  %v3486_v12 = vor.u32 %v3719_v30, %v3483_v48  ;;  %v3599_v9 = vld [vmem:[#allocation2 + $0x84] sm:$0xf]  ;;  %v5033_v20 = vor.u32 %v3601_v13, %v3001_v61 }
 0x15c   : > { %2076 = vmatmul.bf16.gmra.mxu3 %v4979_v60  ;;  %2214 = vmatpush.bf16.msrb.mxu2 %v3374_v14  ;;  %v3102_v44 = vor.u32 %v3623_v59, %v3099_v7  ;;  %v3655_v8 = vld [vmem:[%s4246_s26 + $0x144] sm:$0xf]  ;;  %v3227_v39 = vld [vmem:[%s4246_s26 + $0x150] sm:$0xf0]  ;;  %v3003_v18 = vld [vmem:[#allocation2 + $0x90] sm:$0xf0] }
 0x15d   : > { %2263 = vmatpush.bf16.msrb.mxu3 %v3502_v10  ;;  %v3230_v40 = vor.u32 %v3655_v8, %v3227_v39  ;;  %v3009_v22 = vld [vmem:[#allocation2 + $0x88] sm:$0xf]  ;;  %v3602_v23 = vld [vmem:[#allocation2 + $0x94] sm:$0xf0]  ;;  %v3600_v11 = vld [vmem:[#allocation2 + $0x8c] sm:$0xf]  ;;  %v5035_v55 = vor.u32 %v3599_v9, %v3003_v18 }
 0x15e   : > { %2117 = vmatpush.bf16.msrb.mxu0 %v3102_v44  ;;  %v3011_v33 = vld [vmem:[#allocation2 + $0x98] sm:$0xf0]  ;;  %v5037_v32 = vor.u32 %v3602_v23, %v3009_v22  ;;  %v3683_v25 = vld [vmem:[%s4246_s26 + $0x224] sm:$0xf]  ;;  %v3339_v52 = vld [vmem:[%s4246_s26 + $0x230] sm:$0xf0] }
 0x15f   : > { %2166 = vmatpush.bf16.msrb.mxu1 %v3230_v40  ;;  %v5039_v27 = vor.u32 %v3600_v11, %v3011_v33  ;;  %v3715_v36 = vld [vmem:[%s4246_s26 + $0x324] sm:$0xf]  ;;  %v3342_v47 = vor.u32 %v3683_v25, %v3339_v52  ;;  %v3467_v50 = vld [vmem:[%s4246_s26 + $0x330] sm:$0xf0]  ;;  %v3017_v17 = vld [vmem:[#allocation2 + $0xa0] sm:$0xf] }
 0x160   : > { %2215 = vmatpush.bf16.msrb.mxu2 %v3358_v31  ;;  %v3619_v54 = vld [vmem:[%s4246_s26 + $0x24] sm:$0xf]  ;;  %v3083_v4 = vld [vmem:[%s4246_s26 + $0x30] sm:$0xf0]  ;;  %v3470_v14 = vor.u32 %v3715_v36, %v3467_v50  ;;  %v3605_v21 = vld [vmem:[#allocation2 + $0xac] sm:$0xf0] }
 0x161   : > { %2264 = vmatpush.bf16.msrb.mxu3 %v3486_v12  ;;  %v3086_v0 = vor.u32 %v3619_v54, %v3083_v4  ;;  %v3651_v5 = vld [vmem:[%s4246_s26 + $0x124] sm:$0xf]  ;;  %v3211_v24 = vld [vmem:[%s4246_s26 + $0x130] sm:$0xf0]  ;;  %v3603_v45 = vld [vmem:[#allocation2 + $0xa4] sm:$0xf]  ;;  %v5053_v37 = vor.u32 %v3605_v21, %v3017_v17 }
 0x162   : > { %v3214_v10 = vor.u32 %v3651_v5, %v3211_v24  ;;  %v3019_v63 = vld [vmem:[#allocation2 + $0xb0] sm:$0xf0]  ;;  %v3025_v53 = vld [vmem:[#allocation2 + $0xa8] sm:$0xf]  ;;  %v3606_v26 = vld [vmem:[#allocation2 + $0xb4] sm:$0xf0] }
 0x163   : > { %2118 = vmatpush.bf16.msrb.mxu0 %v3086_v0  ;;  %v3604_v29 = vld [vmem:[#allocation2 + $0xac] sm:$0xf]  ;;  %v3027_v1 = vld [vmem:[#allocation2 + $0xb8] sm:$0xf0]  ;;  %v5055_v35 = vor.u32 %v3603_v45, %v3019_v63  ;;  %v5057_v6 = vor.u32 %v3606_v26, %v3025_v53  ;;  %v3679_v49 = vld [vmem:[%s4246_s26 + $0x204] sm:$0xf] }
 0x164   : > { %2216 = vmatpush.bf16.msrb.mxu2 %v3342_v47  ;;  %2167 = vmatpush.bf16.msrb.mxu1 %v3214_v10  ;;  %v5059_v16 = vor.u32 %v3604_v29, %v3027_v1  ;;  %v3323_v58 = vld [vmem:[%s4246_s26 + $0x210] sm:$0xf0]  ;;  %v3711_v30 = vld [vmem:[%s4246_s26 + $0x304] sm:$0xf]  ;;  %v3033_v61 = vld [vmem:[#allocation2 + $0xc0] sm:$0xf] }
 0x165   : > { %2265 = vmatpush.bf16.msrb.mxu3 %v3470_v14  ;;  %v3326_v31 = vor.u32 %v3679_v49, %v3323_v58  ;;  %v3451_v48 = vld [vmem:[%s4246_s26 + $0x310] sm:$0xf0]  ;;  %v3615_v59 = vld [vmem:[%s4246_s26 + $0x4] sm:$0xf]  ;;  %v3609_v13 = vld [vmem:[#allocation2 + $0xcc] sm:$0xf0] }
 0x166   : > { %v3067_v7 = vld [vmem:[%s4246_s26 + $0x10] sm:$0xf0]  ;;  %v3454_v12 = vor.u32 %v3711_v30, %v3451_v48  ;;  %v3647_v8 = vld [vmem:[%s4246_s26 + $0x104] sm:$0xf]  ;;  %v3607_v9 = vld [vmem:[#allocation2 + $0xc4] sm:$0xf]  ;;  %v5073_v25 = vor.u32 %v3609_v13, %v3033_v61 }
 0x167   : > { %v3070_v44 = vor.u32 %v3615_v59, %v3067_v7  ;;  %v3195_v39 = vld [vmem:[%s4246_s26 + $0x110] sm:$0xf0]  ;;  %v3035_v18 = vld [vmem:[#allocation2 + $0xd0] sm:$0xf0]  ;;  %v3041_v22 = vld [vmem:[#allocation2 + $0xc8] sm:$0xf] }
 0x168   : > { %2217 = vmatpush.bf16.msrb.mxu2 %v3326_v31  ;;  %v3198_v40 = vor.u32 %v3647_v8, %v3195_v39  ;;  %v3610_v23 = vld [vmem:[#allocation2 + $0xd4] sm:$0xf0]  ;;  %v3608_v11 = vld [vmem:[#allocation2 + $0xcc] sm:$0xf]  ;;  %v3043_v33 = vld [vmem:[#allocation2 + $0xd8] sm:$0xf0]  ;;  %v5075_v52 = vor.u32 %v3607_v9, %v3035_v18 }
 0x169   : > { %1934 = vmatmul.bf16.gmra.mxu0 %v4993_v34  ;;  %2266 = vmatpush.bf16.msrb.mxu3 %v3454_v12  ;;  %v5077_v36 = vor.u32 %v3610_v23, %v3041_v22  ;;  %v5079_v47 = vor.u32 %v3608_v11, %v3043_v33  ;;  %v3441_v50 = vld [vmem:[%s4246_s26 + $0x2e8] sm:$0xf]  ;;  %v3710_v54 = vld [vmem:[%s4246_s26 + $0x2f4] sm:$0xf0]  ;;  %v3049_v63 = vld [vmem:[#allocation2 + $0xe0] sm:$0xf] }
 0x16a   : > { %1983 = vmatmul.bf16.gmra.mxu1 %v4995_v2  ;;  %2119 = vmatpush.bf16.msrb.mxu0 %v3070_v44  ;;  %v3569_v4 = vld [vmem:[%s4246_s26 + $0x3e8] sm:$0xf]  ;;  %v3442_v14 = vor.u32 %v3710_v54, %v3441_v50  ;;  %v3742_v0 = vld [vmem:[%s4246_s26 + $0x3f4] sm:$0xf0]  ;;  %v3613_v53 = vld [vmem:[#allocation2 + $0xec] sm:$0xf0] }
 0x16b   : > { %2032 = vmatmul.bf16.gmra.mxu2 %v4997_v51  ;;  %2168 = vmatpush.bf16.msrb.mxu1 %v3198_v40  ;;  %v3570_v5 = vor.u32 %v3742_v0, %v3569_v4  ;;  %v3185_v24 = vld [vmem:[%s4246_s26 + $0xe8] sm:$0xf]  ;;  %v3646_v10 = vld [vmem:[%s4246_s26 + $0xf4] sm:$0xf0]  ;;  %v3611_v26 = vld [vmem:[#allocation2 + $0xe4] sm:$0xf]  ;;  %v5093_v48 = vor.u32 %v3613_v53, %v3049_v63 }
 0x16c   : > { %2081 = vmatmul.bf16.gmra.mxu3 %v4999_v15  ;;  %2406 = vmatpush.bf16.msra.mxu2 %v3442_v14  ;;  %v3313_v17 = vld [vmem:[%s4246_s26 + $0x1e8] sm:$0xf]  ;;  %v3186_v21 = vor.u32 %v3646_v10, %v3185_v24  ;;  %v3678_v45 = vld [vmem:[%s4246_s26 + $0x1f4] sm:$0xf0]  ;;  %v3051_v1 = vld [vmem:[#allocation2 + $0xf0] sm:$0xf0] }
 0x16d   : > { %2455 = vmatpush.bf16.msra.mxu3 %v3570_v5  ;;  %v3314_v29 = vor.u32 %v3678_v45, %v3313_v17  ;;  %v3057_v49 = vld [vmem:[#allocation2 + $0xe8] sm:$0xf]  ;;  %v3614_v58 = vld [vmem:[#allocation2 + $0xf4] sm:$0xf0]  ;;  %v3612_v30 = vld [vmem:[#allocation2 + $0xec] sm:$0xf]  ;;  %v5095_v59 = vor.u32 %v3611_v26, %v3051_v1 }
 0x16e   : > { %2308 = vmatpush.bf16.msra.mxu0 %v3186_v21  ;;  %v3059_v31 = vld [vmem:[#allocation2 + $0xf8] sm:$0xf0]  ;;  %v5097_v7 = vor.u32 %v3614_v58, %v3057_v49  ;;  %v3425_v44 = vld [vmem:[%s4246_s26 + $0x2c8] sm:$0xf] }
 0x16f   : > { %2357 = vmatpush.bf16.msra.mxu1 %v3314_v29  ;;  %v5099_v12 = vor.u32 %v3612_v30, %v3059_v31  ;;  %v3706_v8 = vld [vmem:[%s4246_s26 + $0x2d4] sm:$0xf0]  ;;  %v3553_v39 = vld [vmem:[%s4246_s26 + $0x3c8] sm:$0xf] }
 0x170   : > { %v3426_v40 = vor.u32 %v3706_v8, %v3425_v44  ;;  %v3738_v61 = vld [vmem:[%s4246_s26 + $0x3d4] sm:$0xf0]  ;;  %v3169_v9 = vld [vmem:[%s4246_s26 + $0xc8] sm:$0xf] }
 0x171   : > { %5627 = vst [vmem:[#allocation53_spill] sm:$0xff] %v5099_v12  ;;  %v3554_v13 = vor.u32 %v3738_v61, %v3553_v39  ;;  %v3642_v18 = vld [vmem:[%s4246_s26 + $0xd4] sm:$0xf0]  ;;  %v3297_v22 = vld [vmem:[%s4246_s26 + $0x1c8] sm:$0xf] }
 0x172   : > { %2407 = vmatpush.bf16.msra.mxu2 %v3426_v40  ;;  %v3170_v23 = vor.u32 %v3642_v18, %v3169_v9  ;;  %v3674_v11 = vld [vmem:[%s4246_s26 + $0x1d4] sm:$0xf0]  ;;  %v3409_v14 = vld [vmem:[%s4246_s26 + $0x2a8] sm:$0xf] }
 0x173   : > { %2456 = vmatpush.bf16.msra.mxu3 %v3554_v13  ;;  %v3298_v33 = vor.u32 %v3674_v11, %v3297_v22  ;;  %v3702_v0 = vld [vmem:[%s4246_s26 + $0x2b4] sm:$0xf0]  ;;  %v3537_v5 = vld [vmem:[%s4246_s26 + $0x3a8] sm:$0xf] }
 0x174   : > { %2309 = vmatpush.bf16.msra.mxu0 %v3170_v23  ;;  %v3410_v24 = vor.u32 %v3702_v0, %v3409_v14  ;;  %v3734_v10 = vld [vmem:[%s4246_s26 + $0x3b4] sm:$0xf0]  ;;  %v3153_v49 = vld [vmem:[%s4246_s26 + $0xa8] sm:$0xf] }
 0x175   : > { %2358 = vmatpush.bf16.msra.mxu1 %v3298_v33  ;;  %v3538_v21 = vor.u32 %v3734_v10, %v3537_v5  ;;  %v3638_v58 = vld [vmem:[%s4246_s26 + $0xb4] sm:$0xf0]  ;;  %v3281_v30 = vld [vmem:[%s4246_s26 + $0x1a8] sm:$0xf] }
 0x176   : > { %2408 = vmatpush.bf16.msra.mxu2 %v3410_v24  ;;  %v3154_v31 = vor.u32 %v3638_v58, %v3153_v49  ;;  %v3670_v44 = vld [vmem:[%s4246_s26 + $0x1b4] sm:$0xf0]  ;;  %v3393_v23 = vld [vmem:[%s4246_s26 + $0x288] sm:$0xf] }
 0x177   : > { %2457 = vmatpush.bf16.msra.mxu3 %v3538_v21  ;;  %v3282_v8 = vor.u32 %v3670_v44, %v3281_v30  ;;  %v3698_v11 = vld [vmem:[%s4246_s26 + $0x294] sm:$0xf0]  ;;  %v3521_v33 = vld [vmem:[%s4246_s26 + $0x388] sm:$0xf] }
 0x178   : > { %2310 = vmatpush.bf16.msra.mxu0 %v3154_v31  ;;  %3756 = dma.vmem_to_hbm [thread:$0]  (%p126_p5), %s2799_s22, 4096, %s2801_s7, [#allocation11], %s4096_s23, %s4096_s23, %s4097_s29  }
 0x179   : > { %1939 = vmatmul.bf16.gmra.mxu0 %v5013_v38  ;;  %2359 = vmatpush.bf16.msra.mxu1 %v3282_v8 }
 0x17a   : > { %1988 = vmatmul.bf16.gmra.mxu1 %v5015_v43 }
 0x17b   : > { %2037 = vmatmul.bf16.gmra.mxu2 %v5017_v41 }
 0x17c   : > { %2086 = vmatmul.bf16.gmra.mxu3 %v5019_v46 }
 0x189   : > { %1944 = vmatmul.bf16.gmra.mxu0 %v5033_v20 }
 0x18a   : > { %1993 = vmatmul.bf16.gmra.mxu1 %v5035_v55 }
 0x18b   : > { %2042 = vmatmul.bf16.gmra.mxu2 %v5037_v32 }
 0x18c   : > { %2091 = vmatmul.bf16.gmra.mxu3 %v5039_v27 }
 0x199   : > { %1949 = vmatmul.bf16.gmra.mxu0 %v5053_v37 }
 0x19a   : > { %1998 = vmatmul.bf16.gmra.mxu1 %v5055_v35 }
 0x19b   : > { %2047 = vmatmul.bf16.gmra.mxu2 %v5057_v6 }
 0x19c   : > { %2096 = vmatmul.bf16.gmra.mxu3 %v5059_v16 }
 0x1a9   : > { %1954 = vmatmul.bf16.gmra.mxu0 %v5073_v25 }
 0x1aa   : > { %2003 = vmatmul.bf16.gmra.mxu1 %v5075_v52 }
 0x1ab   : > { %2052 = vmatmul.bf16.gmra.mxu2 %v5077_v36 }
 0x1ac   : > { %2101 = vmatmul.bf16.gmra.mxu3 %v5079_v47 }
 0x1b9   : > { %1959 = vmatmul.bf16.gmra.mxu0 %v5093_v48 }
 0x1ba   : > { %2008 = vmatmul.bf16.gmra.mxu1 %v5095_v59 }
 0x1bb   : > { %2057 = vmatmul.bf16.gmra.mxu2 %v5097_v7 }
 0x1bc   : > { %2106 = vmatmul.bf16.gmra.mxu3 %v5099_v12 }
 0x1c6   : > { %v1925_v50 = vpop.f32.mrf.mxu0 }
 0x1c7   : > { %v1974_v54 = vpop.f32.mrf.mxu1 }
 0x1c8   : > { %v1975_v4 = vadd.f32 %v1974_v54, %v1925_v50  ;;  %v3394_v50 = vor.u32 %v3698_v11, %v3393_v23  ;;  %v3730_v54 = vld [vmem:[%s4246_s26 + $0x394] sm:$0xf0] }
 0x1c9   : > { %2120 = vmatmul.bf16.vlgmr.msrb.gmra.mxu0 %v4944_v57  ;;  %v3522_v14 = vor.u32 %v3730_v54, %v3521_v33  ;;  %v3726_v23 = vld [vmem:[%s4246_s26 + $0x374] sm:$0xf0] }
 0x1ca   : > { %2169 = vmatmul.bf16.vlgmr.msrb.gmra.mxu1 %v4949_v28  ;;  %2409 = vmatpush.bf16.msra.mxu2 %v3394_v50 }
 0x1cb   : > { %2218 = vmatmul.bf16.vlgmr.msrb.gmra.mxu2 %v4951_v3  ;;  %2458 = vmatpush.bf16.msra.mxu3 %v3522_v14 }
 0x1cc   : > { %2267 = vmatmul.bf16.vlgmr.msrb.gmra.mxu3 %v4955_v56 }
 0x1ce   : > { %v2023_v17 = vpop.f32.mrf.mxu2  ;;  %v1927_v53 = vpop.f32.mrf.mxu0 }
 0x1cf   : > { %v2024_v45 = vadd.f32 %v2023_v17, %v1975_v4  ;;  %v2072_v63 = vpop.f32.mrf.mxu3  ;;  %v1976_v26 = vpop.f32.mrf.mxu1 }
 0x1d0   : > { %v1977_v1 = vadd.f32 %v1976_v26, %v1927_v53  ;;  %v3265_v53 = vld [vmem:[%s4246_s26 + $0x188] sm:$0xf] }
 0x1d1   : > { %v5121_v29 = vadd.f32 %v2072_v63, %v2024_v45  ;;  %v3137_v45 = vld [vmem:[%s4246_s26 + $0x88] sm:$0xf]  ;;  %v3634_v63 = vld [vmem:[%s4246_s26 + $0x94] sm:$0xf0] }
 0x1d2   : > { %v3138_v26 = vor.u32 %v3634_v63, %v3137_v45  ;;  %v3662_v63 = vld [vmem:[%s4246_s26 + $0x174] sm:$0xf0] }
 0x1d4   : > { %2311 = vmatpush.bf16.msra.mxu0 %v3138_v26 }
 0x1d6   : > { %v2025_v39 = vpop.f32.mrf.mxu2  ;;  %v1930_v13 = vpop.f32.mrf.mxu0 }
 0x1d7   : > { %v2026_v40 = vadd.f32 %v2025_v39, %v1977_v1  ;;  %v2074_v61 = vpop.f32.mrf.mxu3  ;;  %v1979_v9 = vpop.f32.mrf.mxu1  ;;  %v3666_v1 = vld [vmem:[%s4246_s26 + $0x194] sm:$0xf0] }
 0x1d8   : > { %v1980_v22 = vadd.f32 %v1979_v9, %v1930_v13  ;;  %v3266_v49 = vor.u32 %v3666_v1, %v3265_v53  ;;  %v3694_v13 = vld [vmem:[%s4246_s26 + $0x274] sm:$0xf0]  ;;  %v3505_v9 = vld [vmem:[%s4246_s26 + $0x368] sm:$0xf] }
 0x1d9   : > { %v5127_v18 = vadd.f32 %v2074_v61, %v2026_v40  ;;  %2125 = vmatmul.bf16.gmra.mxu0 %v4973_v19  ;;  %v3377_v61 = vld [vmem:[%s4246_s26 + $0x268] sm:$0xf]  ;;  %v3506_v33 = vor.u32 %v3726_v23, %v3505_v9  ;;  %v3722_v9 = vld [vmem:[%s4246_s26 + $0x354] sm:$0xf0] }
 0x1da   : > { %2174 = vmatmul.bf16.gmra.mxu1 %v4975_v62 }
 0x1db   : > { %2223 = vmatmul.bf16.gmra.mxu2 %v4977_v42  ;;  %2360 = vmatpush.bf16.msra.mxu1 %v3266_v49 }
 0x1dc   : > { %2272 = vmatmul.bf16.gmra.mxu3 %v4979_v60 }
 0x1dd   : > { %2459 = vmatpush.bf16.msra.mxu3 %v3506_v33 }
 0x1de   : > { %v2028_v4 = vpop.f32.mrf.mxu2  ;;  %v1932_v24 = vpop.f32.mrf.mxu0 }
 0x1df   : > { %v2029_v0 = vadd.f32 %v2028_v4, %v1980_v22  ;;  %v2077_v5 = vpop.f32.mrf.mxu3  ;;  %v1981_v10 = vpop.f32.mrf.mxu1  ;;  %v3378_v22 = vor.u32 %v3694_v13, %v3377_v61  ;;  %v3489_v61 = vld [vmem:[%s4246_s26 + $0x348] sm:$0xf] }
 0x1e0   : > { %v1982_v21 = vadd.f32 %v1981_v10, %v1932_v24  ;;  %v3121_v24 = vld [vmem:[%s4246_s26 + $0x68] sm:$0xf]  ;;  %v3630_v10 = vld [vmem:[%s4246_s26 + $0x74] sm:$0xf0]  ;;  %v3490_v23 = vor.u32 %v3722_v9, %v3489_v61 }
 0x1e1   : > { %v5137_v17 = vadd.f32 %v2077_v5, %v2029_v0  ;;  %2410 = vmatpush.bf16.msra.mxu2 %v3378_v22  ;;  %v3122_v45 = vor.u32 %v3630_v10, %v3121_v24  ;;  %v3626_v24 = vld [vmem:[%s4246_s26 + $0x54] sm:$0xf0]  ;;  %v3233_v10 = vld [vmem:[%s4246_s26 + $0x148] sm:$0xf] }
 0x1e2   : > { %2460 = vmatpush.bf16.msra.mxu3 %v3490_v23  ;;  %v3473_v61 = vld [vmem:[%s4246_s26 + $0x328] sm:$0xf]  ;;  %v3718_v9 = vld [vmem:[%s4246_s26 + $0x334] sm:$0xf0] }
 0x1e3   : > { %2312 = vmatpush.bf16.msra.mxu0 %v3122_v45  ;;  %v3658_v45 = vld [vmem:[%s4246_s26 + $0x154] sm:$0xf0]  ;;  %v3474_v23 = vor.u32 %v3718_v9, %v3473_v61  ;;  %v3329_v61 = vld [vmem:[%s4246_s26 + $0x208] sm:$0xf] }
 0x1e4   : > { %v3457_v9 = vld [vmem:[%s4246_s26 + $0x308] sm:$0xf] }
 0x1e6   : > { %v2030_v58 = vpop.f32.mrf.mxu2  ;;  %v1935_v44 = vpop.f32.mrf.mxu0  ;;  %2461 = vmatpush.bf16.msra.mxu3 %v3474_v23  ;;  %v3714_v23 = vld [vmem:[%s4246_s26 + $0x314] sm:$0xf0] }
 0x1e7   : > { %v2031_v30 = vadd.f32 %v2030_v58, %v1982_v21  ;;  %v2079_v31 = vpop.f32.mrf.mxu3  ;;  %v1984_v8 = vpop.f32.mrf.mxu1  ;;  %v3249_v21 = vld [vmem:[%s4246_s26 + $0x168] sm:$0xf] }
 0x1e8   : > { %v1985_v40 = vadd.f32 %v1984_v8, %v1935_v44  ;;  %v3250_v53 = vor.u32 %v3662_v63, %v3249_v21  ;;  %v3361_v8 = vld [vmem:[%s4246_s26 + $0x248] sm:$0xf]  ;;  %v3234_v63 = vor.u32 %v3658_v45, %v3233_v10  ;;  %v3622_v10 = vld [vmem:[%s4246_s26 + $0x34] sm:$0xf0] }
 0x1e9   : > { %v5143_v39 = vadd.f32 %v2079_v31, %v2031_v30  ;;  %2130 = vmatmul.bf16.gmra.mxu0 %v4993_v34 }
 0x1ea   : > { %2179 = vmatmul.bf16.gmra.mxu1 %v4995_v2 }
 0x1eb   : > { %2228 = vmatmul.bf16.gmra.mxu2 %v4997_v51  ;;  %2361 = vmatpush.bf16.msra.mxu1 %v3250_v53 }
 0x1ec   : > { %2277 = vmatmul.bf16.gmra.mxu3 %v4999_v15 }
 0x1ee   : > { %v2033_v11 = vpop.f32.mrf.mxu2  ;;  %v1937_v4 = vpop.f32.mrf.mxu0 }
 0x1ef   : > { %v2034_v50 = vadd.f32 %v2033_v11, %v1985_v40  ;;  %v2082_v54 = vpop.f32.mrf.mxu3  ;;  %v1986_v14 = vpop.f32.mrf.mxu1  ;;  %v3690_v40 = vld [vmem:[%s4246_s26 + $0x254] sm:$0xf0]  ;;  %2362 = vmatpush.bf16.msra.mxu1 %v3234_v63 }
 0x1f0   : > { %v1987_v5 = vadd.f32 %v1986_v14, %v1937_v4  ;;  %v3362_v13 = vor.u32 %v3690_v40, %v3361_v8  ;;  %v3345_v8 = vld [vmem:[%s4246_s26 + $0x228] sm:$0xf]  ;;  %v3686_v40 = vld [vmem:[%s4246_s26 + $0x234] sm:$0xf0] }
 0x1f1   : > { %v5153_v0 = vadd.f32 %v2082_v54, %v2034_v50  ;;  %v3654_v63 = vld [vmem:[%s4246_s26 + $0x134] sm:$0xf0] }
 0x1f2   : > { %2411 = vmatpush.bf16.msra.mxu2 %v3362_v13  ;;  %v3346_v13 = vor.u32 %v3686_v40, %v3345_v8 }
 0x1f6   : > { %v2035_v26 = vpop.f32.mrf.mxu2  ;;  %v1940_v58 = vpop.f32.mrf.mxu0  ;;  %2412 = vmatpush.bf16.msra.mxu2 %v3346_v13  ;;  %v3682_v13 = vld [vmem:[%s4246_s26 + $0x214] sm:$0xf0] }
 0x1f7   : > { %v2036_v1 = vadd.f32 %v2035_v26, %v1987_v5  ;;  %v2084_v49 = vpop.f32.mrf.mxu3  ;;  %v1989_v30 = vpop.f32.mrf.mxu1  ;;  %v3105_v5 = vld [vmem:[%s4246_s26 + $0x48] sm:$0xf] }
 0x1f8   : > { %v1990_v44 = vadd.f32 %v1989_v30, %v1940_v58  ;;  %v3106_v21 = vor.u32 %v3626_v24, %v3105_v5  ;;  %v3089_v24 = vld [vmem:[%s4246_s26 + $0x28] sm:$0xf] }
 0x1f9   : > { %v5159_v31 = vadd.f32 %v2084_v49, %v2036_v1  ;;  %2135 = vmatmul.bf16.gmra.mxu0 %v5013_v38  ;;  %v3090_v45 = vor.u32 %v3622_v10, %v3089_v24 }
 0x1fa   : > { %2184 = vmatmul.bf16.gmra.mxu1 %v5015_v43  ;;  %2313 = vmatpush.bf16.msra.mxu0 %v3106_v21  ;;  %v3217_v21 = vld [vmem:[%s4246_s26 + $0x128] sm:$0xf] }
 0x1fb   : > { %2233 = vmatmul.bf16.gmra.mxu2 %v5017_v41 }
 0x1fc   : > { %2282 = vmatmul.bf16.gmra.mxu3 %v5019_v46 }
 0x1fe   : > { %v2038_v22 = vpop.f32.mrf.mxu2  ;;  %v1942_v50 = vpop.f32.mrf.mxu0  ;;  %2314 = vmatpush.bf16.msra.mxu0 %v3090_v45  ;;  %v3073_v45 = vld [vmem:[%s4246_s26 + $0x8] sm:$0xf] }
 0x1ff   : > { %v2039_v11 = vadd.f32 %v2038_v22, %v1990_v44  ;;  %v2087_v33 = vpop.f32.mrf.mxu3  ;;  %v1991_v54 = vpop.f32.mrf.mxu1 }
 0x200   : > { %v1992_v14 = vadd.f32 %v1991_v54, %v1942_v50 }
 0x201   : > { %v5169_v4 = vadd.f32 %v2087_v33, %v2039_v11 }
 0x206   : > { %v2040_v53 = vpop.f32.mrf.mxu2  ;;  %v1945_v49 = vpop.f32.mrf.mxu0 }
 0x207   : > { %v2041_v26 = vadd.f32 %v2040_v53, %v1992_v14  ;;  %v2089_v1 = vpop.f32.mrf.mxu3  ;;  %v1994_v58 = vpop.f32.mrf.mxu1  ;;  %v3218_v53 = vor.u32 %v3654_v63, %v3217_v21  ;;  %v3618_v63 = vld [vmem:[%s4246_s26 + $0x14] sm:$0xf0] }
 0x208   : > { %v1995_v44 = vadd.f32 %v1994_v58, %v1945_v49 }
 0x209   : > { %v5175_v30 = vadd.f32 %v2089_v1, %v2041_v26  ;;  %2140 = vmatmul.bf16.gmra.mxu0 %v5033_v20  ;;  %2363 = vmatpush.bf16.msra.mxu1 %v3218_v53  ;;  %v3201_v53 = vld [vmem:[%s4246_s26 + $0x108] sm:$0xf] }
 0x20a   : > { %2189 = vmatmul.bf16.gmra.mxu1 %v5035_v55 }
 0x20b   : > { %2238 = vmatmul.bf16.gmra.mxu2 %v5037_v32 }
 0x20c   : > { %2287 = vmatmul.bf16.gmra.mxu3 %v5039_v27 }
 0x20e   : > { %v2043_v22 = vpop.f32.mrf.mxu2  ;;  %v1947_v50 = vpop.f32.mrf.mxu0 }
 0x20f   : > { %v2044_v11 = vadd.f32 %v2043_v22, %v1995_v44  ;;  %v2092_v33 = vpop.f32.mrf.mxu3  ;;  %v1996_v54 = vpop.f32.mrf.mxu1  ;;  %v3330_v22 = vor.u32 %v3682_v13, %v3329_v61 }
 0x210   : > { %v1997_v5 = vadd.f32 %v1996_v54, %v1947_v50 }
 0x211   : > { %v5185_v14 = vadd.f32 %v2092_v33, %v2044_v11  ;;  %v3458_v33 = vor.u32 %v3714_v23, %v3457_v9  ;;  %2413 = vmatpush.bf16.msra.mxu2 %v3330_v22  ;;  %v3708_v23 = vld [vmem:[%s4246_s26 + $0x2ec] sm:$0xf] }
 0x213   : > { %2462 = vmatpush.bf16.msra.mxu3 %v3458_v33  ;;  %v3740_v33 = vld [vmem:[%s4246_s26 + $0x3ec] sm:$0xf] }
 0x216   : > { %v2045_v26 = vpop.f32.mrf.mxu2  ;;  %v1950_v58 = vpop.f32.mrf.mxu0 }
 0x217   : > { %v2046_v1 = vadd.f32 %v2045_v26, %v1997_v5  ;;  %v2094_v49 = vpop.f32.mrf.mxu3  ;;  %v1999_v44 = vpop.f32.mrf.mxu1  ;;  %v3074_v26 = vor.u32 %v3618_v63, %v3073_v45 }
 0x218   : > { %v2000_v40 = vadd.f32 %v1999_v44, %v1950_v58 }
 0x219   : > { %v5191_v8 = vadd.f32 %v2094_v49, %v2046_v1  ;;  %2145 = vmatmul.bf16.gmra.mxu0 %v5053_v37  ;;  %v3650_v1 = vld [vmem:[%s4246_s26 + $0x114] sm:$0xf0] }
 0x21a   : > { %2194 = vmatmul.bf16.gmra.mxu1 %v5055_v35  ;;  %v3202_v49 = vor.u32 %v3650_v1, %v3201_v53  ;;  %2315 = vmatpush.bf16.msra.mxu0 %v3074_v26 }
 0x21b   : > { %2243 = vmatmul.bf16.gmra.mxu2 %v5057_v6 }
 0x21c   : > { %2292 = vmatmul.bf16.gmra.mxu3 %v5059_v16  ;;  %2364 = vmatpush.bf16.msra.mxu1 %v3202_v49  ;;  %v3644_v49 = vld [vmem:[%s4246_s26 + $0xec] sm:$0xf] }
 0x21e   : > { %v2048_v11 = vpop.f32.mrf.mxu2  ;;  %v1952_v5 = vpop.f32.mrf.mxu0 }
 0x21f   : > { %v2049_v50 = vadd.f32 %v2048_v11, %v2000_v40  ;;  %v2097_v54 = vpop.f32.mrf.mxu3  ;;  %v2001_v24 = vpop.f32.mrf.mxu1  ;;  %v3443_v11 = vld [vmem:[%s4246_s26 + $0x2f8] sm:$0xf0] }
 0x220   : > { %v2002_v21 = vadd.f32 %v2001_v24, %v1952_v5 }
 0x221   : > { %v5201_v10 = vadd.f32 %v2097_v54, %v2049_v50  ;;  %v3446_v50 = vor.u32 %v3708_v23, %v3443_v11  ;;  %v3571_v54 = vld [vmem:[%s4246_s26 + $0x3f8] sm:$0xf0] }
 0x222   : > { %v3574_v24 = vor.u32 %v3740_v33, %v3571_v54 }
 0x223   : > { %2602 = vmatpush.bf16.msrb.mxu2 %v3446_v50 }
 0x224   : > { %2651 = vmatpush.bf16.msrb.mxu3 %v3574_v24  ;;  %v3704_v24 = vld [vmem:[%s4246_s26 + $0x2cc] sm:$0xf] }
 0x226   : > { %v2050_v58 = vpop.f32.mrf.mxu2  ;;  %v1955_v61 = vpop.f32.mrf.mxu0 }
 0x227   : > { %v2051_v44 = vadd.f32 %v2050_v58, %v2002_v21  ;;  %v2099_v40 = vpop.f32.mrf.mxu3  ;;  %v2004_v13 = vpop.f32.mrf.mxu1  ;;  %v3187_v58 = vld [vmem:[%s4246_s26 + $0xf8] sm:$0xf0] }
 0x228   : > { %v2005_v22 = vadd.f32 %v2004_v13, %v1955_v61  ;;  %v3190_v61 = vor.u32 %v3644_v49, %v3187_v58  ;;  %v3315_v13 = vld [vmem:[%s4246_s26 + $0x1f8] sm:$0xf0] }
 0x229   : > { %v5207_v9 = vadd.f32 %v2099_v40, %v2051_v44  ;;  %2150 = vmatmul.bf16.gmra.mxu0 %v5073_v25  ;;  %v3676_v44 = vld [vmem:[%s4246_s26 + $0x1ec] sm:$0xf] }
 0x22a   : > { %2199 = vmatmul.bf16.gmra.mxu1 %v5075_v52  ;;  %v3318_v33 = vor.u32 %v3676_v44, %v3315_v13  ;;  %2504 = vmatpush.bf16.msrb.mxu0 %v3190_v61 }
 0x22b   : > { %2248 = vmatmul.bf16.gmra.mxu2 %v5077_v36 }
 0x22c   : > { %2297 = vmatmul.bf16.gmra.mxu3 %v5079_v47  ;;  %2553 = vmatpush.bf16.msrb.mxu1 %v3318_v33  ;;  %v3672_v33 = vld [vmem:[%s4246_s26 + $0x1cc] sm:$0xf] }
 0x22e   : > { %v2053_v5 = vpop.f32.mrf.mxu2  ;;  %v1957_v63 = vpop.f32.mrf.mxu0 }
 0x22f   : > { %v2054_v21 = vadd.f32 %v2053_v5, %v2005_v22  ;;  %v2102_v45 = vpop.f32.mrf.mxu3  ;;  %v2006_v53 = vpop.f32.mrf.mxu1 }
 0x230   : > { %v2007_v1 = vadd.f32 %v2006_v53, %v1957_v63 }
 0x231   : > { %v5217_v26 = vadd.f32 %v2102_v45, %v2054_v21  ;;  %v3427_v21 = vld [vmem:[%s4246_s26 + $0x2d8] sm:$0xf0]  ;;  %v3736_v45 = vld [vmem:[%s4246_s26 + $0x3cc] sm:$0xf] }
 0x232   : > { %v3430_v53 = vor.u32 %v3704_v24, %v3427_v21  ;;  %v3299_v24 = vld [vmem:[%s4246_s26 + $0x1d8] sm:$0xf0] }
 0x234   : > { %2603 = vmatpush.bf16.msrb.mxu2 %v3430_v53 }
 0x236   : > { %v2055_v40 = vpop.f32.mrf.mxu2  ;;  %v1960_v22 = vpop.f32.mrf.mxu0 }
 0x237   : > { %v2056_v23 = vadd.f32 %v2055_v40, %v2007_v1  ;;  %v2104_v11 = vpop.f32.mrf.mxu3  ;;  %v2009_v50 = vpop.f32.mrf.mxu1  ;;  %v3555_v1 = vld [vmem:[%s4246_s26 + $0x3d8] sm:$0xf0] }
 0x238   : > { %v2010_v5 = vadd.f32 %v2009_v50, %v1960_v22  ;;  %v3558_v40 = vor.u32 %v3736_v45, %v3555_v1  ;;  %v3171_v22 = vld [vmem:[%s4246_s26 + $0xd8] sm:$0xf0]  ;;  %v3302_v45 = vor.u32 %v3672_v33, %v3299_v24 }
 0x239   : > { %v5223_v54 = vadd.f32 %v2104_v11, %v2056_v23  ;;  %2155 = vmatmul.bf16.gmra.mxu0 %v5093_v48  ;;  %v3640_v11 = vld [vmem:[%s4246_s26 + $0xcc] sm:$0xf] }
 0x23a   : > { %2204 = vmatmul.bf16.gmra.mxu1 %v5095_v59  ;;  %2652 = vmatpush.bf16.msrb.mxu3 %v3558_v40  ;;  %v3732_v40 = vld [vmem:[%s4246_s26 + $0x3ac] sm:$0xf] }
 0x23b   : > { %2253 = vmatmul.bf16.gmra.mxu2 %v5097_v7  ;;  %2554 = vmatpush.bf16.msrb.mxu1 %v3302_v45  ;;  %v3636_v45 = vld [vmem:[%s4246_s26 + $0xac] sm:$0xf] }
 0x23c   : > { %2302 = vmatmul.bf16.gmra.mxu3 %v5099_v12  ;;  %v3174_v12 = vor.u32 %v3640_v11, %v3171_v22 }
 0x23e   : > { %v2058_v63 = vpop.f32.mrf.mxu2  ;;  %v1962_v44 = vpop.f32.mrf.mxu0  ;;  %2505 = vmatpush.bf16.msrb.mxu0 %v3174_v12 }
 0x23f   : > { %v2059_v49 = vadd.f32 %v2058_v63, %v2010_v5  ;;  %v2107_v58 = vpop.f32.mrf.mxu3  ;;  %v2011_v61 = vpop.f32.mrf.mxu1 }
 0x240   : > { %v2012_v23 = vadd.f32 %v2011_v61, %v1962_v44  ;;  %v3411_v44 = vld [vmem:[%s4246_s26 + $0x2b8] sm:$0xf0] }
 0x241   : > { %v5233_v13 = vadd.f32 %v2107_v58, %v2059_v49  ;;  %v3700_v58 = vld [vmem:[%s4246_s26 + $0x2ac] sm:$0xf] }
 0x242   : > { %v3414_v12 = vor.u32 %v3700_v58, %v3411_v44  ;;  %v3283_v58 = vld [vmem:[%s4246_s26 + $0x1b8] sm:$0xf0] }
 0x244   : > { %2604 = vmatpush.bf16.msrb.mxu2 %v3414_v12 }
 0x246   : > { %v2060_v50 = vpop.f32.mrf.mxu2  ;;  %v2121_v63 = vpop.f32.mrf.mxu0 }
 0x247   : > { %v2061_v21 = vadd.f32 %v2060_v50, %v2012_v23  ;;  %v2109_v5 = vpop.f32.mrf.mxu3  ;;  %v2170_v1 = vpop.f32.mrf.mxu1  ;;  %v3539_v23 = vld [vmem:[%s4246_s26 + $0x3b8] sm:$0xf0] }
 0x248   : > { %v2171_v49 = vadd.f32 %v2170_v1, %v2121_v63  ;;  %v3542_v50 = vor.u32 %v3732_v40, %v3539_v23  ;;  %v3155_v1 = vld [vmem:[%s4246_s26 + $0xb8] sm:$0xf0] }
 0x249   : > { %v5239_v53 = vadd.f32 %v2109_v5, %v2061_v21  ;;  %2316 = vmatmul.bf16.vlgmr.msra.gmra.mxu0 %v4944_v57 }
 0x24a   : > { %2365 = vmatmul.bf16.vlgmr.msra.gmra.mxu1 %v4949_v28  ;;  %2653 = vmatpush.bf16.msrb.mxu3 %v3542_v50  ;;  %v3158_v28 = vor.u32 %v3636_v45, %v3155_v1  ;;  %v3523_v50 = vld [vmem:[%s4246_s26 + $0x398] sm:$0xf0] }
 0x24b   : > { %2414 = vmatmul.bf16.vlgmr.msra.gmra.mxu2 %v4951_v3 }
 0x24c   : > { %2463 = vmatmul.bf16.vlgmr.msra.gmra.mxu3 %v4955_v56  ;;  %v3668_v56 = vld [vmem:[%s4246_s26 + $0x1ac] sm:$0xf]  ;;  %2506 = vmatpush.bf16.msrb.mxu0 %v3158_v28 }
 0x24e   : > { %v2219_v61 = vpop.f32.mrf.mxu2  ;;  %v2123_v33 = vpop.f32.mrf.mxu0 }
 0x24f   : > { %v2220_v11 = vadd.f32 %v2219_v61, %v2171_v49  ;;  %v2268_v22 = vpop.f32.mrf.mxu3  ;;  %v2172_v24 = vpop.f32.mrf.mxu1  ;;  %v3286_v61 = vor.u32 %v3668_v56, %v3283_v58  ;;  %v3395_v56 = vld [vmem:[%s4246_s26 + $0x298] sm:$0xf0] }
 0x250   : > { %v2173_v63 = vadd.f32 %v2172_v24, %v2123_v33  ;;  %v3728_v33 = vld [vmem:[%s4246_s26 + $0x38c] sm:$0xf] }
 0x251   : > { %v2269_v21 = vadd.f32 %v2268_v22, %v2220_v11  ;;  %2555 = vmatpush.bf16.msrb.mxu1 %v3286_v61 }
 0x253   : > { %v2700_v5 = vpack.c.bf16 %v2269_v21, %v5121_v29 }
 0x255   : > { %2732 = vst [vmem:[%s4253_s12] sm:$0xff] %v2700_v5  ;;  %v3526_v5 = vor.u32 %v3728_v33, %v3523_v50  ;;  %v3692_v50 = vld [vmem:[%s4246_s26 + $0x26c] sm:$0xf] }
 0x256   : > { %v2221_v3 = vpop.f32.mrf.mxu2  ;;  %v2126_v40 = vpop.f32.mrf.mxu0 }
 0x257   : > { %v2222_v49 = vadd.f32 %v2221_v3, %v2173_v63  ;;  %v2270_v44 = vpop.f32.mrf.mxu3  ;;  %v2175_v12 = vpop.f32.mrf.mxu1  ;;  %v3696_v3 = vld [vmem:[%s4246_s26 + $0x28c] sm:$0xf]  ;;  %2654 = vmatpush.bf16.msrb.mxu3 %v3526_v5 }
 0x258   : > { %v2176_v11 = vadd.f32 %v2175_v12, %v2126_v40  ;;  %v3398_v28 = vor.u32 %v3696_v3, %v3395_v56  ;;  %v3664_v12 = vld [vmem:[%s4246_s26 + $0x18c] sm:$0xf] }
 0x259   : > { %v2271_v29 = vadd.f32 %v2270_v44, %v2222_v49  ;;  %2321 = vmatmul.bf16.gmra.mxu0 %v4973_v19  ;;  %v3632_v49 = vld [vmem:[%s4246_s26 + $0x8c] sm:$0xf]  ;;  %v3139_v44 = vld [vmem:[%s4246_s26 + $0x98] sm:$0xf0] }
 0x25a   : > { %2370 = vmatmul.bf16.gmra.mxu1 %v4975_v62  ;;  %2605 = vmatpush.bf16.msrb.mxu2 %v3398_v28  ;;  %v3142_v61 = vor.u32 %v3632_v49, %v3139_v44  ;;  %v3724_v5 = vld [vmem:[%s4246_s26 + $0x36c] sm:$0xf] }
 0x25b   : > { %v2702_v23 = vpack.c.bf16 %v2271_v29, %v5127_v18  ;;  %2419 = vmatmul.bf16.gmra.mxu2 %v4977_v42  ;;  %v3267_v29 = vld [vmem:[%s4246_s26 + $0x198] sm:$0xf0] }
 0x25c   : > { %2468 = vmatmul.bf16.gmra.mxu3 %v4979_v60  ;;  %v3270_v56 = vor.u32 %v3664_v12, %v3267_v29  ;;  %2507 = vmatpush.bf16.msrb.mxu0 %v3142_v61  ;;  %v3628_v12 = vld [vmem:[%s4246_s26 + $0x6c] sm:$0xf]  ;;  %v3123_v29 = vld [vmem:[%s4246_s26 + $0x78] sm:$0xf0] }
 0x25d   : > { %2734 = vst [vmem:[%s4253_s12 + $0x10] sm:$0xff] %v2702_v23 }
 0x25e   : > { %v2224_v22 = vpop.f32.mrf.mxu2  ;;  %v2128_v21 = vpop.f32.mrf.mxu0  ;;  %2556 = vmatpush.bf16.msrb.mxu1 %v3270_v56  ;;  %v3251_v56 = vld [vmem:[%s4246_s26 + $0x178] sm:$0xf0] }
 0x25f   : > { %v2225_v24 = vadd.f32 %v2224_v22, %v2176_v11  ;;  %v2273_v18 = vpop.f32.mrf.mxu3  ;;  %v2177_v63 = vpop.f32.mrf.mxu1 }
 0x260   : > { %v2178_v58 = vadd.f32 %v2177_v63, %v2128_v21  ;;  %v3507_v63 = vld [vmem:[%s4246_s26 + $0x378] sm:$0xf0] }
 0x261   : > { %v2274_v45 = vadd.f32 %v2273_v18, %v2225_v24  ;;  %v3379_v24 = vld [vmem:[%s4246_s26 + $0x278] sm:$0xf0] }
 0x262   : > { %v3382_v21 = vor.u32 %v3692_v50, %v3379_v24 }
 0x263   : > { %v2704_v1 = vpack.c.bf16 %v2274_v45, %v5137_v17 }
 0x264   : > { %2606 = vmatpush.bf16.msrb.mxu2 %v3382_v21  ;;  %v3688_v21 = vld [vmem:[%s4246_s26 + $0x24c] sm:$0xf] }
 0x265   : > { %2736 = vst [vmem:[%s4253_s12 + $0x20] sm:$0xff] %v2704_v1 }
 0x266   : > { %v2226_v40 = vpop.f32.mrf.mxu2  ;;  %v2131_v3 = vpop.f32.mrf.mxu0 }
 0x267   : > { %v2227_v23 = vadd.f32 %v2226_v40, %v2178_v58  ;;  %v2275_v11 = vpop.f32.mrf.mxu3  ;;  %v2180_v22 = vpop.f32.mrf.mxu1  ;;  %v3510_v58 = vor.u32 %v3724_v5, %v3507_v63  ;;  %v3363_v5 = vld [vmem:[%s4246_s26 + $0x258] sm:$0xf0] }
 0x268   : > { %v2181_v33 = vadd.f32 %v2180_v22, %v2131_v3  ;;  %v3660_v3 = vld [vmem:[%s4246_s26 + $0x16c] sm:$0xf] }
 0x269   : > { %v2276_v17 = vadd.f32 %v2275_v11, %v2227_v23  ;;  %2326 = vmatmul.bf16.gmra.mxu0 %v4993_v34  ;;  %2655 = vmatpush.bf16.msrb.mxu3 %v3510_v58  ;;  %v3126_v11 = vor.u32 %v3628_v12, %v3123_v29 }
 0x26a   : > { %2375 = vmatmul.bf16.gmra.mxu1 %v4995_v2 }
 0x26b   : > { %v2706_v28 = vpack.c.bf16 %v2276_v17, %v5143_v39  ;;  %2424 = vmatmul.bf16.gmra.mxu2 %v4997_v51  ;;  %2508 = vmatpush.bf16.msrb.mxu0 %v3126_v11  ;;  %v3107_v11 = vld [vmem:[%s4246_s26 + $0x58] sm:$0xf0] }
 0x26c   : > { %2473 = vmatmul.bf16.gmra.mxu3 %v4999_v15 }
 0x26d   : > { %2738 = vst [vmem:[%s4253_s12 + $0x30] sm:$0xff] %v2706_v28 }
 0x26e   : > { %v2229_v18 = vpop.f32.mrf.mxu2  ;;  %v2133_v1 = vpop.f32.mrf.mxu0 }
 0x26f   : > { %v2230_v45 = vadd.f32 %v2229_v18, %v2181_v33  ;;  %v2278_v39 = vpop.f32.mrf.mxu3  ;;  %v2182_v49 = vpop.f32.mrf.mxu1  ;;  %v3254_v33 = vor.u32 %v3660_v3, %v3251_v56 }
 0x270   : > { %v2183_v61 = vadd.f32 %v2182_v49, %v2133_v1  ;;  %v3491_v1 = vld [vmem:[%s4246_s26 + $0x358] sm:$0xf0] }
 0x271   : > { %v2279_v44 = vadd.f32 %v2278_v39, %v2230_v45  ;;  %2557 = vmatpush.bf16.msrb.mxu1 %v3254_v33  ;;  %v3366_v45 = vor.u32 %v3688_v21, %v3363_v5  ;;  %v3720_v39 = vld [vmem:[%s4246_s26 + $0x34c] sm:$0xf] }
 0x272   : > { %v3684_v5 = vld [vmem:[%s4246_s26 + $0x22c] sm:$0xf] }
 0x273   : > { %v2708_v40 = vpack.c.bf16 %v2279_v44, %v5153_v0  ;;  %v3494_v44 = vor.u32 %v3720_v39, %v3491_v1  ;;  %2607 = vmatpush.bf16.msrb.mxu2 %v3366_v45  ;;  %v3716_v1 = vld [vmem:[%s4246_s26 + $0x32c] sm:$0xf] }
 0x275   : > { %2740 = vst [vmem:[%s4253_s12 + $0x40] sm:$0xff] %v2708_v40  ;;  %2656 = vmatpush.bf16.msrb.mxu3 %v3494_v44 }
 0x276   : > { %v2231_v23 = vpop.f32.mrf.mxu2  ;;  %v2136_v28 = vpop.f32.mrf.mxu0 }
 0x277   : > { %v2232_v22 = vadd.f32 %v2231_v23, %v2183_v61  ;;  %v2280_v17 = vpop.f32.mrf.mxu3  ;;  %v2185_v50 = vpop.f32.mrf.mxu1  ;;  %v3624_v23 = vld [vmem:[%s4246_s26 + $0x4c] sm:$0xf] }
 0x278   : > { %v2186_v18 = vadd.f32 %v2185_v50, %v2136_v28  ;;  %v3110_v56 = vor.u32 %v3624_v23, %v3107_v11  ;;  %v3620_v23 = vld [vmem:[%s4246_s26 + $0x2c] sm:$0xf]  ;;  %v3091_v11 = vld [vmem:[%s4246_s26 + $0x38] sm:$0xf0] }
 0x279   : > { %v2281_v0 = vadd.f32 %v2280_v17, %v2232_v22  ;;  %2331 = vmatmul.bf16.gmra.mxu0 %v5013_v38  ;;  %v3656_v22 = vld [vmem:[%s4246_s26 + $0x14c] sm:$0xf]  ;;  %v3235_v17 = vld [vmem:[%s4246_s26 + $0x158] sm:$0xf0] }
 0x27a   : > { %2380 = vmatmul.bf16.gmra.mxu1 %v5015_v43  ;;  %2509 = vmatpush.bf16.msrb.mxu0 %v3110_v56  ;;  %v3094_v56 = vor.u32 %v3620_v23, %v3091_v11 }
 0x27b   : > { %v2710_v24 = vpack.c.bf16 %v2281_v0, %v5159_v31  ;;  %2429 = vmatmul.bf16.gmra.mxu2 %v5017_v41  ;;  %v3238_v0 = vor.u32 %v3656_v22, %v3235_v17  ;;  %v3652_v22 = vld [vmem:[%s4246_s26 + $0x12c] sm:$0xf]  ;;  %v3219_v17 = vld [vmem:[%s4246_s26 + $0x138] sm:$0xf0] }
 0x27c   : > { %2478 = vmatmul.bf16.gmra.mxu3 %v5019_v46 }
 0x27d   : > { %2742 = vst [vmem:[%s4253_s12 + $0x50] sm:$0xff] %v2710_v24  ;;  %2558 = vmatpush.bf16.msrb.mxu1 %v3238_v0  ;;  %v3222_v0 = vor.u32 %v3652_v22, %v3219_v17 }
 0x27e   : > { %v2234_v63 = vpop.f32.mrf.mxu2  ;;  %v2138_v49 = vpop.f32.mrf.mxu0  ;;  %2510 = vmatpush.bf16.msrb.mxu0 %v3094_v56  ;;  %v3203_v56 = vld [vmem:[%s4246_s26 + $0x118] sm:$0xf0] }
 0x27f   : > { %v2235_v58 = vadd.f32 %v2234_v63, %v2186_v18  ;;  %v2283_v31 = vpop.f32.mrf.mxu3  ;;  %v2187_v40 = vpop.f32.mrf.mxu1  ;;  %v3347_v63 = vld [vmem:[%s4246_s26 + $0x238] sm:$0xf0] }
 0x280   : > { %v2188_v29 = vadd.f32 %v2187_v40, %v2138_v49  ;;  %v3350_v39 = vor.u32 %v3684_v5, %v3347_v63  ;;  %v3331_v5 = vld [vmem:[%s4246_s26 + $0x218] sm:$0xf0] }
 0x281   : > { %v2284_v61 = vadd.f32 %v2283_v31, %v2235_v58  ;;  %v3475_v58 = vld [vmem:[%s4246_s26 + $0x338] sm:$0xf0]  ;;  %2559 = vmatpush.bf16.msrb.mxu1 %v3222_v0 }
 0x282   : > { %v3478_v44 = vor.u32 %v3716_v1, %v3475_v58  ;;  %2608 = vmatpush.bf16.msrb.mxu2 %v3350_v39  ;;  %v3712_v39 = vld [vmem:[%s4246_s26 + $0x30c] sm:$0xf]  ;;  %v3459_v1 = vld [vmem:[%s4246_s26 + $0x318] sm:$0xf0] }
 0x283   : > { %v2712_v12 = vpack.c.bf16 %v2284_v61, %v5169_v4 }
 0x284   : > { %2657 = vmatpush.bf16.msrb.mxu3 %v3478_v44 }
 0x285   : > { %2744 = vst [vmem:[%s4253_s12 + $0x60] sm:$0xff] %v2712_v12 }
 0x286   : > { %v2236_v3 = vpop.f32.mrf.mxu2  ;;  %v2141_v50 = vpop.f32.mrf.mxu0 }
 0x287   : > { %v2237_v28 = vadd.f32 %v2236_v3, %v2188_v29  ;;  %v2285_v33 = vpop.f32.mrf.mxu3  ;;  %v2190_v24 = vpop.f32.mrf.mxu1 }
 0x288   : > { %v2191_v21 = vadd.f32 %v2190_v24, %v2141_v50 }
 0x289   : > { %v2286_v4 = vadd.f32 %v2285_v33, %v2237_v28  ;;  %2336 = vmatmul.bf16.gmra.mxu0 %v5033_v20 }
 0x28a   : > { %2385 = vmatmul.bf16.gmra.mxu1 %v5035_v55 }
 0x28b   : > { %v2714_v18 = vpack.c.bf16 %v2286_v4, %v5175_v30  ;;  %2434 = vmatmul.bf16.gmra.mxu2 %v5037_v32 }
 0x28c   : > { %2483 = vmatmul.bf16.gmra.mxu3 %v5039_v27 }
 0x28d   : > { %2746 = vst [vmem:[%s4253_s12 + $0x70] sm:$0xff] %v2714_v18 }
 0x28e   : > { %v2239_v45 = vpop.f32.mrf.mxu2  ;;  %v2143_v49 = vpop.f32.mrf.mxu0 }
 0x28f   : > { %v2240_v31 = vadd.f32 %v2239_v45, %v2191_v21  ;;  %v2288_v30 = vpop.f32.mrf.mxu3  ;;  %v2192_v40 = vpop.f32.mrf.mxu1  ;;  %v3680_v21 = vld [vmem:[%s4246_s26 + $0x20c] sm:$0xf] }
 0x290   : > { %v2193_v29 = vadd.f32 %v2192_v40, %v2143_v49  ;;  %v3334_v45 = vor.u32 %v3680_v21, %v3331_v5 }
 0x291   : > { %v2289_v61 = vadd.f32 %v2288_v30, %v2240_v31  ;;  %v3462_v30 = vor.u32 %v3712_v39, %v3459_v1 }
 0x292   : > { %2609 = vmatpush.bf16.msrb.mxu2 %v3334_v45 }
 0x293   : > { %v2716_v12 = vpack.c.bf16 %v2289_v61, %v5185_v14  ;;  %2658 = vmatpush.bf16.msrb.mxu3 %v3462_v30 }
 0x295   : > { %2748 = vst [vmem:[%s4253_s12 + $0x80] sm:$0xff] %v2716_v12  ;;  %v3616_v12 = vld [vmem:[%s4246_s26 + $0xc] sm:$0xf] }
 0x296   : > { %v2241_v3 = vpop.f32.mrf.mxu2  ;;  %v2146_v50 = vpop.f32.mrf.mxu0 }
 0x297   : > { %v2242_v28 = vadd.f32 %v2241_v3, %v2193_v29  ;;  %v2290_v33 = vpop.f32.mrf.mxu3  ;;  %v2195_v24 = vpop.f32.mrf.mxu1  ;;  %v3075_v29 = vld [vmem:[%s4246_s26 + $0x18] sm:$0xf0]  ;;  %v3648_v3 = vld [vmem:[%s4246_s26 + $0x10c] sm:$0xf] }
 0x298   : > { %v2196_v18 = vadd.f32 %v2195_v24, %v2146_v50  ;;  %v3078_v11 = vor.u32 %v3616_v12, %v3075_v29 }
 0x299   : > { %v2291_v14 = vadd.f32 %v2290_v33, %v2242_v28  ;;  %2341 = vmatmul.bf16.gmra.mxu0 %v5053_v37  ;;  %v3206_v33 = vor.u32 %v3648_v3, %v3203_v56 }
 0x29a   : > { %2390 = vmatmul.bf16.gmra.mxu1 %v5055_v35  ;;  %2511 = vmatpush.bf16.msrb.mxu0 %v3078_v11 }
 0x29b   : > { %v2718_v4 = vpack.c.bf16 %v2291_v14, %v5191_v8  ;;  %2439 = vmatmul.bf16.gmra.mxu2 %v5057_v6  ;;  %2560 = vmatpush.bf16.msrb.mxu1 %v3206_v33 }
 0x29c   : > { %2488 = vmatmul.bf16.gmra.mxu3 %v5059_v16 }
 0x29d   : > { %2750 = vst [vmem:[%s4253_s12 + $0x90] sm:$0xff] %v2718_v4 }
 0x29e   : > { %v2244_v63 = vpop.f32.mrf.mxu2  ;;  %v2148_v31 = vpop.f32.mrf.mxu0 }
 0x29f   : > { %v2245_v58 = vadd.f32 %v2244_v63, %v2196_v18  ;;  %v2293_v8 = vpop.f32.mrf.mxu3  ;;  %v2197_v49 = vpop.f32.mrf.mxu1 }
 0x2a0   : > { %v2198_v61 = vadd.f32 %v2197_v49, %v2148_v31 }
 0x2a1   : > { %v2294_v44 = vadd.f32 %v2293_v8, %v2245_v58 }
 0x2a3   : > { %v2720_v40 = vpack.c.bf16 %v2294_v44, %v5201_v10 }
 0x2a5   : > { %2752 = vst [vmem:[%s4253_s12 + $0xa0] sm:$0xff] %v2720_v40  ;;  %v5628_v40 = vld [vmem:[#allocation53_spill] sm:$0xff] }
 0x2a6   : > { %v2246_v23 = vpop.f32.mrf.mxu2  ;;  %v2151_v28 = vpop.f32.mrf.mxu0 }
 0x2a7   : > { %v2247_v22 = vadd.f32 %v2246_v23, %v2198_v61  ;;  %v2295_v17 = vpop.f32.mrf.mxu3  ;;  %v2200_v50 = vpop.f32.mrf.mxu1 }
 0x2a8   : > { %v2201_v24 = vadd.f32 %v2200_v50, %v2151_v28 }
 0x2a9   : > { %v2296_v0 = vadd.f32 %v2295_v17, %v2247_v22  ;;  %2346 = vmatmul.bf16.gmra.mxu0 %v5073_v25 }
 0x2aa   : > { %2395 = vmatmul.bf16.gmra.mxu1 %v5075_v52 }
 0x2ab   : > { %v2722_v10 = vpack.c.bf16 %v2296_v0, %v5207_v9  ;;  %2444 = vmatmul.bf16.gmra.mxu2 %v5077_v36 }
 0x2ac   : > { %2493 = vmatmul.bf16.gmra.mxu3 %v5079_v47 }
 0x2ad   : > { %2754 = vst [vmem:[%s4253_s12 + $0xb0] sm:$0xff] %v2722_v10 }
 0x2ae   : > { %v2249_v14 = vpop.f32.mrf.mxu2  ;;  %v2153_v21 = vpop.f32.mrf.mxu0 }
 0x2af   : > { %v2250_v4 = vadd.f32 %v2249_v14, %v2201_v24  ;;  %v2298_v18 = vpop.f32.mrf.mxu3  ;;  %v2202_v5 = vpop.f32.mrf.mxu1  ;;  %v5629_v24 = vld [vmem:[#allocation50_spill] sm:$0xff]  ;;  %v5630_v14 = vld [vmem:[#allocation51_spill] sm:$0xff] }
 0x2b0   : > { %v2203_v39 = vadd.f32 %v2202_v5, %v2153_v21 }
 0x2b1   : > { %v2299_v63 = vadd.f32 %v2298_v18, %v2250_v4  ;;  %v5631_v4 = vld [vmem:[#allocation52_spill] sm:$0xff] }
 0x2b3   : > { %v2724_v45 = vpack.c.bf16 %v2299_v63, %v5217_v26 }
 0x2b5   : > { %2756 = vst [vmem:[%s4253_s12 + $0xc0] sm:$0xff] %v2724_v45 }
 0x2b6   : > { %v2251_v9 = vpop.f32.mrf.mxu2  ;;  %v2156_v8 = vpop.f32.mrf.mxu0 }
 0x2b7   : > { %v2252_v1 = vadd.f32 %v2251_v9, %v2203_v39  ;;  %v2300_v58 = vpop.f32.mrf.mxu3  ;;  %v2205_v31 = vpop.f32.mrf.mxu1 }
 0x2b8   : > { %v2206_v44 = vadd.f32 %v2205_v31, %v2156_v8 }
 0x2b9   : > { %v2301_v30 = vadd.f32 %v2300_v58, %v2252_v1  ;;  %2351 = vmatmul.bf16.gmra.mxu0 %v5093_v48 }
 0x2ba   : > { %2400 = vmatmul.bf16.gmra.mxu1 %v5095_v59 }
 0x2bb   : > { %v2726_v49 = vpack.c.bf16 %v2301_v30, %v5223_v54  ;;  %2449 = vmatmul.bf16.gmra.mxu2 %v5097_v7 }
 0x2bc   : > { %2498 = vmatmul.bf16.gmra.mxu3 %v5628_v40 }
 0x2bd   : > { %2758 = vst [vmem:[%s4253_s12 + $0xd0] sm:$0xff] %v2726_v49 }
 0x2be   : > { %v2254_v26 = vpop.f32.mrf.mxu2  ;;  %v2158_v29 = vpop.f32.mrf.mxu0 }
 0x2bf   : > { %v2255_v61 = vadd.f32 %v2254_v26, %v2206_v44  ;;  %v2303_v12 = vpop.f32.mrf.mxu3  ;;  %v2207_v23 = vpop.f32.mrf.mxu1 }
 0x2c0   : > { %v2208_v56 = vadd.f32 %v2207_v23, %v2158_v29 }
 0x2c1   : > { %v2304_v11 = vadd.f32 %v2303_v12, %v2255_v61 }
 0x2c3   : > { %v2728_v3 = vpack.c.bf16 %v2304_v11, %v5233_v13 }
 0x2c5   : > { %2760 = vst [vmem:[%s4253_s12 + $0xe0] sm:$0xff] %v2728_v3 }
 0x2c6   : > { %v2256_v54 = vpop.f32.mrf.mxu2  ;;  %v2317_v28 = vpop.f32.mrf.mxu0 }
 0x2c7   : > { %v2257_v22 = vadd.f32 %v2256_v54, %v2208_v56  ;;  %v2305_v17 = vpop.f32.mrf.mxu3  ;;  %v2366_v33 = vpop.f32.mrf.mxu1 }
 0x2c8   : > { %v2367_v0 = vadd.f32 %v2366_v33, %v2317_v28 }
 0x2c9   : > { %v2306_v50 = vadd.f32 %v2305_v17, %v2257_v22  ;;  %2512 = vmatmul.bf16.vlgmr.msrb.gmra.mxu0 %v4944_v57 }
 0x2ca   : > { %2561 = vmatmul.bf16.vlgmr.msrb.gmra.mxu1 %v5629_v24 }
 0x2cb   : > { %v2730_v10 = vpack.c.bf16 %v2306_v50, %v5239_v53  ;;  %2610 = vmatmul.bf16.vlgmr.msrb.gmra.mxu2 %v5630_v14 }
 0x2cc   : > { %2659 = vmatmul.bf16.vlgmr.msrb.gmra.mxu3 %v5631_v4 }
 0x2cd   : > { %2762 = vst [vmem:[%s4253_s12 + $0xf0] sm:$0xff] %v2730_v10 }
 0x2ce   : > { %v2415_v13 = vpop.f32.mrf.mxu2  ;;  %v2319_v5 = vpop.f32.mrf.mxu0 }
 0x2cf   : > { %v2416_v18 = vadd.f32 %v2415_v13, %v2367_v0  ;;  %v2464_v21 = vpop.f32.mrf.mxu3  ;;  %v2368_v63 = vpop.f32.mrf.mxu1 }
 0x2d0   : > { %v2369_v39 = vadd.f32 %v2368_v63, %v2319_v5 }
 0x2d1   : > { %v5357_v45 = vadd.f32 %v2464_v21, %v2416_v18 }
 0x2d6   : > { %v2417_v9 = vpop.f32.mrf.mxu2  ;;  %v2322_v58 = vpop.f32.mrf.mxu0 }
 0x2d7   : > { %v2418_v1 = vadd.f32 %v2417_v9, %v2369_v39  ;;  %v2466_v57 = vpop.f32.mrf.mxu3  ;;  %v2371_v53 = vpop.f32.mrf.mxu1 }
 0x2d8   : > { %v2372_v31 = vadd.f32 %v2371_v53, %v2322_v58 }
 0x2d9   : > { %v5359_v8 = vadd.f32 %v2466_v57, %v2418_v1  ;;  %2517 = vmatmul.bf16.gmra.mxu0 %v4973_v19 }
 0x2da   : > { %2566 = vmatmul.bf16.gmra.mxu1 %v4975_v62 }
 0x2db   : > { %2615 = vmatmul.bf16.gmra.mxu2 %v4977_v42 }
 0x2dc   : > { %2664 = vmatmul.bf16.gmra.mxu3 %v4979_v60 }
 0x2de   : > { %v2420_v30 = vpop.f32.mrf.mxu2  ;;  %v2324_v26 = vpop.f32.mrf.mxu0 }
 0x2df   : > { %v2421_v49 = vadd.f32 %v2420_v30, %v2372_v31  ;;  %v2469_v44 = vpop.f32.mrf.mxu3  ;;  %v2373_v61 = vpop.f32.mrf.mxu1 }
 0x2e0   : > { %v2374_v29 = vadd.f32 %v2373_v61, %v2324_v26 }
 0x2e1   : > { %v5365_v12 = vadd.f32 %v2469_v44, %v2421_v49 }
 0x2e6   : > { %v2422_v23 = vpop.f32.mrf.mxu2  ;;  %v2327_v56 = vpop.f32.mrf.mxu0 }
 0x2e7   : > { %v2423_v11 = vadd.f32 %v2422_v23, %v2374_v29  ;;  %v2471_v3 = vpop.f32.mrf.mxu3  ;;  %v2376_v54 = vpop.f32.mrf.mxu1 }
 0x2e8   : > { %v2377_v62 = vadd.f32 %v2376_v54, %v2327_v56 }
 0x2e9   : > { %v5367_v19 = vadd.f32 %v2471_v3, %v2423_v11  ;;  %2522 = vmatmul.bf16.gmra.mxu0 %v4993_v34 }
 0x2ea   : > { %2571 = vmatmul.bf16.gmra.mxu1 %v4995_v2 }
 0x2eb   : > { %2620 = vmatmul.bf16.gmra.mxu2 %v4997_v51 }
 0x2ec   : > { %2669 = vmatmul.bf16.gmra.mxu3 %v4999_v15 }
 0x2ee   : > { %v2425_v42 = vpop.f32.mrf.mxu2  ;;  %v2329_v17 = vpop.f32.mrf.mxu0 }
 0x2ef   : > { %v2426_v60 = vadd.f32 %v2425_v42, %v2377_v62  ;;  %v2474_v22 = vpop.f32.mrf.mxu3  ;;  %v2378_v28 = vpop.f32.mrf.mxu1 }
 0x2f0   : > { %v2379_v50 = vadd.f32 %v2378_v28, %v2329_v17 }
 0x2f1   : > { %v5373_v33 = vadd.f32 %v2474_v22, %v2426_v60 }
 0x2f6   : > { %v2427_v0 = vpop.f32.mrf.mxu2  ;;  %v2332_v14 = vpop.f32.mrf.mxu0 }
 0x2f7   : > { %v2428_v10 = vadd.f32 %v2427_v0, %v2379_v50  ;;  %v2476_v24 = vpop.f32.mrf.mxu3  ;;  %v2381_v4 = vpop.f32.mrf.mxu1 }
 0x2f8   : > { %v2382_v2 = vadd.f32 %v2381_v4, %v2332_v14 }
 0x2f9   : > { %v5375_v34 = vadd.f32 %v2476_v24, %v2428_v10  ;;  %2527 = vmatmul.bf16.gmra.mxu0 %v5013_v38 }
 0x2fa   : > { %2576 = vmatmul.bf16.gmra.mxu1 %v5015_v43 }
 0x2fb   : > { %2625 = vmatmul.bf16.gmra.mxu2 %v5017_v41 }
 0x2fc   : > { %2674 = vmatmul.bf16.gmra.mxu3 %v5019_v46 }
 0x2fe   : > { %v2430_v51 = vpop.f32.mrf.mxu2  ;;  %v2334_v18 = vpop.f32.mrf.mxu0 }
 0x2ff   : > { %v2431_v15 = vadd.f32 %v2430_v51, %v2382_v2  ;;  %v2479_v13 = vpop.f32.mrf.mxu3  ;;  %v2383_v21 = vpop.f32.mrf.mxu1 }
 0x300   : > { %v2384_v63 = vadd.f32 %v2383_v21, %v2334_v18 }
 0x301   : > { %v5381_v5 = vadd.f32 %v2479_v13, %v2431_v15 }
 0x306   : > { %v2432_v39 = vpop.f32.mrf.mxu2  ;;  %v2337_v57 = vpop.f32.mrf.mxu0 }
 0x307   : > { %v2433_v9 = vadd.f32 %v2432_v39, %v2384_v63  ;;  %v2481_v1 = vpop.f32.mrf.mxu3  ;;  %v2386_v58 = vpop.f32.mrf.mxu1 }
 0x308   : > { %v2387_v43 = vadd.f32 %v2386_v58, %v2337_v57 }
 0x309   : > { %v5383_v38 = vadd.f32 %v2481_v1, %v2433_v9  ;;  %2532 = vmatmul.bf16.gmra.mxu0 %v5033_v20 }
 0x30a   : > { %2581 = vmatmul.bf16.gmra.mxu1 %v5035_v55 }
 0x30b   : > { %2630 = vmatmul.bf16.gmra.mxu2 %v5037_v32 }
 0x30c   : > { %2679 = vmatmul.bf16.gmra.mxu3 %v5039_v27 }
 0x30e   : > { %v2435_v41 = vpop.f32.mrf.mxu2  ;;  %v2339_v31 = vpop.f32.mrf.mxu0 }
 0x30f   : > { %v2436_v46 = vadd.f32 %v2435_v41, %v2387_v43  ;;  %v2484_v53 = vpop.f32.mrf.mxu3  ;;  %v2388_v30 = vpop.f32.mrf.mxu1 }
 0x310   : > { %v2389_v44 = vadd.f32 %v2388_v30, %v2339_v31 }
 0x311   : > { %v5389_v49 = vadd.f32 %v2484_v53, %v2436_v46 }
 0x316   : > { %v2437_v26 = vpop.f32.mrf.mxu2  ;;  %v2342_v23 = vpop.f32.mrf.mxu0 }
 0x317   : > { %v2438_v61 = vadd.f32 %v2437_v26, %v2389_v44  ;;  %v2486_v29 = vpop.f32.mrf.mxu3  ;;  %v2391_v11 = vpop.f32.mrf.mxu1 }
 0x318   : > { %v2392_v55 = vadd.f32 %v2391_v11, %v2342_v23 }
 0x319   : > { %v5391_v20 = vadd.f32 %v2486_v29, %v2438_v61  ;;  %2537 = vmatmul.bf16.gmra.mxu0 %v5053_v37 }
 0x31a   : > { %2586 = vmatmul.bf16.gmra.mxu1 %v5055_v35 }
 0x31b   : > { %2635 = vmatmul.bf16.gmra.mxu2 %v5057_v6 }
 0x31c   : > { %2684 = vmatmul.bf16.gmra.mxu3 %v5059_v16 }
 0x31e   : > { %v2440_v32 = vpop.f32.mrf.mxu2  ;;  %v2344_v56 = vpop.f32.mrf.mxu0 }
 0x31f   : > { %v2441_v27 = vadd.f32 %v2440_v32, %v2392_v55  ;;  %v2489_v3 = vpop.f32.mrf.mxu3  ;;  %v2393_v54 = vpop.f32.mrf.mxu1 }
 0x320   : > { %v2394_v42 = vadd.f32 %v2393_v54, %v2344_v56 }
 0x321   : > { %v5397_v62 = vadd.f32 %v2489_v3, %v2441_v27 }
 0x326   : > { %v2442_v60 = vpop.f32.mrf.mxu2  ;;  %v2347_v28 = vpop.f32.mrf.mxu0 }
 0x327   : > { %v2443_v22 = vadd.f32 %v2442_v60, %v2394_v42  ;;  %v2491_v17 = vpop.f32.mrf.mxu3  ;;  %v2396_v50 = vpop.f32.mrf.mxu1 }
 0x328   : > { %v2397_v35 = vadd.f32 %v2396_v50, %v2347_v28 }
 0x329   : > { %v5399_v37 = vadd.f32 %v2491_v17, %v2443_v22  ;;  %2542 = vmatmul.bf16.gmra.mxu0 %v5073_v25 }
 0x32a   : > { %2591 = vmatmul.bf16.gmra.mxu1 %v5075_v52 }
 0x32b   : > { %2640 = vmatmul.bf16.gmra.mxu2 %v5077_v36 }
 0x32c   : > { %2689 = vmatmul.bf16.gmra.mxu3 %v5079_v47 }
 0x32e   : > { %v2445_v6 = vpop.f32.mrf.mxu2  ;;  %v2349_v10 = vpop.f32.mrf.mxu0 }
 0x32f   : > { %v2446_v16 = vadd.f32 %v2445_v6, %v2397_v35  ;;  %v2494_v0 = vpop.f32.mrf.mxu3  ;;  %v2398_v24 = vpop.f32.mrf.mxu1 }
 0x330   : > { %v2399_v4 = vadd.f32 %v2398_v24, %v2349_v10 }
 0x331   : > { %v5405_v14 = vadd.f32 %v2494_v0, %v2446_v16 }
 0x336   : > { %v2447_v2 = vpop.f32.mrf.mxu2  ;;  %v2352_v13 = vpop.f32.mrf.mxu0 }
 0x337   : > { %v2448_v51 = vadd.f32 %v2447_v2, %v2399_v4  ;;  %v2496_v15 = vpop.f32.mrf.mxu3  ;;  %v2401_v18 = vpop.f32.mrf.mxu1 }
 0x338   : > { %v2402_v52 = vadd.f32 %v2401_v18, %v2352_v13 }
 0x339   : > { %v5407_v25 = vadd.f32 %v2496_v15, %v2448_v51  ;;  %2547 = vmatmul.bf16.gmra.mxu0 %v5093_v48 }
 0x33a   : > { %2596 = vmatmul.bf16.gmra.mxu1 %v5095_v59 }
 0x33b   : > { %2645 = vmatmul.bf16.gmra.mxu2 %v5097_v7 }
 0x33c   : > { %2694 = vmatmul.bf16.gmra.mxu3 %v5628_v40 }
 0x33e   : > { %v2450_v36 = vpop.f32.mrf.mxu2  ;;  %v2354_v63 = vpop.f32.mrf.mxu0 }
 0x33f   : > { %v2451_v47 = vadd.f32 %v2450_v36, %v2402_v52  ;;  %v2499_v21 = vpop.f32.mrf.mxu3  ;;  %v2403_v39 = vpop.f32.mrf.mxu1 }
 0x340   : > { %v2404_v1 = vadd.f32 %v2403_v39, %v2354_v63 }
 0x341   : > { %v5413_v9 = vadd.f32 %v2499_v21, %v2451_v47 }
 0x346   : > { %v2452_v57 = vpop.f32.mrf.mxu2  ;;  %v2513_v41 = vpop.f32.mrf.mxu0 }
 0x347   : > { %v2453_v58 = vadd.f32 %v2452_v57, %v2404_v1  ;;  %v2501_v43 = vpop.f32.mrf.mxu3  ;;  %v2562_v46 = vpop.f32.mrf.mxu1 }
 0x348   : > { %v2563_v59 = vadd.f32 %v2562_v46, %v2513_v41 }
 0x349   : > { %v5415_v48 = vadd.f32 %v2501_v43, %v2453_v58 }
 0x34e   : > { %v2611_v7 = vpop.f32.mrf.mxu2  ;;  %v2515_v31 = vpop.f32.mrf.mxu0 }
 0x34f   : > { %v2612_v40 = vadd.f32 %v2611_v7, %v2563_v59  ;;  %v2660_v53 = vpop.f32.mrf.mxu3  ;;  %v2564_v30 = vpop.f32.mrf.mxu1 }
 0x350   : > { %v2565_v61 = vadd.f32 %v2564_v30, %v2515_v31 }
 0x351   : > { %v2661_v44 = vadd.f32 %v2660_v53, %v2612_v40 }
 0x353   : > { %v2701_v26 = vpack.c.bf16 %v2661_v44, %v5357_v45 }
 0x355   : > { %2733 = vst [vmem:[%s4253_s12 + $0x8] sm:$0xff] %v2701_v26 }
 0x356   : > { %v2613_v29 = vpop.f32.mrf.mxu2  ;;  %v2518_v55 = vpop.f32.mrf.mxu0 }
 0x357   : > { %v2614_v23 = vadd.f32 %v2613_v29, %v2565_v61  ;;  %v2662_v11 = vpop.f32.mrf.mxu3  ;;  %v2567_v32 = vpop.f32.mrf.mxu1 }
 0x358   : > { %v2568_v56 = vadd.f32 %v2567_v32, %v2518_v55 }
 0x359   : > { %v2663_v27 = vadd.f32 %v2662_v11, %v2614_v23 }
 0x35b   : > { %v2703_v3 = vpack.c.bf16 %v2663_v27, %v5359_v8 }
 0x35d   : > { %2735 = vst [vmem:[%s4253_s12 + $0x18] sm:$0xff] %v2703_v3 }
 0x35e   : > { %v2616_v45 = vpop.f32.mrf.mxu2  ;;  %v2520_v60 = vpop.f32.mrf.mxu0 }
 0x35f   : > { %v2617_v54 = vadd.f32 %v2616_v45, %v2568_v56  ;;  %v2665_v42 = vpop.f32.mrf.mxu3  ;;  %v2569_v22 = vpop.f32.mrf.mxu1 }
 0x360   : > { %v2570_v50 = vadd.f32 %v2569_v22, %v2520_v60 }
 0x361   : > { %v2666_v17 = vadd.f32 %v2665_v42, %v2617_v54 }
 0x363   : > { %v2705_v28 = vpack.c.bf16 %v2666_v17, %v5365_v12 }
 0x365   : > { %2737 = vst [vmem:[%s4253_s12 + $0x28] sm:$0xff] %v2705_v28 }
 0x366   : > { %v2618_v35 = vpop.f32.mrf.mxu2  ;;  %v2523_v0 = vpop.f32.mrf.mxu0 }
 0x367   : > { %v2619_v6 = vadd.f32 %v2618_v35, %v2570_v50  ;;  %v2667_v16 = vpop.f32.mrf.mxu3  ;;  %v2572_v10 = vpop.f32.mrf.mxu1 }
 0x368   : > { %v2573_v4 = vadd.f32 %v2572_v10, %v2523_v0 }
 0x369   : > { %v2668_v8 = vadd.f32 %v2667_v16, %v2619_v6 }
 0x36b   : > { %v2707_v24 = vpack.c.bf16 %v2668_v8, %v5367_v19 }
 0x36d   : > { %2739 = vst [vmem:[%s4253_s12 + $0x38] sm:$0xff] %v2707_v24 }
 0x36e   : > { %v2621_v2 = vpop.f32.mrf.mxu2  ;;  %v2525_v13 = vpop.f32.mrf.mxu0 }
 0x36f   : > { %v2622_v51 = vadd.f32 %v2621_v2, %v2573_v4  ;;  %v2670_v15 = vpop.f32.mrf.mxu3  ;;  %v2574_v18 = vpop.f32.mrf.mxu1 }
 0x370   : > { %v2575_v36 = vadd.f32 %v2574_v18, %v2525_v13 }
 0x371   : > { %v2671_v12 = vadd.f32 %v2670_v15, %v2622_v51 }
 0x373   : > { %v2709_v52 = vpack.c.bf16 %v2671_v12, %v5373_v33 }
 0x375   : > { %2741 = vst [vmem:[%s4253_s12 + $0x48] sm:$0xff] %v2709_v52 }
 0x376   : > { %v2623_v47 = vpop.f32.mrf.mxu2  ;;  %v2528_v39 = vpop.f32.mrf.mxu0 }
 0x377   : > { %v2624_v21 = vadd.f32 %v2623_v47, %v2575_v36  ;;  %v2672_v63 = vpop.f32.mrf.mxu3  ;;  %v2577_v1 = vpop.f32.mrf.mxu1 }
 0x378   : > { %v2578_v58 = vadd.f32 %v2577_v1, %v2528_v39 }
 0x379   : > { %v2673_v19 = vadd.f32 %v2672_v63, %v2624_v21 }
 0x37b   : > { %v2711_v57 = vpack.c.bf16 %v2673_v19, %v5375_v34 }
 0x37d   : > { %2743 = vst [vmem:[%s4253_s12 + $0x58] sm:$0xff] %v2711_v57 }
 0x37e   : > { %v2626_v43 = vpop.f32.mrf.mxu2  ;;  %v2530_v59 = vpop.f32.mrf.mxu0 }
 0x37f   : > { %v2627_v41 = vadd.f32 %v2626_v43, %v2578_v58  ;;  %v2675_v46 = vpop.f32.mrf.mxu3  ;;  %v2579_v7 = vpop.f32.mrf.mxu1 }
 0x380   : > { %v2580_v53 = vadd.f32 %v2579_v7, %v2530_v59 }
 0x381   : > { %v2676_v33 = vadd.f32 %v2675_v46, %v2627_v41 }
 0x383   : > { %v2713_v40 = vpack.c.bf16 %v2676_v33, %v5381_v5 }
 0x385   : > { %2745 = vst [vmem:[%s4253_s12 + $0x68] sm:$0xff] %v2713_v40 }
 0x386   : > { %v2628_v31 = vpop.f32.mrf.mxu2  ;;  %v2533_v26 = vpop.f32.mrf.mxu0 }
 0x387   : > { %v2629_v30 = vadd.f32 %v2628_v31, %v2580_v53  ;;  %v2677_v44 = vpop.f32.mrf.mxu3  ;;  %v2582_v61 = vpop.f32.mrf.mxu1 }
 0x388   : > { %v2583_v23 = vadd.f32 %v2582_v61, %v2533_v26 }
 0x389   : > { %v2678_v34 = vadd.f32 %v2677_v44, %v2629_v30 }
 0x38b   : > { %v2715_v29 = vpack.c.bf16 %v2678_v34, %v5383_v38 }
 0x38d   : > { %2747 = vst [vmem:[%s4253_s12 + $0x78] sm:$0xff] %v2715_v29 }
 0x38e   : > { %v2631_v11 = vpop.f32.mrf.mxu2  ;;  %v2535_v27 = vpop.f32.mrf.mxu0 }
 0x38f   : > { %v2632_v55 = vadd.f32 %v2631_v11, %v2583_v23  ;;  %v2680_v32 = vpop.f32.mrf.mxu3  ;;  %v2584_v3 = vpop.f32.mrf.mxu1 }
 0x390   : > { %v2585_v45 = vadd.f32 %v2584_v3, %v2535_v27 }
 0x391   : > { %v2681_v5 = vadd.f32 %v2680_v32, %v2632_v55 }
 0x393   : > { %v2717_v56 = vpack.c.bf16 %v2681_v5, %v5389_v49 }
 0x395   : > { %2749 = vst [vmem:[%s4253_s12 + $0x88] sm:$0xff] %v2717_v56 }
 0x396   : > { %v2633_v54 = vpop.f32.mrf.mxu2  ;;  %v2538_v22 = vpop.f32.mrf.mxu0 }
 0x397   : > { %v2634_v42 = vadd.f32 %v2633_v54, %v2585_v45  ;;  %v2682_v60 = vpop.f32.mrf.mxu3  ;;  %v2587_v17 = vpop.f32.mrf.mxu1 }
 0x398   : > { %v2588_v50 = vadd.f32 %v2587_v17, %v2538_v22 }
 0x399   : > { %v2683_v38 = vadd.f32 %v2682_v60, %v2634_v42 }
 0x39b   : > { %v2719_v28 = vpack.c.bf16 %v2683_v38, %v5391_v20 }
 0x39d   : > { %2751 = vst [vmem:[%s4253_s12 + $0x98] sm:$0xff] %v2719_v28 }
 0x39e   : > { %v2636_v35 = vpop.f32.mrf.mxu2  ;;  %v2540_v0 = vpop.f32.mrf.mxu0 }
 0x39f   : > { %v2637_v6 = vadd.f32 %v2636_v35, %v2588_v50  ;;  %v2685_v16 = vpop.f32.mrf.mxu3  ;;  %v2589_v10 = vpop.f32.mrf.mxu1 }
 0x3a0   : > { %v2590_v24 = vadd.f32 %v2589_v10, %v2540_v0 }
 0x3a1   : > { %v2686_v49 = vadd.f32 %v2685_v16, %v2637_v6 }
 0x3a3   : > { %v2721_v8 = vpack.c.bf16 %v2686_v49, %v5397_v62 }
 0x3a5   : > { %2753 = vst [vmem:[%s4253_s12 + $0xa8] sm:$0xff] %v2721_v8 }
 0x3a6   : > { %v2638_v4 = vpop.f32.mrf.mxu2  ;;  %v2543_v15 = vpop.f32.mrf.mxu0 }
 0x3a7   : > { %v2639_v2 = vadd.f32 %v2638_v4, %v2590_v24  ;;  %v2687_v51 = vpop.f32.mrf.mxu3  ;;  %v2592_v13 = vpop.f32.mrf.mxu1 }
 0x3a8   : > { %v2593_v12 = vadd.f32 %v2592_v13, %v2543_v15 }
 0x3a9   : > { %v2688_v20 = vadd.f32 %v2687_v51, %v2639_v2 }
 0x3ab   : > { %v2723_v18 = vpack.c.bf16 %v2688_v20, %v5399_v37 }
 0x3ad   : > { %2755 = vst [vmem:[%s4253_s12 + $0xb8] sm:$0xff] %v2723_v18 }
 0x3ae   : > { %v2641_v52 = vpop.f32.mrf.mxu2  ;;  %v2545_v21 = vpop.f32.mrf.mxu0 }
 0x3af   : > { %v2642_v36 = vadd.f32 %v2641_v52, %v2593_v12  ;;  %v2690_v47 = vpop.f32.mrf.mxu3  ;;  %v2594_v63 = vpop.f32.mrf.mxu1 }
 0x3b0   : > { %v2595_v1 = vadd.f32 %v2594_v63, %v2545_v21 }
 0x3b1   : > { %v2691_v62 = vadd.f32 %v2690_v47, %v2642_v36 }
 0x3b3   : > { %v2725_v39 = vpack.c.bf16 %v2691_v62, %v5405_v14 }
 0x3b5   : > { %2757 = vst [vmem:[%s4253_s12 + $0xc8] sm:$0xff] %v2725_v39 }
 0x3b6   : > { %v2643_v19 = vpop.f32.mrf.mxu2  ;;  %v2548_v43 = vpop.f32.mrf.mxu0 }
 0x3b7   : > { %v2644_v57 = vadd.f32 %v2643_v19, %v2595_v1  ;;  %v2692_v58 = vpop.f32.mrf.mxu3  ;;  %v2597_v37 = vpop.f32.mrf.mxu1 }
 0x3b8   : > { %v2598_v59 = vadd.f32 %v2597_v37, %v2548_v43 }
 0x3b9   : > { %v2693_v41 = vadd.f32 %v2692_v58, %v2644_v57 }
 0x3bb   : > { %v2727_v46 = vpack.c.bf16 %v2693_v41, %v5407_v25 }
 0x3bd   : > { %2759 = vst [vmem:[%s4253_s12 + $0xd8] sm:$0xff] %v2727_v46 }
 0x3be   : > { %v2646_v7 = vpop.f32.mrf.mxu2  ;;  %v2550_v14 = vpop.f32.mrf.mxu0 }
 0x3bf   : > { %v2647_v33 = vadd.f32 %v2646_v7, %v2598_v59  ;;  %v2695_v40 = vpop.f32.mrf.mxu3  ;;  %v2599_v31 = vpop.f32.mrf.mxu1 }
 0x3c0   : > { %v2600_v44 = vadd.f32 %v2599_v31, %v2550_v14 }
 0x3c1   : > { %v2696_v53 = vadd.f32 %v2695_v40, %v2647_v33 }
 0x3c3   : > { %v2729_v30 = vpack.c.bf16 %v2696_v53, %v5413_v9 }
 0x3c5   : > { %2761 = vst [vmem:[%s4253_s12 + $0xe8] sm:$0xff] %v2729_v30 }
 0x3c6   : > { %v2648_v25 = vpop.f32.mrf.mxu2 }
 0x3c7   : > { %v2649_v26 = vadd.f32 %v2648_v25, %v2600_v44  ;;  %v2697_v61 = vpop.f32.mrf.mxu3 }
 0x3c9   : > { %v2698_v34 = vadd.f32 %v2697_v61, %v2649_v26 }
 0x3cb   : > { %v2731_v29 = vpack.c.bf16 %v2698_v34, %v5415_v48 }
 0x3cd   : > { %2763 = vst [vmem:[%s4253_s12 + $0xf8] sm:$0xff] %v2731_v29 }
 0x3ce   : > { %4020 = shalt.err (!%p4017_p7)
}
 0x3cf   : > { %s4098_s0 = smov 512  }
 0x3d0   : > { %3754 = dma.vmem_to_hbm [thread:$0]  (%p4177_p8), %s2781_s14, 4096, %s2783_s10, %s2765_s18, %s4096_s23, %s4098_s0, %s4097_s29  }
 0x3d1   : > { %4058 = dma.done.wait (%p126_p5), [#allocation11], 4096  }
 0x3d2   : > { %4060 = vsyncadd (%p126_p5), [#allocation11], 4294963200 }
 0x3d3 PF: > { %s5633_s5 = sld [smem:[#allocation17_spill]]  ;;  %s2820_s7 = sand.u32 1, %s4067_s15  }
 0x3d4   : > { %p3772_p9 = pnand %p2925_p1, %p4182_p10  ;;  %s2821_s6 = scalar_lea.sflag [#allocation5], %s2820_s7 }
 0x3d6   : > { %p3773_p4 = pneg %p3772_p9 }
 0x3d8   : > { %4062 = dma.done.wait (%p3773_p4), %s2821_s6, 4096  }
 0x3d9   : > { %4064 = vsyncadd (%p3773_p4), %s2821_s6, 4294963200  ;;  %s21_s20 = sadd.s32 1, %s5633_s5   ;;  %s5634_s15 = smov %s4071_s16 }
 0x3da   : > { %p18_p8 = scmp.ge.s32.totalorder %s21_s20, 4   ;;  %s5635_s16 = smov %s4075_s17 }
 0x3db   : > { %s5636_s17 = smov %s4225_s11  ;;  %s5637_s18 = smov %s4083_s19 }
 0x3dc   : > { %s5638_s19 = smov %s5640_s27  ;;  %20 = sbr.rel (!%p18_p8) target bundleno = 10 (0xa), region = 98 }
 0x3e1   :  { %2827 = vsyncpa [#allocation4], 1 }
 0x3e2   :  { %2829 = vsyncpa [#allocation4 + $0x1], 1 }
 0x3e3   :  { %2830 = vsyncpa [#allocation7], 1 }
 0x3e4   :  { %2831 = vsyncpa [#allocation5], 1 }
 0x3e5   :  { %2833 = vsyncpa [#allocation5 + $0x1], 1 }
 0x3e6   :  { %2834 = vsyncpa [#allocation11], 1 }

</bundles_post_ra>
